<compile_context>
chip_gen: v6e
topology: v6e:2x2x1
jax: 0.10.0
libtpu: 0.0.40
codegen_flags: <defaults>
</compile_context>

<pallas_src>
import functools

import jax
import jax.numpy as jnp
from jax.experimental import pallas as pl
from jax.experimental.pallas import tpu as pltpu

EPS = 1e-5  # nn.InstanceNorm2d default eps


# ------------------------------ kernel body -------------------------------- #
def _fill_padded(pad_ref, x3, padding_type):
  """Write x3 (H, W, C) into pad_ref (H+2, W+2, C) with a 1-pixel halo."""
  H, W, C = x3.shape
  pad_ref[1:H + 1, 1:W + 1, :] = x3                       # interior
  if padding_type == "reflection":
    top, bot = x3[1:2], x3[H - 2:H - 1]
  elif padding_type == "replication":
    top, bot = x3[0:1], x3[H - 1:H]
  elif padding_type == "zero":
    top = bot = jnp.zeros((1, W, C), x3.dtype)
  else:
    raise ValueError(f"unsupported padding_type: {padding_type}")
  pad_ref[0:1, 1:W + 1, :] = top                          # top / bottom rows
  pad_ref[H + 1:H + 2, 1:W + 1, :] = bot
  # Columns last: corners come along for free since the rows are in place.
  if padding_type == "reflection":
    lcol, rcol = pad_ref[:, 2:3, :], pad_ref[:, W - 1:W, :]
  elif padding_type == "replication":
    lcol, rcol = pad_ref[:, 1:2, :], pad_ref[:, W:W + 1, :]
  else:  # zero
    lcol = rcol = jnp.zeros((H + 2, 1, C), x3.dtype)
  pad_ref[:, 0:1, :] = lcol
  pad_ref[:, W + 1:W + 2, :] = rcol


def _conv3x3_instnorm(pad_ref, w, g, be):
  """3x3 valid conv over the padded slab + affine instance norm.

  pad_ref: (H+2, W+2, C) VMEM scratch (conv dtype)
  w:       (3, 3, C, C) HWIO weights (conv dtype, value)
  g, be:   (1, C) float32 affine params (values)
  returns: (H*W, C) float32
  """
  Hp, Wp, C = pad_ref.shape
  H, W = Hp - 2, Wp - 2
  n = H * W

  xp = pad_ref[...]                                   # padded slab, conv dtype
  acc = jnp.zeros((n, C), jnp.float32)
  # 9 shifted matmuls == 3x3 conv; accumulate in f32 on the MXU.
  # (Further headroom: fold taps into K=9C / realign with pltpu.roll.)
  for dy in range(3):
    for dx in range(3):
      patch = xp[dy:dy + H, dx:dx + W, :].reshape(n, C)
      acc = acc + jnp.dot(patch, w[dy, dx],
                          preferred_element_type=jnp.float32)
  # NOTE: no conv bias here -- a per-channel constant is cancelled exactly by
  # the InstanceNorm mean subtraction below.

  # Single-pass instance-norm stats (per-channel over the spatial axis).
  inv_n = 1.0 / n
  mean = jnp.sum(acc, axis=0, keepdims=True) * inv_n
  var = jnp.sum(acc * acc, axis=0, keepdims=True) * inv_n - mean * mean
  var = jnp.maximum(var, 0.0)                         # guard f32 cancellation
  scale = g * jax.lax.rsqrt(var + EPS)
  shift = be - mean * scale
  return acc * scale + shift                          # fused center+affine


def _resblock_kernel(x_ref, w1_ref, w2_ref, g1_ref, be1_ref, g2_ref, be2_ref,
                     out_ref, pad_ref, *, padding_type):
  """Fused ResidualBlock for one image (grid step = one batch element)."""
  _, H, W, C = x_ref.shape
  x3 = x_ref[0]                                       # (H, W, C), conv dtype
  w1 = w1_ref[...]
  w2 = w2_ref[...]

  # Stage 1: relu(IN1(conv1(x)))  -- stays entirely in VMEM.
  _fill_padded(pad_ref, x3, padding_type)
  y1 = _conv3x3_instnorm(pad_ref, w1, g1_ref[...], be1_ref[...])
  y1 = jnp.maximum(y1, 0.0)                           # (H*W, C) f32

  # Stage 2: IN2(conv2(y1)) + x   -- reuse the same padded scratch slab.
  _fill_padded(pad_ref, y1.reshape(H, W, C).astype(pad_ref.dtype), padding_type)
  y2 = _conv3x3_instnorm(pad_ref, w2, g2_ref[...], be2_ref[...])

  res = x3.reshape(H * W, C).astype(jnp.float32)
  out_ref[0] = (y2 + res).astype(out_ref.dtype)       # lane-dense (H*W, C)


# ------------------------------ host wrapper -------------------------------- #
def _residual_block_nhwc(x_nhwc, params, padding_type, conv_dtype):
  B, H, W, C = x_nhwc.shape
  cdt = jnp.dtype(conv_dtype)

  # OIHW -> HWIO, cast weights/activations once at the HBM boundary.
  w1 = jnp.transpose(params["w1"], (2, 3, 1, 0)).astype(cdt)
  w2 = jnp.transpose(params["w2"], (2, 3, 1, 0)).astype(cdt)
  g1 = params["g1"].reshape(1, C).astype(jnp.float32)
  be1 = params["be1"].reshape(1, C).astype(jnp.float32)
  g2 = params["g2"].reshape(1, C).astype(jnp.float32)
  be2 = params["be2"].reshape(1, C).astype(jnp.float32)
  x_in = x_nhwc.astype(cdt)
  # (conv biases b1/b2 are intentionally not passed: cancelled by InstanceNorm)

  kernel = functools.partial(_resblock_kernel, padding_type=padding_type)
  param_spec = pl.BlockSpec((3, 3, C, C), lambda i: (0, 0, 0, 0))
  vec_spec = pl.BlockSpec((1, C), lambda i: (0, 0))

  out_flat = pl.pallas_call(
      kernel,
      out_shape=jax.ShapeDtypeStruct((B, H * W, C), jnp.float32),
      grid=(B,),
      in_specs=[
          pl.BlockSpec((1, H, W, C), lambda i: (i, 0, 0, 0)),
          param_spec, param_spec, vec_spec, vec_spec, vec_spec, vec_spec,
      ],
      out_specs=pl.BlockSpec((1, H * W, C), lambda i: (i, 0, 0)),
      scratch_shapes=[pltpu.VMEM((H + 2, W + 2, C), cdt)],
      compiler_params=pltpu.CompilerParams(
          dimension_semantics=("parallel",),
          vmem_limit_bytes=32 * 1024 * 1024),
  )(x_in, w1, w2, g1, be1, g2, be2)

  return out_flat.reshape(B, H, W, C)


@functools.partial(jax.jit, static_argnames=("padding_type", "conv_dtype"))
def residual_block(x_nchw, params, padding_type="reflection",
                   conv_dtype="float32"):
  """ResidualBlock forward. x_nchw: (B, C, H, W) f32 -> (B, C, H, W) f32.

  If stacking many blocks, keep the network in NHWC and do these transposes
  once at the model boundary instead of per block.
  """
  x = jnp.transpose(x_nchw, (0, 2, 3, 1)).astype(jnp.float32)      # NHWC
  y = _residual_block_nhwc(x, params, padding_type, conv_dtype)
  return jnp.transpose(y, (0, 3, 1, 2))                            # NCHW


# ------------------------------- reference ---------------------------------- #
_PAD_MODE = {"zero": "constant", "reflection": "reflect", "replication": "edge"}


def _ref_residual_block(x, params, padding_type="reflection"):
  mode = _PAD_MODE[padding_type]

  def conv(a, w_oihw, b):
    ap = jnp.pad(a, ((0, 0), (0, 0), (1, 1), (1, 1)), mode=mode)
    out = jax.lax.conv_general_dilated(
        ap, w_oihw, window_strides=(1, 1), padding="VALID",
        dimension_numbers=("NCHW", "OIHW", "NCHW"))
    return out + b[None, :, None, None]

  def inorm(a, g, be):
    mean = a.mean(axis=(2, 3), keepdims=True)
    var = a.var(axis=(2, 3), keepdims=True)
    return (a - mean) / jnp.sqrt(var + EPS) * g[None, :, None, None] + \
        be[None, :, None, None]

  y = jax.nn.relu(inorm(conv(x, params["w1"], params["b1"]),
                        params["g1"], params["be1"]))
  y = inorm(conv(y, params["w2"], params["b2"]), params["g2"], params["be2"])
  return y + x


# --------------------------------- main -------------------------------------- #
if __name__ == "__main__":
  B, C, H, W = 2, 4, 16, 16
  key = jax.random.PRNGKey(0)
  kx, kw1, kb1, kw2, kb2, kg1, kbe1, kg2, kbe2 = jax.random.split(key, 9)

  x = jax.random.normal(kx, (B, C, H, W), jnp.float32)

  # PyTorch Conv2d weight layout OIHW; biases included (reference uses them,
  # the kernel relies on their exact cancellation by InstanceNorm).
  params = {
      "w1": jax.random.normal(kw1, (C, C, 3, 3), jnp.float32) * 0.2,
      "b1": jax.random.normal(kb1, (C,), jnp.float32) * 0.1,
      "g1": 1.0 + 0.1 * jax.random.normal(kg1, (C,), jnp.float32),
      "be1": 0.1 * jax.random.normal(kbe1, (C,), jnp.float32),
      "w2": jax.random.normal(kw2, (C, C, 3, 3), jnp.float32) * 0.2,
      "b2": jax.random.normal(kb2, (C,), jnp.float32) * 0.1,
      "g2": 1.0 + 0.1 * jax.random.normal(kg2, (C,), jnp.float32),
      "be2": 0.1 * jax.random.normal(kbe2, (C,), jnp.float32),
  }

  # Exact (f32) path, all three padding modes.
  ref_reflect = _ref_residual_block(x, params, "reflection")
  for ptype in ("reflection", "replication", "zero"):
    out = jax.block_until_ready(residual_block(x, params, padding_type=ptype))
    ref = ref_reflect if ptype == "reflection" else \
        _ref_residual_block(x, params, ptype)
    assert out.shape == (B, C, H, W)
    assert jnp.allclose(out, ref, rtol=1e-3, atol=1e-3), \
        f"{ptype}: max abs err {jnp.max(jnp.abs(out - ref))}"

  # bf16 MXU fast path (v6e/v7x): looser tolerance vs the f32 reference.
  out_bf16 = jax.block_until_ready(
      residual_block(x, params, padding_type="reflection",
                     conv_dtype="bfloat16"))
  assert jnp.allclose(out_bf16, ref_reflect, rtol=1e-1, atol=1e-1), \
      f"bf16: max abs err {jnp.max(jnp.abs(out_bf16 - ref_reflect))}"

  print("KERNEL_OK")
</pallas_src>

<mosaic_0001>
module attributes {stable_mosaic.version = 11 : i64} {
  func.func @_resblock_kernel(%arg0: i32, %arg1: memref<1x16x16x4xf32, #tpu.memory_space<vmem>>, %arg2: memref<3x3x4x4xf32, #tpu.memory_space<vmem>>, %arg3: memref<3x3x4x4xf32, #tpu.memory_space<vmem>>, %arg4: memref<1x4xf32, #tpu.memory_space<vmem>>, %arg5: memref<1x4xf32, #tpu.memory_space<vmem>>, %arg6: memref<1x4xf32, #tpu.memory_space<vmem>>, %arg7: memref<1x4xf32, #tpu.memory_space<vmem>>, %arg8: memref<1x256x4xf32, #tpu.memory_space<vmem>>, %arg9: memref<18x18x4xf32, #tpu.memory_space<vmem>>) attributes {dimension_semantics = [#tpu.dimension_semantics<parallel>], iteration_bounds = array<i64: 2>, scalar_prefetch = 0 : i64, scratch_operands = 1 : i64, tpu.core_type = #tpu.core_type<tc>, window_params = [{transform_indices = @transform_0, window_bounds = array<i64: 1, 16, 16, 4>}, {pipeline_mode = #tpu.pipeline_mode<synchronous>, transform_indices = @transform_1, window_bounds = array<i64: 3, 3, 4, 4>}, {pipeline_mode = #tpu.pipeline_mode<synchronous>, transform_indices = @transform_2, window_bounds = array<i64: 3, 3, 4, 4>}, {pipeline_mode = #tpu.pipeline_mode<synchronous>, transform_indices = @transform_3, window_bounds = array<i64: 1, 4>}, {pipeline_mode = #tpu.pipeline_mode<synchronous>, transform_indices = @transform_4, window_bounds = array<i64: 1, 4>}, {pipeline_mode = #tpu.pipeline_mode<synchronous>, transform_indices = @transform_5, window_bounds = array<i64: 1, 4>}, {pipeline_mode = #tpu.pipeline_mode<synchronous>, transform_indices = @transform_6, window_bounds = array<i64: 1, 4>}, {transform_indices = @transform_7, window_bounds = array<i64: 1, 256, 4>}]} {
    %c0 = arith.constant 0 : index
    %c0_0 = arith.constant 0 : index
    %c0_1 = arith.constant 0 : index
    %c0_2 = arith.constant 0 : index
    %0 = vector.load %arg1[%c0, %c0_0, %c0_1, %c0_2] : memref<1x16x16x4xf32, #tpu.memory_space<vmem>>, vector<1x16x16x4xf32>
    %1 = vector.shape_cast %0 : vector<1x16x16x4xf32> to vector<16x16x4xf32>
    %c0_3 = arith.constant 0 : index
    %c0_4 = arith.constant 0 : index
    %c0_5 = arith.constant 0 : index
    %c0_6 = arith.constant 0 : index
    %2 = vector.load %arg2[%c0_3, %c0_4, %c0_5, %c0_6] : memref<3x3x4x4xf32, #tpu.memory_space<vmem>>, vector<3x3x4x4xf32>
    %c0_7 = arith.constant 0 : index
    %c0_8 = arith.constant 0 : index
    %c0_9 = arith.constant 0 : index
    %c0_10 = arith.constant 0 : index
    %3 = vector.load %arg3[%c0_7, %c0_8, %c0_9, %c0_10] : memref<3x3x4x4xf32, #tpu.memory_space<vmem>>, vector<3x3x4x4xf32>
    %c1 = arith.constant 1 : index
    %c1_11 = arith.constant 1 : index
    %c0_12 = arith.constant 0 : index
    %4 = vector.load %arg9[%c1, %c1_11, %c0_12] : memref<18x18x4xf32, #tpu.memory_space<vmem>>, vector<16x16x4xf32>
    tpu.vector_store %arg9[%c1, %c1_11, %c0_12], %1 {strides = array<i32>} : memref<18x18x4xf32, #tpu.memory_space<vmem>>, vector<16x16x4xf32>,
    %5 = vector.extract_strided_slice %1 {offsets = [1, 0, 0], sizes = [1, 16, 4], strides = [1, 1, 1]} : vector<16x16x4xf32> to vector<1x16x4xf32>
    %6 = vector.extract_strided_slice %1 {offsets = [14, 0, 0], sizes = [1, 16, 4], strides = [1, 1, 1]} : vector<16x16x4xf32> to vector<1x16x4xf32>
    %c0_13 = arith.constant 0 : index
    %c1_14 = arith.constant 1 : index
    %c0_15 = arith.constant 0 : index
    %7 = vector.load %arg9[%c0_13, %c1_14, %c0_15] : memref<18x18x4xf32, #tpu.memory_space<vmem>>, vector<1x16x4xf32>
    tpu.vector_store %arg9[%c0_13, %c1_14, %c0_15], %5 {strides = array<i32>} : memref<18x18x4xf32, #tpu.memory_space<vmem>>, vector<1x16x4xf32>,
    %c17 = arith.constant 17 : index
    %c1_16 = arith.constant 1 : index
    %c0_17 = arith.constant 0 : index
    %8 = vector.load %arg9[%c17, %c1_16, %c0_17] : memref<18x18x4xf32, #tpu.memory_space<vmem>>, vector<1x16x4xf32>
    tpu.vector_store %arg9[%c17, %c1_16, %c0_17], %6 {strides = array<i32>} : memref<18x18x4xf32, #tpu.memory_space<vmem>>, vector<1x16x4xf32>,
    %c0_18 = arith.constant 0 : index
    %c2 = arith.constant 2 : index
    %c0_19 = arith.constant 0 : index
    %9 = vector.load %arg9[%c0_18, %c2, %c0_19] : memref<18x18x4xf32, #tpu.memory_space<vmem>>, vector<18x1x4xf32>
    %c0_20 = arith.constant 0 : index
    %c15 = arith.constant 15 : index
    %c0_21 = arith.constant 0 : index
    %10 = vector.load %arg9[%c0_20, %c15, %c0_21] : memref<18x18x4xf32, #tpu.memory_space<vmem>>, vector<18x1x4xf32>
    %c0_22 = arith.constant 0 : index
    %c0_23 = arith.constant 0 : index
    %c0_24 = arith.constant 0 : index
    %11 = vector.load %arg9[%c0_22, %c0_23, %c0_24] : memref<18x18x4xf32, #tpu.memory_space<vmem>>, vector<18x1x4xf32>
    tpu.vector_store %arg9[%c0_22, %c0_23, %c0_24], %9 {strides = array<i32>} : memref<18x18x4xf32, #tpu.memory_space<vmem>>, vector<18x1x4xf32>,
    %c0_25 = arith.constant 0 : index
    %c17_26 = arith.constant 17 : index
    %c0_27 = arith.constant 0 : index
    %12 = vector.load %arg9[%c0_25, %c17_26, %c0_27] : memref<18x18x4xf32, #tpu.memory_space<vmem>>, vector<18x1x4xf32>
    tpu.vector_store %arg9[%c0_25, %c17_26, %c0_27], %10 {strides = array<i32>} : memref<18x18x4xf32, #tpu.memory_space<vmem>>, vector<18x1x4xf32>,
    %c0_28 = arith.constant 0 : index
    %c0_29 = arith.constant 0 : index
    %13 = vector.load %arg4[%c0_28, %c0_29] : memref<1x4xf32, #tpu.memory_space<vmem>>, vector<1x4xf32>
    %c0_30 = arith.constant 0 : index
    %c0_31 = arith.constant 0 : index
    %14 = vector.load %arg5[%c0_30, %c0_31] : memref<1x4xf32, #tpu.memory_space<vmem>>, vector<1x4xf32>
    %c0_32 = arith.constant 0 : index
    %c0_33 = arith.constant 0 : index
    %c0_34 = arith.constant 0 : index
    %15 = vector.load %arg9[%c0_32, %c0_33, %c0_34] : memref<18x18x4xf32, #tpu.memory_space<vmem>>, vector<18x18x4xf32>
    %cst = arith.constant 0.000000e+00 : f32
    %16 = vector.broadcast %cst : f32 to vector<256x4xf32>
    %17 = vector.extract_strided_slice %15 {offsets = [0, 0, 0], sizes = [16, 16, 4], strides = [1, 1, 1]} : vector<18x18x4xf32> to vector<16x16x4xf32>
    %18 = vector.shape_cast %17 : vector<16x16x4xf32> to vector<256x4xf32>
    %19 = vector.extract_strided_slice %2 {offsets = [0, 0, 0, 0], sizes = [1, 1, 4, 4], strides = [1, 1, 1, 1]} : vector<3x3x4x4xf32> to vector<1x1x4x4xf32>
    %20 = vector.shape_cast %19 : vector<1x1x4x4xf32> to vector<4x4xf32>
    %cst_35 = arith.constant dense<0.000000e+00> : vector<256x4xf32>
    %21 = tpu.matmul %18, %20, %cst_35 {dimension_numbers = #tpu.dot_dimension_numbers<[1], [0], [0], [1], [0, 0, 1, 1], [], []>} : vector<256x4xf32>, vector<4x4xf32>, vector<256x4xf32> -> vector<256x4xf32>
    %22 = arith.addf %16, %21 : vector<256x4xf32>
    %23 = vector.extract_strided_slice %15 {offsets = [0, 1, 0], sizes = [16, 16, 4], strides = [1, 1, 1]} : vector<18x18x4xf32> to vector<16x16x4xf32>
    %24 = vector.shape_cast %23 : vector<16x16x4xf32> to vector<256x4xf32>
    %25 = vector.extract_strided_slice %2 {offsets = [0, 1, 0, 0], sizes = [1, 1, 4, 4], strides = [1, 1, 1, 1]} : vector<3x3x4x4xf32> to vector<1x1x4x4xf32>
    %26 = vector.shape_cast %25 : vector<1x1x4x4xf32> to vector<4x4xf32>
    %cst_36 = arith.constant dense<0.000000e+00> : vector<256x4xf32>
    %27 = tpu.matmul %24, %26, %cst_36 {dimension_numbers = #tpu.dot_dimension_numbers<[1], [0], [0], [1], [0, 0, 1, 1], [], []>} : vector<256x4xf32>, vector<4x4xf32>, vector<256x4xf32> -> vector<256x4xf32>
    %28 = arith.addf %22, %27 : vector<256x4xf32>
    %29 = vector.extract_strided_slice %15 {offsets = [0, 2, 0], sizes = [16, 16, 4], strides = [1, 1, 1]} : vector<18x18x4xf32> to vector<16x16x4xf32>
    %30 = vector.shape_cast %29 : vector<16x16x4xf32> to vector<256x4xf32>
    %31 = vector.extract_strided_slice %2 {offsets = [0, 2, 0, 0], sizes = [1, 1, 4, 4], strides = [1, 1, 1, 1]} : vector<3x3x4x4xf32> to vector<1x1x4x4xf32>
    %32 = vector.shape_cast %31 : vector<1x1x4x4xf32> to vector<4x4xf32>
    %cst_37 = arith.constant dense<0.000000e+00> : vector<256x4xf32>
    %33 = tpu.matmul %30, %32, %cst_37 {dimension_numbers = #tpu.dot_dimension_numbers<[1], [0], [0], [1], [0, 0, 1, 1], [], []>} : vector<256x4xf32>, vector<4x4xf32>, vector<256x4xf32> -> vector<256x4xf32>
    %34 = arith.addf %28, %33 : vector<256x4xf32>
    %35 = vector.extract_strided_slice %15 {offsets = [1, 0, 0], sizes = [16, 16, 4], strides = [1, 1, 1]} : vector<18x18x4xf32> to vector<16x16x4xf32>
    %36 = vector.shape_cast %35 : vector<16x16x4xf32> to vector<256x4xf32>
    %37 = vector.extract_strided_slice %2 {offsets = [1, 0, 0, 0], sizes = [1, 1, 4, 4], strides = [1, 1, 1, 1]} : vector<3x3x4x4xf32> to vector<1x1x4x4xf32>
    %38 = vector.shape_cast %37 : vector<1x1x4x4xf32> to vector<4x4xf32>
    %cst_38 = arith.constant dense<0.000000e+00> : vector<256x4xf32>
    %39 = tpu.matmul %36, %38, %cst_38 {dimension_numbers = #tpu.dot_dimension_numbers<[1], [0], [0], [1], [0, 0, 1, 1], [], []>} : vector<256x4xf32>, vector<4x4xf32>, vector<256x4xf32> -> vector<256x4xf32>
    %40 = arith.addf %34, %39 : vector<256x4xf32>
    %41 = vector.extract_strided_slice %15 {offsets = [1, 1, 0], sizes = [16, 16, 4], strides = [1, 1, 1]} : vector<18x18x4xf32> to vector<16x16x4xf32>
    %42 = vector.shape_cast %41 : vector<16x16x4xf32> to vector<256x4xf32>
    %43 = vector.extract_strided_slice %2 {offsets = [1, 1, 0, 0], sizes = [1, 1, 4, 4], strides = [1, 1, 1, 1]} : vector<3x3x4x4xf32> to vector<1x1x4x4xf32>
    %44 = vector.shape_cast %43 : vector<1x1x4x4xf32> to vector<4x4xf32>
    %cst_39 = arith.constant dense<0.000000e+00> : vector<256x4xf32>
    %45 = tpu.matmul %42, %44, %cst_39 {dimension_numbers = #tpu.dot_dimension_numbers<[1], [0], [0], [1], [0, 0, 1, 1], [], []>} : vector<256x4xf32>, vector<4x4xf32>, vector<256x4xf32> -> vector<256x4xf32>
    %46 = arith.addf %40, %45 : vector<256x4xf32>
    %47 = vector.extract_strided_slice %15 {offsets = [1, 2, 0], sizes = [16, 16, 4], strides = [1, 1, 1]} : vector<18x18x4xf32> to vector<16x16x4xf32>
    %48 = vector.shape_cast %47 : vector<16x16x4xf32> to vector<256x4xf32>
    %49 = vector.extract_strided_slice %2 {offsets = [1, 2, 0, 0], sizes = [1, 1, 4, 4], strides = [1, 1, 1, 1]} : vector<3x3x4x4xf32> to vector<1x1x4x4xf32>
    %50 = vector.shape_cast %49 : vector<1x1x4x4xf32> to vector<4x4xf32>
    %cst_40 = arith.constant dense<0.000000e+00> : vector<256x4xf32>
    %51 = tpu.matmul %48, %50, %cst_40 {dimension_numbers = #tpu.dot_dimension_numbers<[1], [0], [0], [1], [0, 0, 1, 1], [], []>} : vector<256x4xf32>, vector<4x4xf32>, vector<256x4xf32> -> vector<256x4xf32>
    %52 = arith.addf %46, %51 : vector<256x4xf32>
    %53 = vector.extract_strided_slice %15 {offsets = [2, 0, 0], sizes = [16, 16, 4], strides = [1, 1, 1]} : vector<18x18x4xf32> to vector<16x16x4xf32>
    %54 = vector.shape_cast %53 : vector<16x16x4xf32> to vector<256x4xf32>
    %55 = vector.extract_strided_slice %2 {offsets = [2, 0, 0, 0], sizes = [1, 1, 4, 4], strides = [1, 1, 1, 1]} : vector<3x3x4x4xf32> to vector<1x1x4x4xf32>
    %56 = vector.shape_cast %55 : vector<1x1x4x4xf32> to vector<4x4xf32>
    %cst_41 = arith.constant dense<0.000000e+00> : vector<256x4xf32>
    %57 = tpu.matmul %54, %56, %cst_41 {dimension_numbers = #tpu.dot_dimension_numbers<[1], [0], [0], [1], [0, 0, 1, 1], [], []>} : vector<256x4xf32>, vector<4x4xf32>, vector<256x4xf32> -> vector<256x4xf32>
    %58 = arith.addf %52, %57 : vector<256x4xf32>
    %59 = vector.extract_strided_slice %15 {offsets = [2, 1, 0], sizes = [16, 16, 4], strides = [1, 1, 1]} : vector<18x18x4xf32> to vector<16x16x4xf32>
    %60 = vector.shape_cast %59 : vector<16x16x4xf32> to vector<256x4xf32>
    %61 = vector.extract_strided_slice %2 {offsets = [2, 1, 0, 0], sizes = [1, 1, 4, 4], strides = [1, 1, 1, 1]} : vector<3x3x4x4xf32> to vector<1x1x4x4xf32>
    %62 = vector.shape_cast %61 : vector<1x1x4x4xf32> to vector<4x4xf32>
    %cst_42 = arith.constant dense<0.000000e+00> : vector<256x4xf32>
    %63 = tpu.matmul %60, %62, %cst_42 {dimension_numbers = #tpu.dot_dimension_numbers<[1], [0], [0], [1], [0, 0, 1, 1], [], []>} : vector<256x4xf32>, vector<4x4xf32>, vector<256x4xf32> -> vector<256x4xf32>
    %64 = arith.addf %58, %63 : vector<256x4xf32>
    %65 = vector.extract_strided_slice %15 {offsets = [2, 2, 0], sizes = [16, 16, 4], strides = [1, 1, 1]} : vector<18x18x4xf32> to vector<16x16x4xf32>
    %66 = vector.shape_cast %65 : vector<16x16x4xf32> to vector<256x4xf32>
    %67 = vector.extract_strided_slice %2 {offsets = [2, 2, 0, 0], sizes = [1, 1, 4, 4], strides = [1, 1, 1, 1]} : vector<3x3x4x4xf32> to vector<1x1x4x4xf32>
    %68 = vector.shape_cast %67 : vector<1x1x4x4xf32> to vector<4x4xf32>
    %cst_43 = arith.constant dense<0.000000e+00> : vector<256x4xf32>
    %69 = tpu.matmul %66, %68, %cst_43 {dimension_numbers = #tpu.dot_dimension_numbers<[1], [0], [0], [1], [0, 0, 1, 1], [], []>} : vector<256x4xf32>, vector<4x4xf32>, vector<256x4xf32> -> vector<256x4xf32>
    %70 = arith.addf %64, %69 : vector<256x4xf32>
    %cst_44 = arith.constant dense<0.000000e+00> : vector<4xf32>
    %71 = vector.multi_reduction <add>, %70, %cst_44 [0] : vector<256x4xf32> to vector<4xf32>
    %72 = vector.shape_cast %71 : vector<4xf32> to vector<1x4xf32>
    %cst_45 = arith.constant 3.906250e-03 : f32
    %73 = vector.broadcast %cst_45 : f32 to vector<1x4xf32>
    %74 = arith.mulf %72, %73 : vector<1x4xf32>
    %75 = arith.mulf %70, %70 : vector<256x4xf32>
    %cst_46 = arith.constant dense<0.000000e+00> : vector<4xf32>
    %76 = vector.multi_reduction <add>, %75, %cst_46 [0] : vector<256x4xf32> to vector<4xf32>
    %77 = vector.shape_cast %76 : vector<4xf32> to vector<1x4xf32>
    %cst_47 = arith.constant 3.906250e-03 : f32
    %78 = vector.broadcast %cst_47 : f32 to vector<1x4xf32>
    %79 = arith.mulf %77, %78 : vector<1x4xf32>
    %80 = arith.mulf %74, %74 : vector<1x4xf32>
    %81 = arith.subf %79, %80 : vector<1x4xf32>
    %cst_48 = arith.constant 0.000000e+00 : f32
    %82 = vector.broadcast %cst_48 : f32 to vector<1x4xf32>
    %83 = arith.maximumf %81, %82 : vector<1x4xf32>
    %cst_49 = arith.constant 9.99999974E-6 : f32
    %84 = vector.broadcast %cst_49 : f32 to vector<1x4xf32>
    %85 = arith.addf %83, %84 : vector<1x4xf32>
    %86 = math.rsqrt %85 : vector<1x4xf32>
    %87 = arith.mulf %13, %86 : vector<1x4xf32>
    %88 = arith.mulf %74, %87 : vector<1x4xf32>
    %89 = arith.subf %14, %88 : vector<1x4xf32>
    %90 = vector.broadcast %87 : vector<1x4xf32> to vector<256x4xf32>
    %91 = arith.mulf %70, %90 : vector<256x4xf32>
    %92 = vector.broadcast %89 : vector<1x4xf32> to vector<256x4xf32>
    %93 = arith.addf %91, %92 : vector<256x4xf32>
    %cst_50 = arith.constant 0.000000e+00 : f32
    %94 = vector.broadcast %cst_50 : f32 to vector<256x4xf32>
    %95 = arith.maximumf %93, %94 : vector<256x4xf32>
    %96 = vector.shape_cast %95 : vector<256x4xf32> to vector<16x16x4xf32>
    %c1_51 = arith.constant 1 : index
    %c1_52 = arith.constant 1 : index
    %c0_53 = arith.constant 0 : index
    %97 = vector.load %arg9[%c1_51, %c1_52, %c0_53] : memref<18x18x4xf32, #tpu.memory_space<vmem>>, vector<16x16x4xf32>
    tpu.vector_store %arg9[%c1_51, %c1_52, %c0_53], %96 {strides = array<i32>} : memref<18x18x4xf32, #tpu.memory_space<vmem>>, vector<16x16x4xf32>,
    %98 = vector.extract_strided_slice %96 {offsets = [1, 0, 0], sizes = [1, 16, 4], strides = [1, 1, 1]} : vector<16x16x4xf32> to vector<1x16x4xf32>
    %99 = vector.extract_strided_slice %96 {offsets = [14, 0, 0], sizes = [1, 16, 4], strides = [1, 1, 1]} : vector<16x16x4xf32> to vector<1x16x4xf32>
    %c0_54 = arith.constant 0 : index
    %c1_55 = arith.constant 1 : index
    %c0_56 = arith.constant 0 : index
    %100 = vector.load %arg9[%c0_54, %c1_55, %c0_56] : memref<18x18x4xf32, #tpu.memory_space<vmem>>, vector<1x16x4xf32>
    tpu.vector_store %arg9[%c0_54, %c1_55, %c0_56], %98 {strides = array<i32>} : memref<18x18x4xf32, #tpu.memory_space<vmem>>, vector<1x16x4xf32>,
    %c17_57 = arith.constant 17 : index
    %c1_58 = arith.constant 1 : index
    %c0_59 = arith.constant 0 : index
    %101 = vector.load %arg9[%c17_57, %c1_58, %c0_59] : memref<18x18x4xf32, #tpu.memory_space<vmem>>, vector<1x16x4xf32>
    tpu.vector_store %arg9[%c17_57, %c1_58, %c0_59], %99 {strides = array<i32>} : memref<18x18x4xf32, #tpu.memory_space<vmem>>, vector<1x16x4xf32>,
    %c0_60 = arith.constant 0 : index
    %c2_61 = arith.constant 2 : index
    %c0_62 = arith.constant 0 : index
    %102 = vector.load %arg9[%c0_60, %c2_61, %c0_62] : memref<18x18x4xf32, #tpu.memory_space<vmem>>, vector<18x1x4xf32>
    %c0_63 = arith.constant 0 : index
    %c15_64 = arith.constant 15 : index
    %c0_65 = arith.constant 0 : index
    %103 = vector.load %arg9[%c0_63, %c15_64, %c0_65] : memref<18x18x4xf32, #tpu.memory_space<vmem>>, vector<18x1x4xf32>
    %c0_66 = arith.constant 0 : index
    %c0_67 = arith.constant 0 : index
    %c0_68 = arith.constant 0 : index
    %104 = vector.load %arg9[%c0_66, %c0_67, %c0_68] : memref<18x18x4xf32, #tpu.memory_space<vmem>>, vector<18x1x4xf32>
    tpu.vector_store %arg9[%c0_66, %c0_67, %c0_68], %102 {strides = array<i32>} : memref<18x18x4xf32, #tpu.memory_space<vmem>>, vector<18x1x4xf32>,
    %c0_69 = arith.constant 0 : index
    %c17_70 = arith.constant 17 : index
    %c0_71 = arith.constant 0 : index
    %105 = vector.load %arg9[%c0_69, %c17_70, %c0_71] : memref<18x18x4xf32, #tpu.memory_space<vmem>>, vector<18x1x4xf32>
    tpu.vector_store %arg9[%c0_69, %c17_70, %c0_71], %103 {strides = array<i32>} : memref<18x18x4xf32, #tpu.memory_space<vmem>>, vector<18x1x4xf32>,
    %c0_72 = arith.constant 0 : index
    %c0_73 = arith.constant 0 : index
    %106 = vector.load %arg6[%c0_72, %c0_73] : memref<1x4xf32, #tpu.memory_space<vmem>>, vector<1x4xf32>
    %c0_74 = arith.constant 0 : index
    %c0_75 = arith.constant 0 : index
    %107 = vector.load %arg7[%c0_74, %c0_75] : memref<1x4xf32, #tpu.memory_space<vmem>>, vector<1x4xf32>
    %c0_76 = arith.constant 0 : index
    %c0_77 = arith.constant 0 : index
    %c0_78 = arith.constant 0 : index
    %108 = vector.load %arg9[%c0_76, %c0_77, %c0_78] : memref<18x18x4xf32, #tpu.memory_space<vmem>>, vector<18x18x4xf32>
    %cst_79 = arith.constant 0.000000e+00 : f32
    %109 = vector.broadcast %cst_79 : f32 to vector<256x4xf32>
    %110 = vector.extract_strided_slice %108 {offsets = [0, 0, 0], sizes = [16, 16, 4], strides = [1, 1, 1]} : vector<18x18x4xf32> to vector<16x16x4xf32>
    %111 = vector.shape_cast %110 : vector<16x16x4xf32> to vector<256x4xf32>
    %112 = vector.extract_strided_slice %3 {offsets = [0, 0, 0, 0], sizes = [1, 1, 4, 4], strides = [1, 1, 1, 1]} : vector<3x3x4x4xf32> to vector<1x1x4x4xf32>
    %113 = vector.shape_cast %112 : vector<1x1x4x4xf32> to vector<4x4xf32>
    %cst_80 = arith.constant dense<0.000000e+00> : vector<256x4xf32>
    %114 = tpu.matmul %111, %113, %cst_80 {dimension_numbers = #tpu.dot_dimension_numbers<[1], [0], [0], [1], [0, 0, 1, 1], [], []>} : vector<256x4xf32>, vector<4x4xf32>, vector<256x4xf32> -> vector<256x4xf32>
    %115 = arith.addf %109, %114 : vector<256x4xf32>
    %116 = vector.extract_strided_slice %108 {offsets = [0, 1, 0], sizes = [16, 16, 4], strides = [1, 1, 1]} : vector<18x18x4xf32> to vector<16x16x4xf32>
    %117 = vector.shape_cast %116 : vector<16x16x4xf32> to vector<256x4xf32>
    %118 = vector.extract_strided_slice %3 {offsets = [0, 1, 0, 0], sizes = [1, 1, 4, 4], strides = [1, 1, 1, 1]} : vector<3x3x4x4xf32> to vector<1x1x4x4xf32>
    %119 = vector.shape_cast %118 : vector<1x1x4x4xf32> to vector<4x4xf32>
    %cst_81 = arith.constant dense<0.000000e+00> : vector<256x4xf32>
    %120 = tpu.matmul %117, %119, %cst_81 {dimension_numbers = #tpu.dot_dimension_numbers<[1], [0], [0], [1], [0, 0, 1, 1], [], []>} : vector<256x4xf32>, vector<4x4xf32>, vector<256x4xf32> -> vector<256x4xf32>
    %121 = arith.addf %115, %120 : vector<256x4xf32>
    %122 = vector.extract_strided_slice %108 {offsets = [0, 2, 0], sizes = [16, 16, 4], strides = [1, 1, 1]} : vector<18x18x4xf32> to vector<16x16x4xf32>
    %123 = vector.shape_cast %122 : vector<16x16x4xf32> to vector<256x4xf32>
    %124 = vector.extract_strided_slice %3 {offsets = [0, 2, 0, 0], sizes = [1, 1, 4, 4], strides = [1, 1, 1, 1]} : vector<3x3x4x4xf32> to vector<1x1x4x4xf32>
    %125 = vector.shape_cast %124 : vector<1x1x4x4xf32> to vector<4x4xf32>
    %cst_82 = arith.constant dense<0.000000e+00> : vector<256x4xf32>
    %126 = tpu.matmul %123, %125, %cst_82 {dimension_numbers = #tpu.dot_dimension_numbers<[1], [0], [0], [1], [0, 0, 1, 1], [], []>} : vector<256x4xf32>, vector<4x4xf32>, vector<256x4xf32> -> vector<256x4xf32>
    %127 = arith.addf %121, %126 : vector<256x4xf32>
    %128 = vector.extract_strided_slice %108 {offsets = [1, 0, 0], sizes = [16, 16, 4], strides = [1, 1, 1]} : vector<18x18x4xf32> to vector<16x16x4xf32>
    %129 = vector.shape_cast %128 : vector<16x16x4xf32> to vector<256x4xf32>
    %130 = vector.extract_strided_slice %3 {offsets = [1, 0, 0, 0], sizes = [1, 1, 4, 4], strides = [1, 1, 1, 1]} : vector<3x3x4x4xf32> to vector<1x1x4x4xf32>
    %131 = vector.shape_cast %130 : vector<1x1x4x4xf32> to vector<4x4xf32>
    %cst_83 = arith.constant dense<0.000000e+00> : vector<256x4xf32>
    %132 = tpu.matmul %129, %131, %cst_83 {dimension_numbers = #tpu.dot_dimension_numbers<[1], [0], [0], [1], [0, 0, 1, 1], [], []>} : vector<256x4xf32>, vector<4x4xf32>, vector<256x4xf32> -> vector<256x4xf32>
    %133 = arith.addf %127, %132 : vector<256x4xf32>
    %134 = vector.extract_strided_slice %108 {offsets = [1, 1, 0], sizes = [16, 16, 4], strides = [1, 1, 1]} : vector<18x18x4xf32> to vector<16x16x4xf32>
    %135 = vector.shape_cast %134 : vector<16x16x4xf32> to vector<256x4xf32>
    %136 = vector.extract_strided_slice %3 {offsets = [1, 1, 0, 0], sizes = [1, 1, 4, 4], strides = [1, 1, 1, 1]} : vector<3x3x4x4xf32> to vector<1x1x4x4xf32>
    %137 = vector.shape_cast %136 : vector<1x1x4x4xf32> to vector<4x4xf32>
    %cst_84 = arith.constant dense<0.000000e+00> : vector<256x4xf32>
    %138 = tpu.matmul %135, %137, %cst_84 {dimension_numbers = #tpu.dot_dimension_numbers<[1], [0], [0], [1], [0, 0, 1, 1], [], []>} : vector<256x4xf32>, vector<4x4xf32>, vector<256x4xf32> -> vector<256x4xf32>
    %139 = arith.addf %133, %138 : vector<256x4xf32>
    %140 = vector.extract_strided_slice %108 {offsets = [1, 2, 0], sizes = [16, 16, 4], strides = [1, 1, 1]} : vector<18x18x4xf32> to vector<16x16x4xf32>
    %141 = vector.shape_cast %140 : vector<16x16x4xf32> to vector<256x4xf32>
    %142 = vector.extract_strided_slice %3 {offsets = [1, 2, 0, 0], sizes = [1, 1, 4, 4], strides = [1, 1, 1, 1]} : vector<3x3x4x4xf32> to vector<1x1x4x4xf32>
    %143 = vector.shape_cast %142 : vector<1x1x4x4xf32> to vector<4x4xf32>
    %cst_85 = arith.constant dense<0.000000e+00> : vector<256x4xf32>
    %144 = tpu.matmul %141, %143, %cst_85 {dimension_numbers = #tpu.dot_dimension_numbers<[1], [0], [0], [1], [0, 0, 1, 1], [], []>} : vector<256x4xf32>, vector<4x4xf32>, vector<256x4xf32> -> vector<256x4xf32>
    %145 = arith.addf %139, %144 : vector<256x4xf32>
    %146 = vector.extract_strided_slice %108 {offsets = [2, 0, 0], sizes = [16, 16, 4], strides = [1, 1, 1]} : vector<18x18x4xf32> to vector<16x16x4xf32>
    %147 = vector.shape_cast %146 : vector<16x16x4xf32> to vector<256x4xf32>
    %148 = vector.extract_strided_slice %3 {offsets = [2, 0, 0, 0], sizes = [1, 1, 4, 4], strides = [1, 1, 1, 1]} : vector<3x3x4x4xf32> to vector<1x1x4x4xf32>
    %149 = vector.shape_cast %148 : vector<1x1x4x4xf32> to vector<4x4xf32>
    %cst_86 = arith.constant dense<0.000000e+00> : vector<256x4xf32>
    %150 = tpu.matmul %147, %149, %cst_86 {dimension_numbers = #tpu.dot_dimension_numbers<[1], [0], [0], [1], [0, 0, 1, 1], [], []>} : vector<256x4xf32>, vector<4x4xf32>, vector<256x4xf32> -> vector<256x4xf32>
    %151 = arith.addf %145, %150 : vector<256x4xf32>
    %152 = vector.extract_strided_slice %108 {offsets = [2, 1, 0], sizes = [16, 16, 4], strides = [1, 1, 1]} : vector<18x18x4xf32> to vector<16x16x4xf32>
    %153 = vector.shape_cast %152 : vector<16x16x4xf32> to vector<256x4xf32>
    %154 = vector.extract_strided_slice %3 {offsets = [2, 1, 0, 0], sizes = [1, 1, 4, 4], strides = [1, 1, 1, 1]} : vector<3x3x4x4xf32> to vector<1x1x4x4xf32>
    %155 = vector.shape_cast %154 : vector<1x1x4x4xf32> to vector<4x4xf32>
    %cst_87 = arith.constant dense<0.000000e+00> : vector<256x4xf32>
    %156 = tpu.matmul %153, %155, %cst_87 {dimension_numbers = #tpu.dot_dimension_numbers<[1], [0], [0], [1], [0, 0, 1, 1], [], []>} : vector<256x4xf32>, vector<4x4xf32>, vector<256x4xf32> -> vector<256x4xf32>
    %157 = arith.addf %151, %156 : vector<256x4xf32>
    %158 = vector.extract_strided_slice %108 {offsets = [2, 2, 0], sizes = [16, 16, 4], strides = [1, 1, 1]} : vector<18x18x4xf32> to vector<16x16x4xf32>
    %159 = vector.shape_cast %158 : vector<16x16x4xf32> to vector<256x4xf32>
    %160 = vector.extract_strided_slice %3 {offsets = [2, 2, 0, 0], sizes = [1, 1, 4, 4], strides = [1, 1, 1, 1]} : vector<3x3x4x4xf32> to vector<1x1x4x4xf32>
    %161 = vector.shape_cast %160 : vector<1x1x4x4xf32> to vector<4x4xf32>
    %cst_88 = arith.constant dense<0.000000e+00> : vector<256x4xf32>
    %162 = tpu.matmul %159, %161, %cst_88 {dimension_numbers = #tpu.dot_dimension_numbers<[1], [0], [0], [1], [0, 0, 1, 1], [], []>} : vector<256x4xf32>, vector<4x4xf32>, vector<256x4xf32> -> vector<256x4xf32>
    %163 = arith.addf %157, %162 : vector<256x4xf32>
    %cst_89 = arith.constant dense<0.000000e+00> : vector<4xf32>
    %164 = vector.multi_reduction <add>, %163, %cst_89 [0] : vector<256x4xf32> to vector<4xf32>
    %165 = vector.shape_cast %164 : vector<4xf32> to vector<1x4xf32>
    %cst_90 = arith.constant 3.906250e-03 : f32
    %166 = vector.broadcast %cst_90 : f32 to vector<1x4xf32>
    %167 = arith.mulf %165, %166 : vector<1x4xf32>
    %168 = arith.mulf %163, %163 : vector<256x4xf32>
    %cst_91 = arith.constant dense<0.000000e+00> : vector<4xf32>
    %169 = vector.multi_reduction <add>, %168, %cst_91 [0] : vector<256x4xf32> to vector<4xf32>
    %170 = vector.shape_cast %169 : vector<4xf32> to vector<1x4xf32>
    %cst_92 = arith.constant 3.906250e-03 : f32
    %171 = vector.broadcast %cst_92 : f32 to vector<1x4xf32>
    %172 = arith.mulf %170, %171 : vector<1x4xf32>
    %173 = arith.mulf %167, %167 : vector<1x4xf32>
    %174 = arith.subf %172, %173 : vector<1x4xf32>
    %cst_93 = arith.constant 0.000000e+00 : f32
    %175 = vector.broadcast %cst_93 : f32 to vector<1x4xf32>
    %176 = arith.maximumf %174, %175 : vector<1x4xf32>
    %cst_94 = arith.constant 9.99999974E-6 : f32
    %177 = vector.broadcast %cst_94 : f32 to vector<1x4xf32>
    %178 = arith.addf %176, %177 : vector<1x4xf32>
    %179 = math.rsqrt %178 : vector<1x4xf32>
    %180 = arith.mulf %106, %179 : vector<1x4xf32>
    %181 = arith.mulf %167, %180 : vector<1x4xf32>
    %182 = arith.subf %107, %181 : vector<1x4xf32>
    %183 = vector.broadcast %180 : vector<1x4xf32> to vector<256x4xf32>
    %184 = arith.mulf %163, %183 : vector<256x4xf32>
    %185 = vector.broadcast %182 : vector<1x4xf32> to vector<256x4xf32>
    %186 = arith.addf %184, %185 : vector<256x4xf32>
    %187 = vector.shape_cast %1 : vector<16x16x4xf32> to vector<256x4xf32>
    %188 = arith.addf %186, %187 : vector<256x4xf32>
    %c0_95 = arith.constant 0 : index
    %c0_96 = arith.constant 0 : index
    %c0_97 = arith.constant 0 : index
    %189 = vector.load %arg8[%c0_95, %c0_96, %c0_97] : memref<1x256x4xf32, #tpu.memory_space<vmem>>, vector<1x256x4xf32>
    %190 = vector.shape_cast %189 : vector<1x256x4xf32> to vector<256x4xf32>
    %191 = vector.shape_cast %188 : vector<256x4xf32> to vector<1x256x4xf32>
    tpu.vector_store %arg8[%c0_95, %c0_96, %c0_97], %191 {strides = array<i32>} : memref<1x256x4xf32, #tpu.memory_space<vmem>>, vector<1x256x4xf32>,
    return
  }
  func.func @transform_0(%arg0: i32) -> (i32, i32, i32, i32) {
    %c0_i32 = arith.constant 0 : i32
    %c0_i32_0 = arith.constant 0 : i32
    %c0_i32_1 = arith.constant 0 : i32
    %c0_i32_2 = arith.constant 0 : i32
    return %arg0, %c0_i32, %c0_i32_0, %c0_i32_1 : i32, i32, i32, i32
  }
  func.func @transform_1(%arg0: i32) -> (i32, i32, i32, i32) {
    %c0_i32 = arith.constant 0 : i32
    %c0_i32_0 = arith.constant 0 : i32
    %c0_i32_1 = arith.constant 0 : i32
    %c0_i32_2 = arith.constant 0 : i32
    %c0_i32_3 = arith.constant 0 : i32
    return %c0_i32, %c0_i32_0, %c0_i32_1, %c0_i32_2 : i32, i32, i32, i32
  }
  func.func @transform_2(%arg0: i32) -> (i32, i32, i32, i32) {
    %c0_i32 = arith.constant 0 : i32
    %c0_i32_0 = arith.constant 0 : i32
    %c0_i32_1 = arith.constant 0 : i32
    %c0_i32_2 = arith.constant 0 : i32
    %c0_i32_3 = arith.constant 0 : i32
    return %c0_i32, %c0_i32_0, %c0_i32_1, %c0_i32_2 : i32, i32, i32, i32
  }
  func.func @transform_3(%arg0: i32) -> (i32, i32) {
    %c0_i32 = arith.constant 0 : i32
    %c0_i32_0 = arith.constant 0 : i32
    %c0_i32_1 = arith.constant 0 : i32
    return %c0_i32, %c0_i32_0 : i32, i32
  }
  func.func @transform_4(%arg0: i32) -> (i32, i32) {
    %c0_i32 = arith.constant 0 : i32
    %c0_i32_0 = arith.constant 0 : i32
    %c0_i32_1 = arith.constant 0 : i32
    return %c0_i32, %c0_i32_0 : i32, i32
  }
  func.func @transform_5(%arg0: i32) -> (i32, i32) {
    %c0_i32 = arith.constant 0 : i32
    %c0_i32_0 = arith.constant 0 : i32
    %c0_i32_1 = arith.constant 0 : i32
    return %c0_i32, %c0_i32_0 : i32, i32
  }
  func.func @transform_6(%arg0: i32) -> (i32, i32) {
    %c0_i32 = arith.constant 0 : i32
    %c0_i32_0 = arith.constant 0 : i32
    %c0_i32_1 = arith.constant 0 : i32
    return %c0_i32, %c0_i32_0 : i32, i32
  }
  func.func @transform_7(%arg0: i32) -> (i32, i32, i32) {
    %c0_i32 = arith.constant 0 : i32
    %c0_i32_0 = arith.constant 0 : i32
    %c0_i32_1 = arith.constant 0 : i32
    return %arg0, %c0_i32, %c0_i32_0 : i32, i32, i32
  }
}

</mosaic_0001>

<bundles_post_ra>
// kernel: residual_block.1
= control target key start
LH: loop header
LB: loop body
LE: loop exit
PB: predicated region body
PF: predicated region fallthrough
CT: control target
= control target key end

     0   :  { %s8940_s24 = smov 0   ;;  %s13135_s0 = inlined_call_operand.vmem [shape: f32[2,16,16,4], index: 0, kind: input, shape index: {}]   ;;  %s13136_s1 = inlined_call_operand.vmem [shape: f32[3,3,4,4], index: 1, kind: input, shape index: {}]   ;;  %s13137_s2 = inlined_call_operand.vmem [shape: f32[3,3,4,4], index: 2, kind: input, shape index: {}]   ;;  %s13138_s3 = inlined_call_operand.vmem [shape: f32[1,4], index: 3, kind: input, shape index: {}]   ;;  %s13139_s4 = inlined_call_operand.vmem [shape: f32[1,4], index: 4, kind: input, shape index: {}]   ;;  %s13140_s5 = inlined_call_operand.vmem [shape: f32[1,4], index: 5, kind: input, shape index: {}]   ;;  %s13141_s6 = inlined_call_operand.vmem [shape: f32[1,4], index: 6, kind: input, shape index: {}]   ;;  %s13142_s7 = inlined_call_operand.vmem [shape: f32[2,256,4], index: 7, kind: output, shape index: {}]  }
   0x1 LB: > { %s6779_s25 = sadd.s32 4294967295, %s8898_s24   ;;  %p6783_p0 = scmp.ge.s32.totalorder %s8898_s24, 1  ;;  %s8898_s24 = sphi %s8940_s24, %s17_s24  }
   0x2   : > { %p237_p1 = scmp.lt.s32.totalorder %s8898_s24, 3 }
   0x4   : > { %p238_p2 = pnand %p6783_p0, %p237_p1 }
   0x6   : > { %241 = sbr.rel (%p238_p2) target bundleno = 1256 (0x4e8), region = 48 }
   0xb   : > { %v312_v0 = vld [vmem:[%s13136_s1 + $0x4] sm:$0xf]  ;;  %vm690_vm0 = vcmask 1043456   ;;  %v311_v1 = vld [vmem:[%s13136_s1] sm:$0xf]  ;;  %p269_p3 = scmp.lt.s32.totalorder %s6779_s25, 1 }
   0xc   : > { %7980 = vmatprep.subr.msk.mxu0 %vm690_vm0, %v312_v0  ;;  %8030 = vmatprep.subr.msk.mxu1 %vm690_vm0, %v311_v1  ;;  %v8959_v2 = vld [vmem:[%s13136_s1 + $0x8] sm:$0xf]  ;;  %v8968_v3 = vld [vmem:[%s13136_s1 + $0xc] sm:$0xf]  ;;  %vm330_vm1 = vcmask 31744   ;;  %vm404_vm2 = vcmask 24576  }
   0xd   : > { %7981 = vmatpush3.msk.msra.mxu0 %vm690_vm0, %v312_v0  ;;  %s13814_s25 = smov (!%p269_p3, %s6779_s25), 1  ;;  %8031 = vmatpush3.msk.msra.mxu1 %vm690_vm0, %v311_v1  ;;  %vm545_vm3 = vcmask 1046528   ;;  %vm1211_vm4 = vcmask 1045504  }
   0xe   : > { %8080 = vmatprep.subr.msk.mxu0 %vm690_vm0, %v8959_v2  ;;  %8130 = vmatprep.subr.msk.mxu1 %vm690_vm0, %v8968_v3  ;;  %s7384_s11 = sshll.u32 %s13814_s25, 8 }
   0xf   : > { %s8980_s14 = scalar_lea.vmem %s13135_s0, %s7384_s11  ;;  %s13034_s13 = scalar_lea.vmem %s13142_s7, %s7384_s11 }
  0x10   : > { %v8983_v4 = vld [vmem:[%s8980_s14 + $0x10] sm:$0xff]  ;;  %v8986_v5 = vld [vmem:[%s8980_s14 + $0x18] sm:$0xff]  ;;  %v8989_v6 = vld [vmem:[%s8980_s14] sm:$0xff] }
  0x11   : > { %13336 = vst [vmem:[#allocation3_spill] sm:$0xff] %v8983_v4  ;;  %13337 = vst [vmem:[#allocation4_spill] sm:$0xff] %v8986_v5  ;;  %v9000_v7 = vld [vmem:[%s8980_s14 + $0x8] sm:$0xff]  ;;  %v9005_v8 = vld [vmem:[%s8980_s14 + $0x20] sm:$0xff] }
  0x12   : > { %13338 = vst [vmem:[#allocation5_spill] sm:$0xff] %v8989_v6  ;;  %333 = vst.msk [vmem:[#allocation2 + $0x31] sm:$0xff] %vm330_vm1, %v8983_v4  ;;  %v9008_v9 = vld [vmem:[%s8980_s14 + $0x28] sm:$0xff]  ;;  %v9017_v10 = vld [vmem:[%s8980_s14 + $0x30] sm:$0xff] }
  0x13   : > { %334 = vst.msk [vmem:[#allocation2 + $0x39] sm:$0xff] %vm330_vm1, %v8986_v5  ;;  %363 = vst.msk [vmem:[#allocation2 + $0x1] sm:$0xff] %vm330_vm1, %v8983_v4  ;;  %v9020_v11 = vld [vmem:[%s8980_s14 + $0x38] sm:$0xff]  ;;  %v9023_v12 = vld [vmem:[%s8980_s14 + $0x40] sm:$0xff] }
  0x14   : > { %364 = vst.msk [vmem:[#allocation2 + $0x9] sm:$0xff] %vm330_vm1, %v8986_v5  ;;  %13339 = vst [vmem:[#allocation6_spill] sm:$0xff] %v9000_v7  ;;  %v9030_v13 = vld [vmem:[%s8980_s14 + $0x48] sm:$0xff]  ;;  %v9035_v14 = vld [vmem:[%s8980_s14 + $0x50] sm:$0xff] }
  0x15   : > { %331 = vst.msk [vmem:[#allocation2 + $0x19] sm:$0xff] %vm330_vm1, %v8989_v6  ;;  %13340 = vst [vmem:[#allocation7_spill] sm:$0xff] %v9005_v8  ;;  %v9038_v15 = vld [vmem:[%s8980_s14 + $0x58] sm:$0xff]  ;;  %v9047_v16 = vld [vmem:[%s8980_s14 + $0x60] sm:$0xff] }
  0x16   : > { %13341 = vst [vmem:[#allocation8_spill] sm:$0xff] %v9008_v9  ;;  %332 = vst.msk [vmem:[#allocation2 + $0x21] sm:$0xff] %vm330_vm1, %v9000_v7  ;;  %v9050_v17 = vld [vmem:[%s8980_s14 + $0x68] sm:$0xff]  ;;  %v9053_v18 = vld [vmem:[%s8980_s14 + $0x70] sm:$0xff] }
  0x17   : > { %335 = vst.msk [vmem:[#allocation2 + $0x49] sm:$0xff] %vm330_vm1, %v9005_v8  ;;  %336 = vst.msk [vmem:[#allocation2 + $0x51] sm:$0xff] %vm330_vm1, %v9008_v9  ;;  %v9060_v19 = vld [vmem:[%s8980_s14 + $0x78] sm:$0xff]  ;;  %v9065_v20 = vld [vmem:[%s8980_s14 + $0x80] sm:$0xff] }
  0x18   : > { %13342 = vst [vmem:[#allocation9_spill] sm:$0xff] %v9017_v10  ;;  %13343 = vst [vmem:[#allocation10_spill] sm:$0xff] %v9020_v11  ;;  %v9068_v21 = vld [vmem:[%s8980_s14 + $0x88] sm:$0xff]  ;;  %v9077_v22 = vld [vmem:[%s8980_s14 + $0x90] sm:$0xff] }
  0x19   : > { %13344 = vst [vmem:[#allocation11_spill] sm:$0xff] %v9023_v12  ;;  %337 = vst.msk [vmem:[#allocation2 + $0x61] sm:$0xff] %vm330_vm1, %v9017_v10  ;;  %v9080_v23 = vld [vmem:[%s8980_s14 + $0x98] sm:$0xff]  ;;  %v9083_v24 = vld [vmem:[%s8980_s14 + $0xa0] sm:$0xff] }
  0x1a   : > { %338 = vst.msk [vmem:[#allocation2 + $0x69] sm:$0xff] %vm330_vm1, %v9020_v11  ;;  %13345 = vst [vmem:[#allocation12_spill] sm:$0xff] %v9030_v13  ;;  %v9090_v25 = vld [vmem:[%s8980_s14 + $0xa8] sm:$0xff]  ;;  %v9095_v26 = vld [vmem:[%s8980_s14 + $0xb0] sm:$0xff] }
  0x1b   : > { %339 = vst.msk [vmem:[#allocation2 + $0x79] sm:$0xff] %vm330_vm1, %v9023_v12  ;;  %13346 = vst [vmem:[#allocation13_spill] sm:$0xff] %v9035_v14  ;;  %v9098_v27 = vld [vmem:[%s8980_s14 + $0xb8] sm:$0xff]  ;;  %v368_v28 = vld [vmem:[#allocation2 + $0x2] sm:$0x1] }
  0x1c   : > { %13347 = vst [vmem:[#allocation14_spill] sm:$0xff] %v9038_v15  ;;  %340 = vst.msk [vmem:[#allocation2 + $0x81] sm:$0xff] %vm330_vm1, %v9030_v13  ;;  %v386_v29 = vld [vmem:[#allocation2 + $0xf] sm:$0x1]  ;;  %v369_v30 = vld [vmem:[#allocation2 + $0x1a] sm:$0x1] }
  0x1d   : > { %341 = vst.msk [vmem:[#allocation2 + $0x91] sm:$0xff] %vm330_vm1, %v9035_v14  ;;  %342 = vst.msk [vmem:[#allocation2 + $0x99] sm:$0xff] %vm330_vm1, %v9038_v15  ;;  %v387_v31 = vld [vmem:[#allocation2 + $0x27] sm:$0x1]  ;;  %v370_v32 = vld [vmem:[#allocation2 + $0x32] sm:$0x1] }
  0x1e   : > { %13348 = vst [vmem:[#allocation15_spill] sm:$0xff] %v9047_v16  ;;  %13349 = vst [vmem:[#allocation16_spill] sm:$0xff] %v9050_v17  ;;  %v388_v33 = vld [vmem:[#allocation2 + $0x3f] sm:$0x1]  ;;  %v371_v34 = vld [vmem:[#allocation2 + $0x4a] sm:$0x1] }
  0x1f   : > { %13350 = vst [vmem:[#allocation17_spill] sm:$0xff] %v9053_v18  ;;  %343 = vst.msk [vmem:[#allocation2 + $0xa9] sm:$0xff] %vm330_vm1, %v9047_v16  ;;  %v389_v35 = vld [vmem:[#allocation2 + $0x57] sm:$0x1]  ;;  %v9112_v36 = vld [vmem:[#allocation2 + $0x8] sm:$0xff] }
  0x20   : > { %344 = vst.msk [vmem:[#allocation2 + $0xb1] sm:$0xff] %vm330_vm1, %v9050_v17  ;;  %13351 = vst [vmem:[#allocation18_spill] sm:$0xff] %v9060_v19  ;;  %v372_v37 = vld [vmem:[#allocation2 + $0x62] sm:$0x1]  ;;  %v547_v44 = vrot.slane %v9112_v36, 1  ;;  %v9123_v45 = vld [vmem:[#allocation2 + $0x38] sm:$0xff] }
  0x21   : > { %345 = vst.msk [vmem:[#allocation2 + $0xc1] sm:$0xff] %vm330_vm1, %v9053_v18  ;;  %13352 = vst [vmem:[#allocation19_spill] sm:$0xff] %v9065_v20  ;;  %v390_v38 = vld [vmem:[#allocation2 + $0x6f] sm:$0x1]  ;;  %v9116_v39 = vld [vmem:[#allocation2 + $0x20] sm:$0xff]  ;;  %v557_v62 = vrot.slane %v9123_v45, 1 }
  0x22   : > { %13353 = vst [vmem:[#allocation20_spill] sm:$0xff] %v9068_v21  ;;  %346 = vst.msk [vmem:[#allocation2 + $0xc9] sm:$0xff] %vm330_vm1, %v9060_v19  ;;  %v373_v40 = vld [vmem:[#allocation2 + $0x7a] sm:$0x1]  ;;  %v552_v50 = vrot.slane %v9116_v39, 1 }
  0x23   : > { %347 = vst.msk [vmem:[#allocation2 + $0xd9] sm:$0xff] %vm330_vm1, %v9065_v20  ;;  %348 = vst.msk [vmem:[#allocation2 + $0xe1] sm:$0xff] %vm330_vm1, %v9068_v21  ;;  %v391_v41 = vld [vmem:[#allocation2 + $0x87] sm:$0x1] }
  0x24   : > { %13354 = vst [vmem:[#allocation21_spill] sm:$0xff] %v9077_v22  ;;  %13355 = vst [vmem:[#allocation22_spill] sm:$0xff] %v9080_v23  ;;  %v374_v42 = vld [vmem:[#allocation2 + $0x92] sm:$0x1]  ;;  %v392_v43 = vld [vmem:[#allocation2 + $0x9f] sm:$0x1] }
  0x25   : > { %13356 = vst [vmem:[#allocation23_spill] sm:$0xff] %v9083_v24  ;;  %349 = vst.msk [vmem:[#allocation2 + $0xf1] sm:$0xff] %vm330_vm1, %v9077_v22 }
  0x26   : > { %350 = vst.msk [vmem:[#allocation2 + $0xf9] sm:$0xff] %vm330_vm1, %v9080_v23  ;;  %13357 = vst [vmem:[#allocation24_spill] sm:$0xff] %v9090_v25  ;;  %v375_v46 = vld [vmem:[#allocation2 + $0xaa] sm:$0x1] }
  0x27   : > { %351 = vst.msk [vmem:[#allocation2 + $0x109] sm:$0xff] %vm330_vm1, %v9083_v24  ;;  %13358 = vst [vmem:[#allocation25_spill] sm:$0xff] %v9095_v26  ;;  %v393_v47 = vld [vmem:[#allocation2 + $0xb7] sm:$0x1] }
  0x28   : > { %13359 = vst [vmem:[#allocation26_spill] sm:$0xff] %v9098_v27  ;;  %352 = vst.msk [vmem:[#allocation2 + $0x111] sm:$0xff] %vm330_vm1, %v9090_v25  ;;  %v376_v51 = vld [vmem:[#allocation2 + $0xc2] sm:$0x1] }
  0x29   : > { %353 = vst.msk [vmem:[#allocation2 + $0x121] sm:$0xff] %vm330_vm1, %v9095_v26  ;;  %354 = vst.msk [vmem:[#allocation2 + $0x129] sm:$0xff] %vm330_vm1, %v9098_v27 }
  0x2a   : > { %405 = vst.msk [vmem:[#allocation2] sm:$0x1] %vm404_vm2, %v368_v28  ;;  %423 = vst.msk [vmem:[#allocation2 + $0x11] sm:$0x1] %vm404_vm2, %v386_v29  ;;  %v9165_v28 = vld [vmem:[#allocation2 + $0x50] sm:$0xff] }
  0x2b   : > { %406 = vst.msk [vmem:[#allocation2 + $0x18] sm:$0x1] %vm404_vm2, %v369_v30  ;;  %424 = vst.msk [vmem:[#allocation2 + $0x29] sm:$0x1] %vm404_vm2, %v387_v31  ;;  %v9170_v29 = vld [vmem:[%s13136_s1 + $0x10] sm:$0xf] }
  0x2c   : > { %407 = vst.msk [vmem:[#allocation2 + $0x30] sm:$0x1] %vm404_vm2, %v370_v32  ;;  %425 = vst.msk [vmem:[#allocation2 + $0x41] sm:$0x1] %vm404_vm2, %v388_v33 }
  0x2d   : > { %408 = vst.msk [vmem:[#allocation2 + $0x48] sm:$0x1] %vm404_vm2, %v371_v34  ;;  %426 = vst.msk [vmem:[#allocation2 + $0x59] sm:$0x1] %vm404_vm2, %v389_v35  ;;  %v562_v35 = vrot.slane %v9165_v28, 1 }
  0x2e   : > { %409 = vst.msk [vmem:[#allocation2 + $0x60] sm:$0x1] %vm404_vm2, %v372_v37  ;;  %427 = vst.msk [vmem:[#allocation2 + $0x71] sm:$0x1] %vm404_vm2, %v390_v38 }
  0x2f   : > { %410 = vst.msk [vmem:[#allocation2 + $0x78] sm:$0x1] %vm404_vm2, %v373_v40  ;;  %428 = vst.msk [vmem:[#allocation2 + $0x89] sm:$0x1] %vm404_vm2, %v391_v41  ;;  %v394_v41 = vld [vmem:[#allocation2 + $0xcf] sm:$0x1] }
  0x30   : > { %411 = vst.msk [vmem:[#allocation2 + $0x90] sm:$0x1] %vm404_vm2, %v374_v42  ;;  %429 = vst.msk [vmem:[#allocation2 + $0xa1] sm:$0x1] %vm404_vm2, %v392_v43  ;;  %v9204_v42 = vld [vmem:[%s8980_s14 + $0xc8] sm:$0xff] }
  0x31   : > { %v9127_v48 = vld [vmem:[#allocation2] sm:$0xff]  ;;  %v9129_v49 = vld [vmem:[#allocation2 + $0x10] sm:$0x3]  ;;  %412 = vst.msk [vmem:[#allocation2 + $0xa8] sm:$0x1] %vm404_vm2, %v375_v46  ;;  %13361 = vst [vmem:[#allocation28_spill] sm:$0xff] %v9204_v42 }
  0x32   : > { %430 = vst.msk [vmem:[#allocation2 + $0xb9] sm:$0x1] %vm404_vm2, %v393_v47  ;;  %v546_v52 = vrot.slane %v9127_v48, 1  ;;  %8032 = vmatprep.mubr.msk.f32.mxu1 %vm330_vm1, %v9127_v48  ;;  %v549_v53 = vrot.slane %v9129_v49, 1  ;;  %v9138_v54 = vld [vmem:[#allocation2 + $0x18] sm:$0xff] }
  0x33   : > { %v9140_v55 = vld [vmem:[#allocation2 + $0x28] sm:$0x3]  ;;  %413 = vst.msk [vmem:[#allocation2 + $0xc0] sm:$0x1] %vm404_vm2, %v376_v51  ;;  %8033 = vmatmul.mubr.msk.f32.vlgmr.msra.gmra.mxu1 %vm330_vm1, %v9112_v36  ;;  %v551_v56 = vrot.slane %v9138_v54, 1  ;;  %v9147_v58 = vld [vmem:[#allocation2 + $0x30] sm:$0xff] }
  0x34   : > { %v554_v57 = vrot.slane %v9140_v55, 1  ;;  %v548_v59 = vsel %vm545_vm3, %v546_v52, %v547_v44  ;;  %v550_v60 = vsel %vm545_vm3, %v547_v44, %v549_v53  ;;  %8035 = vmatprep.mubr.msk.f32.mxu1 %vm330_vm1, %v9138_v54  ;;  %v556_v61 = vrot.slane %v9147_v58, 1  ;;  %v9155_v63 = vld [vmem:[#allocation2 + $0x40] sm:$0x3]  ;;  %8131 = vmatpush3.msk.msra.mxu1 %vm690_vm0, %v8968_v3  ;;  %v9163_v1 = vld [vmem:[#allocation2 + $0x48] sm:$0xff]  ;;  %356 = vst.msk [vmem:[#allocation2 + $0x141] sm:$0xff] %vm330_vm1, %v9204_v42 }
  0x35   : > { %7982 = vmatprep.mubr.msk.f32.mxu0 %vm330_vm1, %v548_v59  ;;  %v9161_v0 = vsel %vm545_vm3, %v551_v56, %v552_v50  ;;  %v9173_v30 = vld [vmem:[#allocation2 + $0x58] sm:$0x3]  ;;  %v9175_v3 = vld [vmem:[#allocation2 + $0x68] sm:$0xff]  ;;  %v559_v32 = vrot.slane %v9155_v63, 1  ;;  %v561_v34 = vrot.slane %v9163_v1, 1  ;;  %v9192_v37 = vld [vmem:[#allocation2 + $0x60] sm:$0xff] }
  0x36   : > { %7983 = vmatmul.mubr.msk.f32.vlgmr.msra.gmra.mxu0 %vm330_vm1, %v550_v60  ;;  %v9182_v31 = vsel %vm545_vm3, %v552_v50, %v554_v57  ;;  %v9188_v33 = vsel %vm545_vm3, %v556_v61, %v557_v62  ;;  %v564_v38 = vrot.slane %v9173_v30, 1  ;;  %v13144_v40 = vrot.slane %v9175_v3, 1  ;;  %v9210_v43 = vld [vmem:[#allocation2 + $0x70] sm:$0x3]  ;;  %431 = vst.msk [vmem:[#allocation2 + $0xd1] sm:$0x1] %vm404_vm2, %v394_v41 }
  0x37   : > { %8081 = vmatpush3.msk.msra.mxu0 %vm690_vm0, %v8959_v2  ;;  %7985 = vmatprep.mubr.msk.f32.mxu0 %vm330_vm1, %v9161_v0  ;;  %v9195_v2 = vld [vmem:[%s8980_s14 + $0xc0] sm:$0xff]  ;;  %v377_v44 = vld [vmem:[#allocation2 + $0xda] sm:$0x1]  ;;  %v9218_v47 = vsel %vm545_vm3, %v557_v62, %v559_v32  ;;  %v566_v50 = vrot.slane %v9192_v37, 1  ;;  %v378_v53 = vld [vmem:[#allocation2 + $0xf2] sm:$0x1]  ;;  %v9230_v57 = vsel %vm545_vm3, %v561_v34, %v562_v35 }
  0x38   : > { %8036 = vmatmul.mubr.msk.f32.gmra.mxu1 %vm330_vm1, %v9116_v39  ;;  %13360 = vst [vmem:[#allocation27_spill] sm:$0xff] %v9195_v2  ;;  %8180 = vmatprep.subr.msk.mxu0 %vm690_vm0, %v9170_v29  ;;  %355 = vst.msk [vmem:[#allocation2 + $0x139] sm:$0xff] %vm330_vm1, %v9195_v2  ;;  %v395_v46 = vld [vmem:[#allocation2 + $0xe7] sm:$0x1]  ;;  %v9221_v51 = vld [vmem:[#allocation2 + $0x78] sm:$0xff] }
  0x39   : > { %8038 = vmatprep.mubr.msk.f32.mxu1 %vm330_vm1, %v9147_v58  ;;  %13362 = vst [vmem:[#allocation29_spill] sm:$0xff] %v9218_v47  ;;  %v9223_v52 = vld [vmem:[#allocation2 + $0x80] sm:$0xff]  ;;  %414 = vst.msk [vmem:[#allocation2 + $0xd8] sm:$0x1] %vm404_vm2, %v377_v44  ;;  %v396_v56 = vld [vmem:[#allocation2 + $0xff] sm:$0x1] }
  0x3a   : > { %7986 = vmatmul.mubr.msk.f32.gmra.mxu0 %vm330_vm1, %v9182_v31  ;;  %432 = vst.msk [vmem:[#allocation2 + $0xe9] sm:$0x1] %vm404_vm2, %v395_v46  ;;  %13363 = vst [vmem:[#allocation30_spill] sm:$0xff] %v9230_v57  ;;  %v379_v59 = vld [vmem:[#allocation2 + $0x10a] sm:$0x1]  ;;  %v9240_v32 = vld [vmem:[%s8980_s14 + $0xd0] sm:$0xff]  ;;  %v9261_v46 = vsel %vm545_vm3, %v562_v35, %v564_v38  ;;  %v9285_v38 = vsel %vm545_vm3, %v566_v50, %v13144_v40 }
  0x3b   : > { %7988 = vmatprep.mubr.msk.f32.mxu0 %vm330_vm1, %v9188_v33  ;;  %415 = vst.msk [vmem:[#allocation2 + $0xf0] sm:$0x1] %vm404_vm2, %v378_v53  ;;  %433 = vst.msk [vmem:[#allocation2 + $0x101] sm:$0x1] %vm404_vm2, %v396_v56  ;;  %v397_v60 = vld [vmem:[#allocation2 + $0x117] sm:$0x1] }
  0x3c   : > { %8039 = vmatmul.mubr.msk.f32.gmra.mxu1 %vm330_vm1, %v9123_v45  ;;  %v380_v61 = vld [vmem:[#allocation2 + $0x122] sm:$0x1]  ;;  %416 = vst.msk [vmem:[#allocation2 + $0x108] sm:$0x1] %vm404_vm2, %v379_v59  ;;  %434 = vst.msk [vmem:[#allocation2 + $0x119] sm:$0x1] %vm404_vm2, %v397_v60 }
  0x3d   : > { %8041 = vmatprep.mubr.msk.f32.mxu1 %vm330_vm1, %v9163_v1  ;;  %417 = vst.msk [vmem:[#allocation2 + $0x120] sm:$0x1] %vm404_vm2, %v380_v61  ;;  %v398_v62 = vld [vmem:[#allocation2 + $0x12f] sm:$0x1]  ;;  %13364 = vst [vmem:[#allocation31_spill] sm:$0xff] %v9240_v32  ;;  %v9243_v34 = vld [vmem:[%s8980_s14 + $0xd8] sm:$0xff] }
  0x3e   : > { %13365 = vst [vmem:[#allocation32_spill] sm:$0xff] %v9243_v34  ;;  %7989 = vmatmul.mubr.msk.f32.gmra.mxu0 %vm330_vm1, %v9218_v47  ;;  %435 = vst.msk [vmem:[#allocation2 + $0x131] sm:$0x1] %vm404_vm2, %v398_v62  ;;  %v9253_v41 = vld [vmem:[%s8980_s14 + $0xe0] sm:$0xff]  ;;  %v9256_v44 = vld [vmem:[%s8980_s14 + $0xe8] sm:$0xff]  ;;  %v569_v53 = vrot.slane %v9210_v43, 1 }
  0x3f   : > { %357 = vst.msk [vmem:[#allocation2 + $0x151] sm:$0xff] %vm330_vm1, %v9240_v32  ;;  %358 = vst.msk [vmem:[#allocation2 + $0x159] sm:$0xff] %vm330_vm1, %v9243_v34  ;;  %7991 = vmatprep.mubr.msk.f32.mxu0 %vm330_vm1, %v9230_v57  ;;  %v9264_v56 = vld [vmem:[#allocation2 + $0x88] sm:$0x3]  ;;  %v9275_v59 = vld [vmem:[%s8980_s14 + $0xf0] sm:$0xff]  ;;  %v571_v60 = vrot.slane %v9221_v51, 1 }
  0x40   : > { %13366 = vst [vmem:[#allocation33_spill] sm:$0xff] %v9253_v41  ;;  %13367 = vst [vmem:[#allocation34_spill] sm:$0xff] %v9256_v44  ;;  %v9278_v35 = vld [vmem:[%s8980_s14 + $0xf8] sm:$0xff]  ;;  %8042 = vmatmul.mubr.msk.f32.gmra.mxu1 %vm330_vm1, %v9165_v28  ;;  %v572_v61 = vrot.slane %v9223_v52, 1  ;;  %v9300_v50 = vld [vmem:[#allocation2 + $0x90] sm:$0xff]  ;;  %v574_v34 = vrot.slane %v9264_v56, 1 }
  0x41   : > { %13368 = vst [vmem:[#allocation35_spill] sm:$0xff] %v9261_v46  ;;  %359 = vst.msk [vmem:[#allocation2 + $0x169] sm:$0xff] %vm330_vm1, %v9253_v41  ;;  %v381_v62 = vld [vmem:[#allocation2 + $0x13a] sm:$0x1]  ;;  %8044 = vmatprep.mubr.msk.f32.mxu1 %vm330_vm1, %v9192_v37  ;;  %v576_v32 = vrot.slane %v9300_v50, 1  ;;  %v9329_v2 = vld [vmem:[#allocation2 + $0xa8] sm:$0xff] }
  0x42   : > { %360 = vst.msk [vmem:[#allocation2 + $0x171] sm:$0xff] %vm330_vm1, %v9256_v44  ;;  %366 = vst.msk [vmem:[#allocation2 + $0x199] sm:$0xff] %vm330_vm1, %v9253_v41  ;;  %v9302_v40 = vld [vmem:[#allocation2 + $0x98] sm:$0xff]  ;;  %v399_v41 = vld [vmem:[#allocation2 + $0x147] sm:$0x1]  ;;  %7992 = vmatmul.mubr.msk.f32.gmra.mxu0 %vm330_vm1, %v9261_v46  ;;  %v9339_v27 = vsel %vm545_vm3, %v572_v61, %v574_v34 }
  0x43   : > { %367 = vst.msk [vmem:[#allocation2 + $0x1a1] sm:$0xff] %vm330_vm1, %v9256_v44  ;;  %13369 = vst [vmem:[#allocation36_spill] sm:$0xff] %v9275_v59  ;;  %v9294_v44 = vld [vmem:[%s13136_s1 + $0x14] sm:$0xf]  ;;  %7994 = vmatprep.mubr.msk.f32.mxu0 %vm330_vm1, %v9285_v38  ;;  %v9325_v42 = vld [vmem:[#allocation2 + $0xa0] sm:$0x3] }
  0x44   : > { %13370 = vst [vmem:[#allocation37_spill] sm:$0xff] %v9278_v35  ;;  %13371 = vst [vmem:[#allocation38_spill] sm:$0xff] %v9285_v38  ;;  %8230 = vmatprep.subr.msk.mxu1 %vm690_vm0, %v9294_v44  ;;  %8045 = vmatmul.mubr.msk.f32.gmra.mxu1 %vm330_vm1, %v9175_v3  ;;  %v579_v26 = vrot.slane %v9325_v42, 1  ;;  %v9350_v21 = vld [vmem:[#allocation2 + $0xb8] sm:$0x3]  ;;  %v9403_v13 = vld [vmem:[#allocation2 + $0xf0] sm:$0xff] }
  0x45   : > { %361 = vst.msk [vmem:[#allocation2 + $0x181] sm:$0xff] %vm330_vm1, %v9275_v59  ;;  %362 = vst.msk [vmem:[#allocation2 + $0x189] sm:$0xff] %vm330_vm1, %v9278_v35  ;;  %v13373_v35 = vrot.slane %v9175_v3, 1  ;;  %8047 = vmatprep.mubr.msk.f32.mxu1 %vm330_vm1, %v9221_v51  ;;  %v9376_v19 = vld [vmem:[#allocation2 + $0xd0] sm:$0x3]  ;;  %v9380_v18 = vld [vmem:[#allocation2 + $0xd8] sm:$0xff] }
  0x46   : > { %13372 = vst [vmem:[#allocation39_spill] sm:$0xff] %v9300_v50  ;;  %418 = vst.msk [vmem:[#allocation2 + $0x138] sm:$0x1] %vm404_vm2, %v381_v62  ;;  %v9321_v62 = vsel %vm545_vm3, %v571_v60, %v572_v61  ;;  %v400_v60 = vld [vmem:[#allocation2 + $0x15f] sm:$0x1]  ;;  %v9356_v61 = vld [vmem:[#allocation2 + $0xc0] sm:$0xff] }
  0x47   : > { %436 = vst.msk [vmem:[#allocation2 + $0x149] sm:$0x1] %vm404_vm2, %v399_v41  ;;  %v9315_v59 = vsel %vm545_vm3, %v13373_v35, %v569_v53  ;;  %13375 = vst [vmem:[#allocation41_spill] sm:$0xff] %v9321_v62  ;;  %v577_v41 = vrot.slane %v9302_v40, 1  ;;  %v9331_v53 = vld [vmem:[#allocation2 + $0xb0] sm:$0xff]  ;;  %v586_v20 = vrot.slane %v9356_v61, 1 }
  0x48   : > { %13374 = vst [vmem:[#allocation40_spill] sm:$0xff] %v9315_v59  ;;  %13376 = vst [vmem:[#allocation42_spill] sm:$0xff] %v9329_v2  ;;  %v382_v35 = vld [vmem:[#allocation2 + $0x152] sm:$0x1]  ;;  %7995 = vmatmul.mubr.msk.f32.gmra.mxu0 %vm330_vm1, %v9315_v59  ;;  %v383_v25 = vld [vmem:[#allocation2 + $0x16a] sm:$0x1]  ;;  %8048 = vmatmul.mubr.msk.f32.gmra.mxu1 %vm330_vm1, %v9223_v52 }
  0x49   : > { %419 = vst.msk [vmem:[#allocation2 + $0x150] sm:$0x1] %vm404_vm2, %v382_v35  ;;  %7997 = vmatprep.mubr.msk.f32.mxu0 %vm330_vm1, %v9321_v62  ;;  %13377 = vst [vmem:[#allocation43_spill] sm:$0xff] %v9339_v27  ;;  %v401_v24 = vld [vmem:[#allocation2 + $0x177] sm:$0x1]  ;;  %v9346_v23 = vsel %vm545_vm3, %v576_v32, %v577_v41  ;;  %v581_v35 = vrot.slane %v9329_v2, 1  ;;  %8050 = vmatprep.mubr.msk.f32.mxu1 %vm330_vm1, %v9300_v50 }
  0x4a   : > { %437 = vst.msk [vmem:[#allocation2 + $0x161] sm:$0x1] %vm404_vm2, %v400_v60  ;;  %13378 = vst [vmem:[#allocation44_spill] sm:$0xff] %v9346_v23  ;;  %v582_v22 = vrot.slane %v9331_v53, 1  ;;  %v9358_v60 = vld [vmem:[#allocation2 + $0xc8] sm:$0xff]  ;;  %v591_v16 = vrot.slane %v9380_v18, 1 }
  0x4b   : > { %420 = vst.msk [vmem:[#allocation2 + $0x168] sm:$0x1] %vm404_vm2, %v383_v25  ;;  %438 = vst.msk [vmem:[#allocation2 + $0x179] sm:$0x1] %vm404_vm2, %v401_v24  ;;  %v9366_v25 = vsel %vm545_vm3, %v577_v41, %v579_v26  ;;  %v584_v24 = vrot.slane %v9350_v21, 1  ;;  %v9382_v26 = vld [vmem:[#allocation2 + $0xe0] sm:$0xff] }
  0x4c   : > { %v384_v34 = vld [vmem:[#allocation2 + $0x182] sm:$0x1]  ;;  %13379 = vst [vmem:[#allocation45_spill] sm:$0xff] %v9356_v61  ;;  %7998 = vmatmul.mubr.msk.f32.gmra.mxu0 %vm330_vm1, %v9339_v27  ;;  %13380 = vst [vmem:[#allocation46_spill] sm:$0xff] %v9366_v25  ;;  %8051 = vmatmul.mubr.msk.f32.gmra.mxu1 %vm330_vm1, %v9302_v40  ;;  %v9372_v32 = vsel %vm545_vm3, %v581_v35, %v582_v22  ;;  %v589_v35 = vrot.slane %v9376_v19, 1  ;;  %v592_v15 = vrot.slane %v9382_v26, 1 }
  0x4d   : > { %421 = vst.msk [vmem:[#allocation2 + $0x180] sm:$0x1] %vm404_vm2, %v384_v34  ;;  %8000 = vmatprep.mubr.msk.f32.mxu0 %vm330_vm1, %v9346_v23  ;;  %13381 = vst [vmem:[#allocation47_spill] sm:$0xff] %v9372_v32  ;;  %v587_v34 = vrot.slane %v9358_v60, 1  ;;  %8053 = vmatprep.mubr.msk.f32.mxu1 %vm330_vm1, %v9329_v2  ;;  %v9389_v41 = vsel %vm545_vm3, %v582_v22, %v584_v24  ;;  %v9399_v14 = vld [vmem:[#allocation2 + $0xe8] sm:$0x3] }
  0x4e   : > { %13382 = vst [vmem:[#allocation48_spill] sm:$0xff] %v9380_v18  ;;  %13383 = vst [vmem:[#allocation49_spill] sm:$0xff] %v9389_v41  ;;  %v9405_v22 = vld [vmem:[#allocation2 + $0xf8] sm:$0xff]  ;;  %v594_v24 = vrot.slane %v9399_v14, 1  ;;  %v9418_v12 = vsel %vm545_vm3, %v591_v16, %v592_v15  ;;  %v596_v11 = vrot.slane %v9403_v13, 1  ;;  %v9426_v8 = vld [vmem:[#allocation2 + $0x108] sm:$0xff] }
  0x4f   : > { %v9395_v17 = vsel %vm545_vm3, %v586_v20, %v587_v34  ;;  %13385 = vst [vmem:[#allocation51_spill] sm:$0xff] %v9403_v13  ;;  %v9412_v20 = vsel %vm545_vm3, %v587_v34, %v589_v35  ;;  %13387 = vst [vmem:[#allocation53_spill] sm:$0xff] %v9418_v12  ;;  %v597_v10 = vrot.slane %v9405_v22, 1  ;;  %v9422_v9 = vld [vmem:[#allocation2 + $0x100] sm:$0x3]  ;;  %v9428_v34 = vld [vmem:[#allocation2 + $0x110] sm:$0xff] }
  0x50   : > { %8001 = vmatmul.mubr.msk.f32.gmra.mxu0 %vm330_vm1, %v9366_v25  ;;  %8054 = vmatmul.mubr.msk.f32.gmra.mxu1 %vm330_vm1, %v9331_v53  ;;  %13384 = vst [vmem:[#allocation50_spill] sm:$0xff] %v9395_v17  ;;  %13386 = vst [vmem:[#allocation52_spill] sm:$0xff] %v9412_v20  ;;  %v9435_v16 = vsel %vm545_vm3, %v592_v15, %v594_v24  ;;  %v599_v35 = vrot.slane %v9422_v9, 1  ;;  %v601_v4 = vrot.slane %v9426_v8, 1  ;;  %v602_v7 = vrot.slane %v9428_v34, 1  ;;  %v9451_v15 = vld [vmem:[#allocation2 + $0x128] sm:$0xff] }
  0x51   : > { %8003 = vmatprep.mubr.msk.f32.mxu0 %vm330_vm1, %v9372_v32  ;;  %8056 = vmatprep.mubr.msk.f32.mxu1 %vm330_vm1, %v9356_v61  ;;  %13388 = vst [vmem:[#allocation54_spill] sm:$0xff] %v9426_v8  ;;  %13389 = vst [vmem:[#allocation55_spill] sm:$0xff] %v9435_v16  ;;  %v9441_v5 = vsel %vm545_vm3, %v596_v11, %v597_v10  ;;  %v9445_v6 = vld [vmem:[#allocation2 + $0x118] sm:$0x3]  ;;  %v9468_v32 = vld [vmem:[#allocation2 + $0x130] sm:$0x3] }
  0x52   : > { %13390 = vst [vmem:[#allocation56_spill] sm:$0xff] %v9441_v5  ;;  %13392 = vst [vmem:[#allocation58_spill] sm:$0xff] %v9451_v15  ;;  %v9458_v11 = vsel %vm545_vm3, %v597_v10, %v599_v35  ;;  %v604_v24 = vrot.slane %v9445_v6, 1  ;;  %v9474_v10 = vld [vmem:[#allocation2 + $0x140] sm:$0xff]  ;;  %v609_v35 = vrot.slane %v9468_v32, 1 }
  0x53   : > { %13393 = vst [vmem:[#allocation59_spill] sm:$0xff] %v9458_v11  ;;  %13396 = vst [vmem:[#allocation62_spill] sm:$0xff] %v9474_v10  ;;  %v612_v23 = vrot.slane %v9474_v10, 1  ;;  %v9491_v27 = vld [vmem:[#allocation2 + $0x148] sm:$0x3] }
  0x54   : > { %8004 = vmatmul.mubr.msk.f32.gmra.mxu0 %vm330_vm1, %v9389_v41  ;;  %8057 = vmatmul.mubr.msk.f32.gmra.mxu1 %vm330_vm1, %v9358_v60  ;;  %v607_v41 = vrot.slane %v9451_v15, 1  ;;  %v9514_v38 = vld [vmem:[#allocation2 + $0x160] sm:$0x3]  ;;  %v9538_v47 = vld [vmem:[#allocation2 + $0x178] sm:$0x3] }
  0x55   : > { %8006 = vmatprep.mubr.msk.f32.mxu0 %vm330_vm1, %v9395_v17  ;;  %8059 = vmatprep.mubr.msk.f32.mxu1 %vm330_vm1, %v9380_v18 }
  0x58   : > { %8007 = vmatmul.mubr.msk.f32.gmra.mxu0 %vm330_vm1, %v9412_v20  ;;  %8060 = vmatmul.mubr.msk.f32.gmra.mxu1 %vm330_vm1, %v9382_v26  ;;  %v9464_v20 = vsel %vm545_vm3, %v601_v4, %v602_v7  ;;  %v9481_v4 = vsel %vm545_vm3, %v602_v7, %v604_v24  ;;  %v9497_v7 = vld [vmem:[#allocation2 + $0x158] sm:$0xff]  ;;  %v614_v24 = vrot.slane %v9491_v27, 1 }
  0x59   : > { %8009 = vmatprep.mubr.msk.f32.mxu0 %vm330_vm1, %v9418_v12  ;;  %8062 = vmatprep.mubr.msk.f32.mxu1 %vm330_vm1, %v9403_v13  ;;  %v9449_v12 = vld [vmem:[#allocation2 + $0x120] sm:$0xff]  ;;  %13394 = vst [vmem:[#allocation60_spill] sm:$0xff] %v9464_v20  ;;  %13397 = vst [vmem:[#allocation63_spill] sm:$0xff] %v9481_v4  ;;  %v617_v59 = vrot.slane %v9497_v7, 1 }
  0x5a   : > { %13391 = vst [vmem:[#allocation57_spill] sm:$0xff] %v9449_v12  ;;  %v606_v17 = vrot.slane %v9449_v12, 1 }
  0x5c   : > { %8010 = vmatmul.mubr.msk.f32.gmra.mxu0 %vm330_vm1, %v9435_v16  ;;  %8063 = vmatmul.mubr.msk.f32.gmra.mxu1 %vm330_vm1, %v9405_v22  ;;  %v9487_v16 = vsel %vm545_vm3, %v606_v17, %v607_v41  ;;  %v9504_v17 = vsel %vm545_vm3, %v607_v41, %v609_v35  ;;  %v9520_v41 = vld [vmem:[#allocation2 + $0x170] sm:$0xff]  ;;  %v402_v35 = vld [vmem:[#allocation2 + $0x18f] sm:$0x1] }
  0x5d   : > { %8012 = vmatprep.mubr.msk.f32.mxu0 %vm330_vm1, %v9441_v5  ;;  %8065 = vmatprep.mubr.msk.f32.mxu1 %vm330_vm1, %v9426_v8  ;;  %v9472_v5 = vld [vmem:[#allocation2 + $0x138] sm:$0xff]  ;;  %13398 = vst [vmem:[#allocation64_spill] sm:$0xff] %v9487_v16  ;;  %13400 = vst [vmem:[#allocation66_spill] sm:$0xff] %v9504_v17 }
  0x5e   : > { %13395 = vst [vmem:[#allocation61_spill] sm:$0xff] %v9472_v5  ;;  %v611_v25 = vrot.slane %v9472_v5, 1  ;;  %439 = vst.msk [vmem:[#allocation2 + $0x191] sm:$0x1] %vm404_vm2, %v402_v35  ;;  %v1212_v35 = vrot.slane %v9127_v48, 2  ;;  %v1217_v48 = vrot.slane %v9138_v54, 2 }
  0x60   : > { %8013 = vmatmul.mubr.msk.f32.gmra.mxu0 %vm330_vm1, %v9458_v11  ;;  %8066 = vmatmul.mubr.msk.f32.gmra.mxu1 %vm330_vm1, %v9428_v34  ;;  %v9510_v11 = vsel %vm545_vm3, %v611_v25, %v612_v23  ;;  %v9527_v25 = vsel %vm545_vm3, %v612_v23, %v614_v24 }
  0x61   : > { %8015 = vmatprep.mubr.msk.f32.mxu0 %vm330_vm1, %v9464_v20  ;;  %8068 = vmatprep.mubr.msk.f32.mxu1 %vm330_vm1, %v9449_v12  ;;  %v9495_v20 = vld [vmem:[#allocation2 + $0x150] sm:$0xff]  ;;  %13401 = vst [vmem:[#allocation67_spill] sm:$0xff] %v9510_v11 }
  0x62   : > { %13399 = vst [vmem:[#allocation65_spill] sm:$0xff] %v9495_v20  ;;  %v616_v62 = vrot.slane %v9495_v20, 1 }
  0x64   : > { %8016 = vmatmul.mubr.msk.f32.gmra.mxu0 %vm330_vm1, %v9481_v4  ;;  %8069 = vmatmul.mubr.msk.f32.gmra.mxu1 %vm330_vm1, %v9451_v15  ;;  %v619_v4 = vrot.slane %v9514_v38, 1  ;;  %v9534_v46 = vsel %vm545_vm3, %v616_v62, %v617_v59  ;;  %v624_v62 = vrot.slane %v9538_v47, 1 }
  0x65   : > { %8018 = vmatprep.mubr.msk.f32.mxu0 %vm330_vm1, %v9487_v16  ;;  %8071 = vmatprep.mubr.msk.f32.mxu1 %vm330_vm1, %v9472_v5  ;;  %v9518_v16 = vld [vmem:[#allocation2 + $0x168] sm:$0xff] }
  0x66   : > { %v621_v57 = vrot.slane %v9518_v16, 1  ;;  %v9547_v23 = vsel %vm545_vm3, %v617_v59, %v619_v4  ;;  %v1218_v4 = vrot.slane %v9116_v39, 2 }
  0x68   : > { %8019 = vmatmul.mubr.msk.f32.gmra.mxu0 %vm330_vm1, %v9504_v17  ;;  %8072 = vmatmul.mubr.msk.f32.gmra.mxu1 %vm330_vm1, %v9474_v10  ;;  %v622_v17 = vrot.slane %v9520_v41, 1 }
  0x69   : > { %8021 = vmatprep.mubr.msk.f32.mxu0 %vm330_vm1, %v9510_v11  ;;  %8074 = vmatprep.mubr.msk.f32.mxu1 %vm330_vm1, %v9495_v20  ;;  %v1213_v11 = vrot.slane %v9112_v36, 2 }
  0x6a   : > { %v9553_v24 = vsel %vm545_vm3, %v621_v57, %v622_v17  ;;  %v9564_v59 = vsel %vm545_vm3, %v622_v17, %v624_v62  ;;  %v1215_v57 = vrot.slane %v9129_v49, 2  ;;  %v1220_v49 = vrot.slane %v9140_v55, 2  ;;  %v9582_v62 = vld [vmem:[%s13136_s1 + $0x1c] sm:$0xf]  ;;  %v9598_v55 = vld [vmem:[%s13136_s1 + $0x18] sm:$0xf] }
  0x6b   : > { %13402 = vst [vmem:[#allocation68_spill] sm:$0xff] %v9564_v59  ;;  %v1214_v36 = vsel %vm1211_vm4, %v1212_v35, %v1213_v11  ;;  %v9587_v35 = vsel %vm1211_vm4, %v1217_v48, %v1218_v4 }
  0x6c   : > { %8022 = vmatmul.mubr.msk.f32.gmra.mxu0 %vm330_vm1, %v9527_v25  ;;  %8075 = vmatmul.mubr.msk.f32.gmra.mxu1 %vm330_vm1, %v9497_v7  ;;  %v1216_v17 = vsel %vm1211_vm4, %v1213_v11, %v1215_v57  ;;  %v1227_v57 = vrot.slane %v9163_v1, 2 }
  0x6d   : > { %8024 = vmatprep.mubr.msk.f32.mxu0 %vm330_vm1, %v9534_v46  ;;  %8077 = vmatprep.mubr.msk.f32.mxu1 %vm330_vm1, %v9518_v16 }
  0x70   : > { %8025 = vmatmul.mubr.msk.f32.gmra.mxu0 %vm330_vm1, %v9547_v23  ;;  %8078 = vmatmul.mubr.msk.f32.gmra.mxu1 %vm330_vm1, %v9520_v41 }
  0x71   : > { %8027 = vmatprep.mubr.msk.f32.mxu0 %vm330_vm1, %v9553_v24  ;;  %8132 = vmatprep.mubr.msk.f32.mxu1 %vm330_vm1, %v9138_v54  ;;  %v1222_v54 = vrot.slane %v9147_v58, 2 }
  0x74   : > { %8028 = vmatmul.mubr.msk.f32.gmra.mxu0 %vm330_vm1, %v9564_v59  ;;  %8133 = vmatmul.mubr.msk.f32.vlgmr.msra.gmra.mxu1 %vm330_vm1, %v9116_v39  ;;  %v1223_v59 = vrot.slane %v9123_v45, 2  ;;  %v9608_v39 = vsel %vm1211_vm4, %v1218_v4, %v1220_v49  ;;  %v1232_v4 = vrot.slane %v9192_v37, 2 }
  0x75   : > { %8082 = vmatprep.mubr.msk.f32.mxu0 %vm330_vm1, %v1214_v36  ;;  %8135 = vmatprep.mubr.msk.f32.mxu1 %vm330_vm1, %v9147_v58  ;;  %v1228_v36 = vrot.slane %v9165_v28, 2 }
  0x76   : > { %8231 = vmatpush3.msk.msra.mxu1 %vm690_vm0, %v9294_v44  ;;  %v1225_v44 = vrot.slane %v9155_v63, 2  ;;  %v9614_v11 = vsel %vm1211_vm4, %v1222_v54, %v1223_v59  ;;  %v1237_v54 = vrot.slane %v9221_v51, 2 }
  0x77   : > { %8330 = vmatprep.subr.msk.mxu1 %vm690_vm0, %v9582_v62  ;;  %v9633_v48 = vsel %vm1211_vm4, %v1227_v57, %v1228_v36  ;;  %v1240_v57 = vrot.slane %v9264_v56, 2 }
  0x78   : > { %8083 = vmatmul.mubr.msk.f32.vlgmr.msra.gmra.mxu0 %vm330_vm1, %v1216_v17  ;;  %8136 = vmatmul.mubr.msk.f32.gmra.mxu1 %vm330_vm1, %v9123_v45  ;;  %v9627_v63 = vsel %vm1211_vm4, %v1223_v59, %v1225_v44  ;;  %v1233_v17 = vrot.slane %v9175_v3, 2  ;;  %v1235_v59 = vrot.slane %v9210_v43, 2  ;;  %v1238_v44 = vrot.slane %v9223_v52, 2 }
  0x79   : > { %8181 = vmatpush3.msk.msra.mxu0 %vm690_vm0, %v9170_v29  ;;  %8085 = vmatprep.mubr.msk.f32.mxu0 %vm330_vm1, %v9587_v35  ;;  %v1230_v29 = vrot.slane %v9173_v30, 2 }
  0x7a   : > { %8280 = vmatprep.subr.msk.mxu0 %vm690_vm0, %v9598_v55  ;;  %8138 = vmatprep.mubr.msk.f32.mxu1 %vm330_vm1, %v9163_v1  ;;  %v9650_v49 = vsel %vm1211_vm4, %v1232_v4, %v1233_v17  ;;  %v9661_v43 = vsel %vm1211_vm4, %v1233_v17, %v1235_v59  ;;  %v1243_v4 = vrot.slane %v9302_v40, 2  ;;  %v9678_v56 = vsel %vm1211_vm4, %v1238_v44, %v1240_v57 }
  0x7b   : > { %v9644_v30 = vsel %vm1211_vm4, %v1228_v36, %v1230_v29  ;;  %13403 = vst [vmem:[#allocation69_spill] sm:$0xff] %v9661_v43  ;;  %v9667_v36 = vsel %vm1211_vm4, %v1237_v54, %v1238_v44  ;;  %v1242_v29 = vrot.slane %v9300_v50, 2  ;;  %13405 = vst [vmem:[#allocation71_spill] sm:$0xff] %v9678_v56  ;;  %v1245_v17 = vrot.slane %v9325_v42, 2 }
  0x7c   : > { %8086 = vmatmul.mubr.msk.f32.gmra.mxu0 %vm330_vm1, %v9608_v39  ;;  %8139 = vmatmul.mubr.msk.f32.gmra.mxu1 %vm330_vm1, %v9165_v28  ;;  %13404 = vst [vmem:[#allocation70_spill] sm:$0xff] %v9667_v36  ;;  %v1247_v54 = vrot.slane %v9329_v2, 2  ;;  %v1250_v44 = vrot.slane %v9350_v21, 2 }
  0x7d   : > { %8088 = vmatprep.mubr.msk.f32.mxu0 %vm330_vm1, %v9614_v11  ;;  %8141 = vmatprep.mubr.msk.f32.mxu1 %vm330_vm1, %v9192_v37  ;;  %v9684_v59 = vsel %vm1211_vm4, %v1242_v29, %v1243_v4  ;;  %v9695_v42 = vsel %vm1211_vm4, %v1243_v4, %v1245_v17  ;;  %v1252_v29 = vrot.slane %v9356_v61, 2  ;;  %v1255_v4 = vrot.slane %v9376_v19, 2 }
  0x7e   : > { %13406 = vst [vmem:[#allocation72_spill] sm:$0xff] %v9684_v59  ;;  %13407 = vst [vmem:[#allocation73_spill] sm:$0xff] %v9695_v42 }
  0x80   : > { %8089 = vmatmul.mubr.msk.f32.gmra.mxu0 %vm330_vm1, %v9627_v63  ;;  %8142 = vmatmul.mubr.msk.f32.gmra.mxu1 %vm330_vm1, %v9175_v3 }
  0x81   : > { %8091 = vmatprep.mubr.msk.f32.mxu0 %vm330_vm1, %v9633_v48  ;;  %8144 = vmatprep.mubr.msk.f32.mxu1 %vm330_vm1, %v9221_v51 }
  0x84   : > { %8092 = vmatmul.mubr.msk.f32.gmra.mxu0 %vm330_vm1, %v9644_v30  ;;  %8145 = vmatmul.mubr.msk.f32.gmra.mxu1 %vm330_vm1, %v9223_v52 }
  0x85   : > { %8094 = vmatprep.mubr.msk.f32.mxu0 %vm330_vm1, %v9650_v49  ;;  %8147 = vmatprep.mubr.msk.f32.mxu1 %vm330_vm1, %v9300_v50  ;;  %v1248_v50 = vrot.slane %v9331_v53, 2 }
  0x87   : > { %v9701_v57 = vsel %vm1211_vm4, %v1247_v54, %v1248_v50  ;;  %v9712_v21 = vsel %vm1211_vm4, %v1248_v50, %v1250_v44  ;;  %v1257_v54 = vrot.slane %v9380_v18, 2  ;;  %v1260_v50 = vrot.slane %v9399_v14, 2 }
  0x88   : > { %8095 = vmatmul.mubr.msk.f32.gmra.mxu0 %vm330_vm1, %v9661_v43  ;;  %8148 = vmatmul.mubr.msk.f32.gmra.mxu1 %vm330_vm1, %v9302_v40  ;;  %13408 = vst [vmem:[#allocation74_spill] sm:$0xff] %v9701_v57  ;;  %13409 = vst [vmem:[#allocation75_spill] sm:$0xff] %v9712_v21 }
  0x89   : > { %8097 = vmatprep.mubr.msk.f32.mxu0 %vm330_vm1, %v9667_v36  ;;  %8150 = vmatprep.mubr.msk.f32.mxu1 %vm330_vm1, %v9329_v2  ;;  %v1253_v2 = vrot.slane %v9358_v60, 2 }
  0x8b   : > { %v9718_v17 = vsel %vm1211_vm4, %v1252_v29, %v1253_v2  ;;  %v9729_v19 = vsel %vm1211_vm4, %v1253_v2, %v1255_v4  ;;  %v1262_v29 = vrot.slane %v9403_v13, 2  ;;  %v1265_v2 = vrot.slane %v9422_v9, 2 }
  0x8c   : > { %8098 = vmatmul.mubr.msk.f32.gmra.mxu0 %vm330_vm1, %v9678_v56  ;;  %8151 = vmatmul.mubr.msk.f32.gmra.mxu1 %vm330_vm1, %v9331_v53  ;;  %13410 = vst [vmem:[#allocation76_spill] sm:$0xff] %v9718_v17  ;;  %13411 = vst [vmem:[#allocation77_spill] sm:$0xff] %v9729_v19 }
  0x8d   : > { %8100 = vmatprep.mubr.msk.f32.mxu0 %vm330_vm1, %v9684_v59  ;;  %8153 = vmatprep.mubr.msk.f32.mxu1 %vm330_vm1, %v9356_v61  ;;  %v1258_v61 = vrot.slane %v9382_v26, 2 }
  0x8f   : > { %v9735_v44 = vsel %vm1211_vm4, %v1257_v54, %v1258_v61  ;;  %v9746_v14 = vsel %vm1211_vm4, %v1258_v61, %v1260_v50  ;;  %v1267_v54 = vrot.slane %v9426_v8, 2  ;;  %v1270_v61 = vrot.slane %v9445_v6, 2 }
  0x90   : > { %8101 = vmatmul.mubr.msk.f32.gmra.mxu0 %vm330_vm1, %v9695_v42  ;;  %8154 = vmatmul.mubr.msk.f32.gmra.mxu1 %vm330_vm1, %v9358_v60  ;;  %13412 = vst [vmem:[#allocation78_spill] sm:$0xff] %v9735_v44  ;;  %13413 = vst [vmem:[#allocation79_spill] sm:$0xff] %v9746_v14 }
  0x91   : > { %8103 = vmatprep.mubr.msk.f32.mxu0 %vm330_vm1, %v9701_v57  ;;  %8156 = vmatprep.mubr.msk.f32.mxu1 %vm330_vm1, %v9380_v18  ;;  %v1263_v18 = vrot.slane %v9405_v22, 2 }
  0x93   : > { %v9752_v4 = vsel %vm1211_vm4, %v1262_v29, %v1263_v18  ;;  %v9763_v9 = vsel %vm1211_vm4, %v1263_v18, %v1265_v2  ;;  %v1272_v29 = vrot.slane %v9449_v12, 2  ;;  %v1275_v18 = vrot.slane %v9468_v32, 2 }
  0x94   : > { %8104 = vmatmul.mubr.msk.f32.gmra.mxu0 %vm330_vm1, %v9712_v21  ;;  %8157 = vmatmul.mubr.msk.f32.gmra.mxu1 %vm330_vm1, %v9382_v26  ;;  %13414 = vst [vmem:[#allocation80_spill] sm:$0xff] %v9752_v4  ;;  %13415 = vst [vmem:[#allocation81_spill] sm:$0xff] %v9763_v9  ;;  %v1280_v32 = vrot.slane %v9491_v27, 2  ;;  %v1285_v27 = vrot.slane %v9514_v38, 2 }
  0x95   : > { %8106 = vmatprep.mubr.msk.f32.mxu0 %vm330_vm1, %v9718_v17  ;;  %8159 = vmatprep.mubr.msk.f32.mxu1 %vm330_vm1, %v9403_v13  ;;  %v1268_v13 = vrot.slane %v9428_v34, 2 }
  0x97   : > { %v9769_v50 = vsel %vm1211_vm4, %v1267_v54, %v1268_v13  ;;  %v9780_v6 = vsel %vm1211_vm4, %v1268_v13, %v1270_v61  ;;  %v1277_v54 = vrot.slane %v9472_v5, 2 }
  0x98   : > { %8107 = vmatmul.mubr.msk.f32.gmra.mxu0 %vm330_vm1, %v9729_v19  ;;  %8160 = vmatmul.mubr.msk.f32.gmra.mxu1 %vm330_vm1, %v9405_v22  ;;  %13416 = vst [vmem:[#allocation82_spill] sm:$0xff] %v9769_v50  ;;  %13417 = vst [vmem:[#allocation83_spill] sm:$0xff] %v9780_v6 }
  0x99   : > { %8109 = vmatprep.mubr.msk.f32.mxu0 %vm330_vm1, %v9735_v44  ;;  %8162 = vmatprep.mubr.msk.f32.mxu1 %vm330_vm1, %v9426_v8  ;;  %v1273_v8 = vrot.slane %v9451_v15, 2 }
  0x9b   : > { %v9786_v2 = vsel %vm1211_vm4, %v1272_v29, %v1273_v8  ;;  %v9797_v13 = vsel %vm1211_vm4, %v1273_v8, %v1275_v18  ;;  %v1282_v29 = vrot.slane %v9495_v20, 2  ;;  %v385_v18 = vld [vmem:[#allocation2 + $0x19a] sm:$0x1] }
  0x9c   : > { %8110 = vmatmul.mubr.msk.f32.gmra.mxu0 %vm330_vm1, %v9746_v14  ;;  %8163 = vmatmul.mubr.msk.f32.gmra.mxu1 %vm330_vm1, %v9428_v34  ;;  %13418 = vst [vmem:[#allocation84_spill] sm:$0xff] %v9786_v2  ;;  %13419 = vst [vmem:[#allocation85_spill] sm:$0xff] %v9797_v13 }
  0x9d   : > { %8112 = vmatprep.mubr.msk.f32.mxu0 %vm330_vm1, %v9752_v4  ;;  %8165 = vmatprep.mubr.msk.f32.mxu1 %vm330_vm1, %v9449_v12  ;;  %v1278_v12 = vrot.slane %v9474_v10, 2  ;;  %422 = vst.msk [vmem:[#allocation2 + $0x198] sm:$0x1] %vm404_vm2, %v385_v18  ;;  %v13434_v18 = vld [vmem:[#allocation47_spill] sm:$0xff] }
  0x9f   : > { %v9803_v61 = vsel %vm1211_vm4, %v1277_v54, %v1278_v12  ;;  %v9814_v8 = vsel %vm1211_vm4, %v1278_v12, %v1280_v32  ;;  %v9830_v12 = vld [vmem:[#allocation2 + $0x180] sm:$0xff]  ;;  %v1290_v32 = vrot.slane %v9538_v47, 2 }
  0xa0   : > { %8113 = vmatmul.mubr.msk.f32.gmra.mxu0 %vm330_vm1, %v9763_v9  ;;  %8166 = vmatmul.mubr.msk.f32.gmra.mxu1 %vm330_vm1, %v9451_v15  ;;  %13420 = vst [vmem:[#allocation86_spill] sm:$0xff] %v9803_v61  ;;  %13421 = vst [vmem:[#allocation87_spill] sm:$0xff] %v9814_v8  ;;  %v403_v15 = vld [vmem:[#allocation2 + $0x1a7] sm:$0x1]  ;;  %v9871_v47 = vld [vmem:[%s13136_s1 + $0x20] sm:$0xf] }
  0xa1   : > { %8115 = vmatprep.mubr.msk.f32.mxu0 %vm330_vm1, %v9769_v50  ;;  %8168 = vmatprep.mubr.msk.f32.mxu1 %vm330_vm1, %v9472_v5  ;;  %v1283_v5 = vrot.slane %v9497_v7, 2  ;;  %440 = vst.msk [vmem:[#allocation2 + $0x1a9] sm:$0x1] %vm404_vm2, %v403_v15  ;;  %v9845_v15 = vld [vmem:[#allocation2 + $0x188] sm:$0xff] }
  0xa3   : > { %v9820_v54 = vsel %vm1211_vm4, %v1282_v29, %v1283_v5  ;;  %v9835_v38 = vsel %vm1211_vm4, %v1283_v5, %v1285_v27  ;;  %v13433_v27 = vld [vmem:[#allocation46_spill] sm:$0xff] }
  0xa4   : > { %8116 = vmatmul.mubr.msk.f32.gmra.mxu0 %vm330_vm1, %v9780_v6  ;;  %8169 = vmatmul.mubr.msk.f32.gmra.mxu1 %vm330_vm1, %v9474_v10  ;;  %13422 = vst [vmem:[#allocation88_spill] sm:$0xff] %v9820_v54  ;;  %v1288_v10 = vrot.slane %v9520_v41, 2  ;;  %13423 = vst [vmem:[#allocation89_spill] sm:$0xff] %v9835_v38 }
  0xa5   : > { %8118 = vmatprep.mubr.msk.f32.mxu0 %vm330_vm1, %v9786_v2  ;;  %8171 = vmatprep.mubr.msk.f32.mxu1 %vm330_vm1, %v9495_v20  ;;  %v1287_v20 = vrot.slane %v9518_v16, 2 }
  0xa6   : > { %v9852_v5 = vsel %vm1211_vm4, %v1288_v10, %v1290_v32  ;;  %v13435_v32 = vld [vmem:[#allocation49_spill] sm:$0xff] }
  0xa7   : > { %v9841_v29 = vsel %vm1211_vm4, %v1287_v20, %v1288_v10  ;;  %v13426_v20 = vld [vmem:[#allocation30_spill] sm:$0xff] }
  0xa8   : > { %8119 = vmatmul.mubr.msk.f32.gmra.mxu0 %vm330_vm1, %v9797_v13  ;;  %8172 = vmatmul.mubr.msk.f32.gmra.mxu1 %vm330_vm1, %v9497_v7  ;;  %13424 = vst [vmem:[#allocation90_spill] sm:$0xff] %v9841_v29  ;;  %v13428_v10 = vld [vmem:[#allocation38_spill] sm:$0xff] }
  0xa9   : > { %8121 = vmatprep.mubr.msk.f32.mxu0 %vm330_vm1, %v9803_v61  ;;  %8174 = vmatprep.mubr.msk.f32.mxu1 %vm330_vm1, %v9518_v16 }
  0xac   : > { %8122 = vmatmul.mubr.msk.f32.gmra.mxu0 %vm330_vm1, %v9814_v8  ;;  %8175 = vmatmul.mubr.msk.f32.gmra.mxu1 %vm330_vm1, %v9520_v41 }
  0xad   : > { %8124 = vmatprep.mubr.msk.f32.mxu0 %vm330_vm1, %v9820_v54  ;;  %8177 = vmatprep.mubr.msk.f32.mxu1 %vm330_vm1, %v9830_v12 }
  0xb0   : > { %8125 = vmatmul.mubr.msk.f32.gmra.mxu0 %vm330_vm1, %v9835_v38  ;;  %8178 = vmatmul.mubr.msk.f32.gmra.mxu1 %vm330_vm1, %v9845_v15 }
  0xb1   : > { %8127 = vmatprep.mubr.msk.f32.mxu0 %vm330_vm1, %v9841_v29  ;;  %8232 = vmatprep.mubr.msk.f32.mxu1 %vm330_vm1, %v9587_v35  ;;  %v13430_v35 = vld [vmem:[#allocation41_spill] sm:$0xff] }
  0xb4   : > { %8128 = vmatmul.mubr.msk.f32.gmra.mxu0 %vm330_vm1, %v9852_v5  ;;  %8233 = vmatmul.mubr.msk.f32.vlgmr.msra.gmra.mxu1 %vm330_vm1, %v9608_v39  ;;  %v13432_v39 = vld [vmem:[#allocation44_spill] sm:$0xff] }
  0xb5   : > { %8182 = vmatprep.mubr.msk.f32.mxu0 %vm330_vm1, %v9161_v0  ;;  %8235 = vmatprep.mubr.msk.f32.mxu1 %vm330_vm1, %v9614_v11  ;;  %v13425_v0 = vld [vmem:[#allocation29_spill] sm:$0xff] }
  0xb6   : > { %8331 = vmatpush3.msk.msra.mxu1 %vm690_vm0, %v9582_v62  ;;  %v13429_v62 = vld [vmem:[#allocation40_spill] sm:$0xff] }
  0xb8   : > { %8183 = vmatmul.mubr.msk.f32.vlgmr.msra.gmra.mxu0 %vm330_vm1, %v9182_v31  ;;  %8236 = vmatmul.mubr.msk.f32.gmra.mxu1 %vm330_vm1, %v9627_v63  ;;  %v13427_v31 = vld [vmem:[#allocation35_spill] sm:$0xff] }
  0xb9   : > { %8281 = vmatpush3.msk.msra.mxu0 %vm690_vm0, %v9598_v55  ;;  %8185 = vmatprep.mubr.msk.f32.mxu0 %vm330_vm1, %v9188_v33  ;;  %v13431_v55 = vld [vmem:[#allocation43_spill] sm:$0xff] }
  0xba   : > { %8380 = vmatprep.subr.msk.mxu0 %vm690_vm0, %v9871_v47  ;;  %8238 = vmatprep.mubr.msk.f32.mxu1 %vm330_vm1, %v9633_v48 }
  0xbc   : > { %8186 = vmatmul.mubr.msk.f32.gmra.mxu0 %vm330_vm1, %v13425_v0  ;;  %8239 = vmatmul.mubr.msk.f32.gmra.mxu1 %vm330_vm1, %v9644_v30 }
  0xbd   : > { %8188 = vmatprep.mubr.msk.f32.mxu0 %vm330_vm1, %v13426_v20  ;;  %8241 = vmatprep.mubr.msk.f32.mxu1 %vm330_vm1, %v9650_v49 }
  0xc0   : > { %8189 = vmatmul.mubr.msk.f32.gmra.mxu0 %vm330_vm1, %v13427_v31  ;;  %8242 = vmatmul.mubr.msk.f32.gmra.mxu1 %vm330_vm1, %v9661_v43  ;;  %v13447_v43 = vld [vmem:[#allocation68_spill] sm:$0xff] }
  0xc1   : > { %8191 = vmatprep.mubr.msk.f32.mxu0 %vm330_vm1, %v13428_v10  ;;  %8244 = vmatprep.mubr.msk.f32.mxu1 %vm330_vm1, %v9667_v36 }
  0xc4   : > { %8192 = vmatmul.mubr.msk.f32.gmra.mxu0 %vm330_vm1, %v13429_v62  ;;  %8245 = vmatmul.mubr.msk.f32.gmra.mxu1 %vm330_vm1, %v9678_v56 }
  0xc5   : > { %8194 = vmatprep.mubr.msk.f32.mxu0 %vm330_vm1, %v13430_v35  ;;  %8247 = vmatprep.mubr.msk.f32.mxu1 %vm330_vm1, %v9684_v59  ;;  %v13436_v59 = vld [vmem:[#allocation50_spill] sm:$0xff] }
  0xc8   : > { %8195 = vmatmul.mubr.msk.f32.gmra.mxu0 %vm330_vm1, %v13431_v55  ;;  %8248 = vmatmul.mubr.msk.f32.gmra.mxu1 %vm330_vm1, %v9695_v42  ;;  %v13438_v42 = vld [vmem:[#allocation53_spill] sm:$0xff] }
  0xc9   : > { %8197 = vmatprep.mubr.msk.f32.mxu0 %vm330_vm1, %v13432_v39  ;;  %8250 = vmatprep.mubr.msk.f32.mxu1 %vm330_vm1, %v9701_v57  ;;  %v13437_v57 = vld [vmem:[#allocation52_spill] sm:$0xff] }
  0xcc   : > { %8198 = vmatmul.mubr.msk.f32.gmra.mxu0 %vm330_vm1, %v13433_v27  ;;  %8251 = vmatmul.mubr.msk.f32.gmra.mxu1 %vm330_vm1, %v9712_v21  ;;  %v13440_v21 = vld [vmem:[#allocation56_spill] sm:$0xff] }
  0xcd   : > { %8200 = vmatprep.mubr.msk.f32.mxu0 %vm330_vm1, %v13434_v18  ;;  %8253 = vmatprep.mubr.msk.f32.mxu1 %vm330_vm1, %v9718_v17  ;;  %v13439_v17 = vld [vmem:[#allocation55_spill] sm:$0xff] }
  0xd0   : > { %8201 = vmatmul.mubr.msk.f32.gmra.mxu0 %vm330_vm1, %v13435_v32  ;;  %8254 = vmatmul.mubr.msk.f32.gmra.mxu1 %vm330_vm1, %v9729_v19  ;;  %v13442_v19 = vld [vmem:[#allocation60_spill] sm:$0xff] }
  0xd1   : > { %8203 = vmatprep.mubr.msk.f32.mxu0 %vm330_vm1, %v13436_v59  ;;  %8256 = vmatprep.mubr.msk.f32.mxu1 %vm330_vm1, %v9735_v44  ;;  %v13441_v44 = vld [vmem:[#allocation59_spill] sm:$0xff] }
  0xd4   : > { %8204 = vmatmul.mubr.msk.f32.gmra.mxu0 %vm330_vm1, %v13437_v57  ;;  %8257 = vmatmul.mubr.msk.f32.gmra.mxu1 %vm330_vm1, %v9746_v14  ;;  %v13444_v14 = vld [vmem:[#allocation64_spill] sm:$0xff] }
  0xd5   : > { %8206 = vmatprep.mubr.msk.f32.mxu0 %vm330_vm1, %v13438_v42  ;;  %8259 = vmatprep.mubr.msk.f32.mxu1 %vm330_vm1, %v9752_v4  ;;  %v13443_v4 = vld [vmem:[#allocation63_spill] sm:$0xff] }
  0xd8   : > { %8207 = vmatmul.mubr.msk.f32.gmra.mxu0 %vm330_vm1, %v13439_v17  ;;  %8260 = vmatmul.mubr.msk.f32.gmra.mxu1 %vm330_vm1, %v9763_v9  ;;  %v13446_v9 = vld [vmem:[#allocation67_spill] sm:$0xff] }
  0xd9   : > { %8209 = vmatprep.mubr.msk.f32.mxu0 %vm330_vm1, %v13440_v21  ;;  %8262 = vmatprep.mubr.msk.f32.mxu1 %vm330_vm1, %v9769_v50  ;;  %v13445_v50 = vld [vmem:[#allocation66_spill] sm:$0xff] }
  0xdc   : > { %8210 = vmatmul.mubr.msk.f32.gmra.mxu0 %vm330_vm1, %v13441_v44  ;;  %8263 = vmatmul.mubr.msk.f32.gmra.mxu1 %vm330_vm1, %v9780_v6  ;;  %v493_v6 = vld [vmem:[#allocation2 + $0x190] sm:$0x3] }
  0xdd   : > { %8212 = vmatprep.mubr.msk.f32.mxu0 %vm330_vm1, %v13442_v19  ;;  %8265 = vmatprep.mubr.msk.f32.mxu1 %vm330_vm1, %v9786_v2  ;;  %v2153_v2 = vrot.slane %v9845_v15, 2  ;;  %v1886_v36 = vrot.slane %v493_v6, 1 }
  0xe0   : > { %8213 = vmatmul.mubr.msk.f32.gmra.mxu0 %vm330_vm1, %v13443_v4  ;;  %8266 = vmatmul.mubr.msk.f32.gmra.mxu1 %vm330_vm1, %v9797_v13  ;;  %v2152_v13 = vrot.slane %v9830_v12, 2 }
  0xe1   : > { %8215 = vmatprep.mubr.msk.f32.mxu0 %vm330_vm1, %v13444_v14  ;;  %8268 = vmatprep.mubr.msk.f32.mxu1 %vm330_vm1, %v9803_v61  ;;  %v1883_v61 = vrot.slane %v9830_v12, 1 }
  0xe2   : > { %v9988_v56 = vsel %vm1211_vm4, %v2152_v13, %v2153_v2 }
  0xe4   : > { %8216 = vmatmul.mubr.msk.f32.gmra.mxu0 %vm330_vm1, %v13445_v50  ;;  %8269 = vmatmul.mubr.msk.f32.gmra.mxu1 %vm330_vm1, %v9814_v8  ;;  %v1884_v8 = vrot.slane %v9845_v15, 1 }
  0xe5   : > { %8218 = vmatprep.mubr.msk.f32.mxu0 %vm330_vm1, %v13446_v9  ;;  %8271 = vmatprep.mubr.msk.f32.mxu1 %vm330_vm1, %v9820_v54  ;;  %v2155_v54 = vrot.slane %v493_v6, 2 }
  0xe6   : > { %v10007_v6 = vsel %vm545_vm3, %v1884_v8, %v1886_v36 }
  0xe8   : > { %8219 = vmatmul.mubr.msk.f32.gmra.mxu0 %vm330_vm1, %v9527_v25  ;;  %8272 = vmatmul.mubr.msk.f32.gmra.mxu1 %vm330_vm1, %v9835_v38  ;;  %v9995_v38 = vsel %vm545_vm3, %v1883_v61, %v1884_v8 }
  0xe9   : > { %8221 = vmatprep.mubr.msk.f32.mxu0 %vm330_vm1, %v9534_v46  ;;  %8274 = vmatprep.mubr.msk.f32.mxu1 %vm330_vm1, %v9841_v29  ;;  %v10000_v29 = vsel %vm1211_vm4, %v2153_v2, %v2155_v54 }
  0xec   : > { %8222 = vmatmul.mubr.msk.f32.gmra.mxu0 %vm330_vm1, %v9547_v23  ;;  %8275 = vmatmul.mubr.msk.f32.gmra.mxu1 %vm330_vm1, %v9852_v5 }
  0xed   : > { %8224 = vmatprep.mubr.msk.f32.mxu0 %vm330_vm1, %v9553_v24  ;;  %8277 = vmatprep.mubr.msk.f32.mxu1 %vm330_vm1, %v9988_v56 }
  0xf0   : > { %8225 = vmatmul.mubr.msk.f32.gmra.mxu0 %vm330_vm1, %v13447_v43  ;;  %8278 = vmatmul.mubr.msk.f32.gmra.mxu1 %vm330_vm1, %v10000_v29 }
  0xf1   : > { %8227 = vmatprep.mubr.msk.f32.mxu0 %vm330_vm1, %v9995_v38  ;;  %8332 = vmatprep.mubr.msk.f32.mxu1 %vm330_vm1, %v9188_v33 }
  0xf3   : > { %v8034_v2 = vpop.f32.mrf.mxu1 }
  0xf4   : > { %8228 = vmatmul.mubr.msk.f32.gmra.mxu0 %vm330_vm1, %v10007_v6  ;;  %8333 = vmatmul.mubr.msk.f32.vlgmr.msra.gmra.mxu1 %vm330_vm1, %v13425_v0 }
  0xf5   : > { %8282 = vmatprep.mubr.msk.f32.mxu0 %vm330_vm1, %v9147_v58  ;;  %v1052_v13 = vpop.f32.mrf.mxu1  ;;  %8335 = vmatprep.mubr.msk.f32.mxu1 %vm330_vm1, %v13426_v20 }
  0xf6   : > { %v7984_v36 = vpop.f32.mrf.mxu0 }
  0xf7   : > { %v10023_v61 = vadd.f32 %v8034_v2, %v7984_v36  ;;  %v13448_v36 = vld [vmem:[#allocation39_spill] sm:$0xff] }
  0xf8   : > { %8283 = vmatmul.mubr.msk.f32.vlgmr.msra.gmra.mxu0 %vm330_vm1, %v9123_v45  ;;  %v760_v58 = vpop.f32.mrf.mxu0  ;;  %v8037_v33 = vpop.f32.mrf.mxu1  ;;  %8336 = vmatmul.mubr.msk.f32.gmra.mxu1 %vm330_vm1, %v13427_v31 }
  0xf9   : > { %8381 = vmatpush3.msk.msra.mxu0 %vm690_vm0, %v9871_v47  ;;  %8285 = vmatprep.mubr.msk.f32.mxu0 %vm330_vm1, %v9163_v1  ;;  %v10031_v8 = vadd.f32 %v1052_v13, %v760_v58 }
  0xfa   : > { %8338 = vmatprep.mubr.msk.f32.mxu1 %vm330_vm1, %v13428_v10  ;;  %v7987_v54 = vpop.f32.mrf.mxu0  ;;  %v1062_v45 = vpop.f32.mrf.mxu1 }
  0xfb   : > { %v10037_v0 = vadd.f32 %v8037_v33, %v7987_v54  ;;  %v13449_v54 = vld [vmem:[#allocation42_spill] sm:$0xff] }
  0xfc   : > { %8286 = vmatmul.mubr.msk.f32.gmra.mxu0 %vm330_vm1, %v9165_v28  ;;  %v770_v1 = vpop.f32.mrf.mxu0  ;;  %v8040_v47 = vpop.f32.mrf.mxu1  ;;  %8339 = vmatmul.mubr.msk.f32.gmra.mxu1 %vm330_vm1, %v13429_v62 }
  0xfd   : > { %8288 = vmatprep.mubr.msk.f32.mxu0 %vm330_vm1, %v9192_v37  ;;  %v10043_v20 = vadd.f32 %v1062_v45, %v770_v1  ;;  %8341 = vmatprep.mubr.msk.f32.mxu1 %vm330_vm1, %v13430_v35 }
  0xfe   : > { %v7990_v31 = vpop.f32.mrf.mxu0  ;;  %v1072_v28 = vpop.f32.mrf.mxu1 }
  0xff   : > { %v10049_v10 = vadd.f32 %v8040_v47, %v7990_v31  ;;  %v13450_v31 = vld [vmem:[#allocation45_spill] sm:$0xff] }
 0x100   : > { %8289 = vmatmul.mubr.msk.f32.gmra.mxu0 %vm330_vm1, %v9175_v3  ;;  %v780_v37 = vpop.f32.mrf.mxu0  ;;  %v8043_v2 = vpop.f32.mrf.mxu1  ;;  %8342 = vmatmul.mubr.msk.f32.gmra.mxu1 %vm330_vm1, %v13431_v55 }
 0x101   : > { %8291 = vmatprep.mubr.msk.f32.mxu0 %vm330_vm1, %v9221_v51  ;;  %v10055_v62 = vadd.f32 %v1072_v28, %v780_v37  ;;  %8344 = vmatprep.mubr.msk.f32.mxu1 %vm330_vm1, %v13432_v39 }
 0x102   : > { %v7993_v35 = vpop.f32.mrf.mxu0  ;;  %v1082_v3 = vpop.f32.mrf.mxu1 }
 0x103   : > { %v10061_v13 = vadd.f32 %v8043_v2, %v7993_v35  ;;  %v13451_v35 = vld [vmem:[#allocation48_spill] sm:$0xff] }
 0x104   : > { %8292 = vmatmul.mubr.msk.f32.gmra.mxu0 %vm330_vm1, %v9223_v52  ;;  %v790_v51 = vpop.f32.mrf.mxu0  ;;  %v8046_v58 = vpop.f32.mrf.mxu1  ;;  %8345 = vmatmul.mubr.msk.f32.gmra.mxu1 %vm330_vm1, %v13433_v27 }
 0x105   : > { %8294 = vmatprep.mubr.msk.f32.mxu0 %vm330_vm1, %v13448_v36  ;;  %v10067_v55 = vadd.f32 %v1082_v3, %v790_v51  ;;  %8347 = vmatprep.mubr.msk.f32.mxu1 %vm330_vm1, %v13434_v18 }
 0x106   : > { %v1092_v52 = vpop.f32.mrf.mxu1 }
 0x108   : > { %v7996_v39 = vpop.f32.mrf.mxu0  ;;  %8295 = vmatmul.mubr.msk.f32.gmra.mxu0 %vm330_vm1, %v9302_v40  ;;  %v8049_v1 = vpop.f32.mrf.mxu1  ;;  %8348 = vmatmul.mubr.msk.f32.gmra.mxu1 %vm330_vm1, %v13435_v32 }
 0x109   : > { %v10073_v33 = vadd.f32 %v8046_v58, %v7996_v39  ;;  %8297 = vmatprep.mubr.msk.f32.mxu0 %vm330_vm1, %v13449_v54  ;;  %8350 = vmatprep.mubr.msk.f32.mxu1 %vm330_vm1, %v13436_v59  ;;  %v13452_v58 = vld [vmem:[#allocation51_spill] sm:$0xff] }
 0x10a   : > { %v800_v45 = vpop.f32.mrf.mxu0  ;;  %v1102_v40 = vpop.f32.mrf.mxu1 }
 0x10b   : > { %v10079_v27 = vadd.f32 %v1092_v52, %v800_v45  ;;  %v13453_v45 = vld [vmem:[#allocation54_spill] sm:$0xff] }
 0x10c   : > { %v7999_v18 = vpop.f32.mrf.mxu0  ;;  %8298 = vmatmul.mubr.msk.f32.gmra.mxu0 %vm330_vm1, %v9331_v53  ;;  %v8052_v37 = vpop.f32.mrf.mxu1  ;;  %8351 = vmatmul.mubr.msk.f32.gmra.mxu1 %vm330_vm1, %v13437_v57 }
 0x10d   : > { %v10085_v47 = vadd.f32 %v8049_v1, %v7999_v18  ;;  %8300 = vmatprep.mubr.msk.f32.mxu0 %vm330_vm1, %v13450_v31  ;;  %8353 = vmatprep.mubr.msk.f32.mxu1 %vm330_vm1, %v13438_v42 }
 0x10e   : > { %v810_v28 = vpop.f32.mrf.mxu0  ;;  %v1112_v53 = vpop.f32.mrf.mxu1 }
 0x10f   : > { %v10091_v32 = vadd.f32 %v1102_v40, %v810_v28  ;;  %v13454_v40 = vld [vmem:[#allocation57_spill] sm:$0xff] }
 0x110   : > { %v8002_v59 = vpop.f32.mrf.mxu0  ;;  %8301 = vmatmul.mubr.msk.f32.gmra.mxu0 %vm330_vm1, %v9358_v60  ;;  %v8055_v36 = vpop.f32.mrf.mxu1  ;;  %8354 = vmatmul.mubr.msk.f32.gmra.mxu1 %vm330_vm1, %v13439_v17 }
 0x111   : > { %v10097_v2 = vadd.f32 %v8052_v37, %v8002_v59  ;;  %8303 = vmatprep.mubr.msk.f32.mxu0 %vm330_vm1, %v13451_v35  ;;  %8356 = vmatprep.mubr.msk.f32.mxu1 %vm330_vm1, %v13440_v21  ;;  %v13456_v59 = vld [vmem:[#allocation61_spill] sm:$0xff] }
 0x112   : > { %v820_v3 = vpop.f32.mrf.mxu0  ;;  %v1122_v60 = vpop.f32.mrf.mxu1 }
 0x113   : > { %v10103_v57 = vadd.f32 %v1112_v53, %v820_v3 }
 0x114   : > { %v8005_v42 = vpop.f32.mrf.mxu0  ;;  %8304 = vmatmul.mubr.msk.f32.gmra.mxu0 %vm330_vm1, %v9382_v26  ;;  %v8058_v52 = vpop.f32.mrf.mxu1  ;;  %8357 = vmatmul.mubr.msk.f32.gmra.mxu1 %vm330_vm1, %v13441_v44 }
 0x115   : > { %v10109_v51 = vadd.f32 %v8055_v36, %v8005_v42  ;;  %8306 = vmatprep.mubr.msk.f32.mxu0 %vm330_vm1, %v13452_v58  ;;  %8359 = vmatprep.mubr.msk.f32.mxu1 %vm330_vm1, %v13442_v19  ;;  %v13458_v42 = vld [vmem:[#allocation65_spill] sm:$0xff] }
 0x116   : > { %v830_v39 = vpop.f32.mrf.mxu0  ;;  %v10121_v26 = vpop.f32.mrf.mxu1  ;;  %v10171_v58 = vld [vmem:[#allocation2 + $0x1a0] sm:$0xff] }
 0x117   : > { %v10115_v17 = vadd.f32 %v1122_v60, %v830_v39  ;;  %v10169_v60 = vld [vmem:[#allocation2 + $0x198] sm:$0xff] }
 0x118   : > { %v8008_v21 = vpop.f32.mrf.mxu0  ;;  %8307 = vmatmul.mubr.msk.f32.gmra.mxu0 %vm330_vm1, %v9405_v22  ;;  %v8061_v18 = vpop.f32.mrf.mxu1  ;;  %8360 = vmatmul.mubr.msk.f32.gmra.mxu1 %vm330_vm1, %v13443_v4  ;;  %v13455_v4 = vld [vmem:[#allocation58_spill] sm:$0xff] }
 0x119   : > { %v10123_v54 = vadd.f32 %v8058_v52, %v8008_v21  ;;  %8309 = vmatprep.mubr.msk.f32.mxu0 %vm330_vm1, %v13453_v45  ;;  %8362 = vmatprep.mubr.msk.f32.mxu1 %vm330_vm1, %v13444_v14  ;;  %v2688_v21 = vrot.slane %v10169_v60, 1  ;;  %v2689_v45 = vrot.slane %v10171_v58, 1 }
 0x11a   : > { %v10127_v1 = vpop.f32.mrf.mxu0  ;;  %v10135_v22 = vpop.f32.mrf.mxu1 }
 0x11c   : > { %v8011_v19 = vpop.f32.mrf.mxu0  ;;  %8310 = vmatmul.mubr.msk.f32.gmra.mxu0 %vm330_vm1, %v9428_v34  ;;  %v8064_v28 = vpop.f32.mrf.mxu1  ;;  %8363 = vmatmul.mubr.msk.f32.gmra.mxu1 %vm330_vm1, %v13445_v50  ;;  %v13457_v50 = vld [vmem:[#allocation62_spill] sm:$0xff] }
 0x11d   : > { %v10137_v44 = vadd.f32 %v8061_v18, %v8011_v19  ;;  %8312 = vmatprep.mubr.msk.f32.mxu0 %vm330_vm1, %v13454_v40  ;;  %8365 = vmatprep.mubr.msk.f32.mxu1 %vm330_vm1, %v13446_v9  ;;  %v10185_v18 = vld [vmem:[#allocation2 + $0x1a8] sm:$0x3] }
 0x11e   : > { %v10141_v31 = vpop.f32.mrf.mxu0  ;;  %v10149_v34 = vpop.f32.mrf.mxu1 }
 0x120   : > { %v8014_v14 = vpop.f32.mrf.mxu0  ;;  %8313 = vmatmul.mubr.msk.f32.gmra.mxu0 %vm330_vm1, %v13455_v4  ;;  %v8067_v35 = vpop.f32.mrf.mxu1  ;;  %8366 = vmatmul.mubr.msk.f32.gmra.mxu1 %vm330_vm1, %v9527_v25 }
 0x121   : > { %v10151_v37 = vadd.f32 %v8064_v28, %v8014_v14  ;;  %8315 = vmatprep.mubr.msk.f32.mxu0 %vm330_vm1, %v13456_v59  ;;  %8368 = vmatprep.mubr.msk.f32.mxu1 %vm330_vm1, %v9534_v46  ;;  %v2690_v14 = vsel %vm545_vm3, %v2688_v21, %v2689_v45 }
 0x122   : > { %v10155_v53 = vpop.f32.mrf.mxu0  ;;  %v10163_v3 = vpop.f32.mrf.mxu1 }
 0x124   : > { %v8017_v9 = vpop.f32.mrf.mxu0  ;;  %8316 = vmatmul.mubr.msk.f32.gmra.mxu0 %vm330_vm1, %v13457_v50  ;;  %v8070_v25 = vpop.f32.mrf.mxu1  ;;  %8369 = vmatmul.mubr.msk.f32.gmra.mxu1 %vm330_vm1, %v9547_v23 }
 0x125   : > { %v10165_v36 = vadd.f32 %v8067_v35, %v8017_v9  ;;  %8318 = vmatprep.mubr.msk.f32.mxu0 %vm330_vm1, %v13458_v42  ;;  %8371 = vmatprep.mubr.msk.f32.mxu1 %vm330_vm1, %v9553_v24 }
 0x126   : > { %v10173_v39 = vpop.f32.mrf.mxu0  ;;  %v10181_v52 = vpop.f32.mrf.mxu1 }
 0x128   : > { %v8020_v46 = vpop.f32.mrf.mxu0  ;;  %8319 = vmatmul.mubr.msk.f32.gmra.mxu0 %vm330_vm1, %v9497_v7  ;;  %v8073_v24 = vpop.f32.mrf.mxu1  ;;  %8372 = vmatmul.mubr.msk.f32.gmra.mxu1 %vm330_vm1, %v13447_v43  ;;  %v2691_v7 = vrot.slane %v10185_v18, 1 }
 0x129   : > { %v10187_v19 = vadd.f32 %v8070_v25, %v8020_v46  ;;  %8321 = vmatprep.mubr.msk.f32.mxu0 %vm330_vm1, %v9518_v16  ;;  %8374 = vmatprep.mubr.msk.f32.mxu1 %vm330_vm1, %v9995_v38 }
 0x12a   : > { %v10191_v23 = vpop.f32.mrf.mxu0  ;;  %v10200_v28 = vpop.f32.mrf.mxu1  ;;  %v2692_v38 = vsel %vm545_vm3, %v2689_v45, %v2691_v7 }
 0x12c   : > { %v8023_v40 = vpop.f32.mrf.mxu0  ;;  %8322 = vmatmul.mubr.msk.f32.gmra.mxu0 %vm330_vm1, %v9520_v41  ;;  %v8076_v43 = vpop.f32.mrf.mxu1  ;;  %8375 = vmatmul.mubr.msk.f32.gmra.mxu1 %vm330_vm1, %v10007_v6 }
 0x12d   : > { %v10203_v16 = vadd.f32 %v8073_v24, %v8023_v40  ;;  %8324 = vmatprep.mubr.msk.f32.mxu0 %vm330_vm1, %v9830_v12  ;;  %8377 = vmatprep.mubr.msk.f32.mxu1 %vm330_vm1, %v2690_v14 }
 0x12e   : > { %v10207_v4 = vpop.f32.mrf.mxu0  ;;  %v10215_v59 = vpop.f32.mrf.mxu1 }
 0x130   : > { %v8026_v41 = vpop.f32.mrf.mxu0  ;;  %8325 = vmatmul.mubr.msk.f32.gmra.mxu0 %vm330_vm1, %v9845_v15  ;;  %v8079_v9 = vpop.f32.mrf.mxu1  ;;  %8378 = vmatmul.mubr.msk.f32.gmra.mxu1 %vm330_vm1, %v2692_v38 }
 0x131   : > { %v10217_v35 = vadd.f32 %v8076_v43, %v8026_v41  ;;  %8327 = vmatprep.mubr.msk.f32.mxu0 %vm330_vm1, %v10169_v60 }
 0x132   : > { %v10221_v12 = vpop.f32.mrf.mxu0  ;;  %v10226_v50 = vpop.f32.mrf.mxu1 }
 0x134   : > { %v8029_v6 = vpop.f32.mrf.mxu0  ;;  %8328 = vmatmul.mubr.msk.f32.gmra.mxu0 %vm330_vm1, %v10171_v58  ;;  %v8134_v25 = vpop.f32.mrf.mxu1 }
 0x135   : > { %v10228_v42 = vadd.f32 %v8079_v9, %v8029_v6  ;;  %8382 = vmatprep.mubr.msk.f32.mxu0 %vm330_vm1, %v9614_v11  ;;  %v13459_v9 = vld [vmem:[#allocation69_spill] sm:$0xff] }
 0x136   : > { %v10232_v15 = vpop.f32.mrf.mxu0  ;;  %v10236_v21 = vpop.f32.mrf.mxu1 }
 0x138   : > { %v8084_v46 = vpop.f32.mrf.mxu0  ;;  %8383 = vmatmul.mubr.msk.f32.vlgmr.msra.gmra.mxu0 %vm330_vm1, %v9627_v63  ;;  %v8137_v7 = vpop.f32.mrf.mxu1 }
 0x139   : > { %v1585_v45 = vadd.f32 %v8084_v46, %v10023_v61  ;;  %8385 = vmatprep.mubr.msk.f32.mxu0 %vm330_vm1, %v9633_v48 }
 0x13a   : > { %v1425_v24 = vpop.f32.mrf.mxu0  ;;  %v10248_v43 = vpop.f32.mrf.mxu1 }
 0x13b   : > { %v10242_v40 = vadd.f32 %v1425_v24, %v10031_v8  ;;  %v10244_v11 = vadd.f32 %v8134_v25, %v1585_v45  ;;  %v13460_v25 = vld [vmem:[#allocation70_spill] sm:$0xff]  ;;  %v13461_v24 = vld [vmem:[#allocation71_spill] sm:$0xff] }
 0x13c   : > { %v8087_v14 = vpop.f32.mrf.mxu0  ;;  %8386 = vmatmul.mubr.msk.f32.gmra.mxu0 %vm330_vm1, %v9644_v30  ;;  %v8140_v48 = vpop.f32.mrf.mxu1 }
 0x13d   : > { %v1587_v63 = vadd.f32 %v8087_v14, %v10037_v0  ;;  %8388 = vmatprep.mubr.msk.f32.mxu0 %vm330_vm1, %v9650_v49 }
 0x13e   : > { %v1435_v61 = vpop.f32.mrf.mxu0  ;;  %v10260_v6 = vpop.f32.mrf.mxu1 }
 0x13f   : > { %v10254_v38 = vadd.f32 %v1435_v61, %v10043_v20  ;;  %v10256_v8 = vadd.f32 %v8137_v7, %v1587_v63  ;;  %v13462_v63 = vld [vmem:[#allocation72_spill] sm:$0xff] }
 0x140   : > { %v8090_v41 = vpop.f32.mrf.mxu0  ;;  %8389 = vmatmul.mubr.msk.f32.gmra.mxu0 %vm330_vm1, %v13459_v9  ;;  %v8143_v49 = vpop.f32.mrf.mxu1  ;;  %v13463_v9 = vld [vmem:[#allocation73_spill] sm:$0xff] }
 0x141   : > { %v1589_v30 = vadd.f32 %v8090_v41, %v10049_v10  ;;  %8391 = vmatprep.mubr.msk.f32.mxu0 %vm330_vm1, %v13460_v25 }
 0x142   : > { %v1445_v0 = vpop.f32.mrf.mxu0  ;;  %v10272_v7 = vpop.f32.mrf.mxu1 }
 0x143   : > { %v10266_v46 = vadd.f32 %v1445_v0, %v10055_v62  ;;  %v10268_v20 = vadd.f32 %v8140_v48, %v1589_v30  ;;  %v13464_v0 = vld [vmem:[#allocation74_spill] sm:$0xff] }
 0x144   : > { %v8093_v45 = vpop.f32.mrf.mxu0  ;;  %8392 = vmatmul.mubr.msk.f32.gmra.mxu0 %vm330_vm1, %v13461_v24  ;;  %v8146_v61 = vpop.f32.mrf.mxu1 }
 0x145   : > { %v1591_v14 = vadd.f32 %v8093_v45, %v10061_v13  ;;  %8394 = vmatprep.mubr.msk.f32.mxu0 %vm330_vm1, %v13462_v63 }
 0x146   : > { %v1455_v10 = vpop.f32.mrf.mxu0  ;;  %v10284_v30 = vpop.f32.mrf.mxu1 }
 0x147   : > { %v10278_v41 = vadd.f32 %v1455_v10, %v10067_v55  ;;  %v10280_v62 = vadd.f32 %v8143_v49, %v1591_v14  ;;  %v13465_v14 = vld [vmem:[#allocation75_spill] sm:$0xff] }
 0x148   : > { %v8096_v48 = vpop.f32.mrf.mxu0  ;;  %8395 = vmatmul.mubr.msk.f32.gmra.mxu0 %vm330_vm1, %v13463_v9  ;;  %v8149_v45 = vpop.f32.mrf.mxu1  ;;  %v13467_v9 = vld [vmem:[#allocation76_spill] sm:$0xff] }
 0x149   : > { %v1593_v25 = vadd.f32 %v8096_v48, %v10073_v33  ;;  %8397 = vmatprep.mubr.msk.f32.mxu0 %vm330_vm1, %v13464_v0 }
 0x14a   : > { %v1465_v13 = vpop.f32.mrf.mxu0  ;;  %v10296_v63 = vpop.f32.mrf.mxu1 }
 0x14b   : > { %v10290_v24 = vadd.f32 %v1465_v13, %v10079_v27  ;;  %v10292_v55 = vadd.f32 %v8146_v61, %v1593_v25  ;;  %13466 = vst [vmem:[#allocation29_spill] sm:$0xff] %v10296_v63  ;;  %v13469_v25 = vld [vmem:[#allocation77_spill] sm:$0xff]  ;;  %v13471_v63 = vld [vmem:[#allocation78_spill] sm:$0xff] }
 0x14c   : > { %v8099_v49 = vpop.f32.mrf.mxu0  ;;  %8398 = vmatmul.mubr.msk.f32.gmra.mxu0 %vm330_vm1, %v13465_v14  ;;  %v8152_v48 = vpop.f32.mrf.mxu1 }
 0x14d   : > { %v1595_v10 = vadd.f32 %v8099_v49, %v10085_v47  ;;  %8400 = vmatprep.mubr.msk.f32.mxu0 %vm330_vm1, %v13467_v9 }
 0x14e   : > { %v1475_v33 = vpop.f32.mrf.mxu0  ;;  %v10308_v13 = vpop.f32.mrf.mxu1 }
 0x14f   : > { %v10302_v0 = vadd.f32 %v1475_v33, %v10091_v32  ;;  %v10304_v27 = vadd.f32 %v8149_v45, %v1595_v10  ;;  %13470 = vst [vmem:[#allocation35_spill] sm:$0xff] %v10308_v13  ;;  %v13473_v10 = vld [vmem:[#allocation79_spill] sm:$0xff]  ;;  %v13475_v13 = vld [vmem:[#allocation80_spill] sm:$0xff] }
 0x150   : > { %v8102_v61 = vpop.f32.mrf.mxu0  ;;  %8401 = vmatmul.mubr.msk.f32.gmra.mxu0 %vm330_vm1, %v13469_v25  ;;  %v8155_v49 = vpop.f32.mrf.mxu1 }
 0x151   : > { %13468 = vst [vmem:[#allocation30_spill] sm:$0xff] %v10302_v0  ;;  %v1597_v14 = vadd.f32 %v8102_v61, %v10097_v2  ;;  %8403 = vmatprep.mubr.msk.f32.mxu0 %vm330_vm1, %v13471_v63  ;;  %v13489_v0 = vld [vmem:[#allocation89_spill] sm:$0xff] }
 0x152   : > { %v1485_v47 = vpop.f32.mrf.mxu0  ;;  %v10320_v33 = vpop.f32.mrf.mxu1 }
 0x153   : > { %v10314_v9 = vadd.f32 %v1485_v47, %v10103_v57  ;;  %v10316_v32 = vadd.f32 %v8152_v48, %v1597_v14  ;;  %13474 = vst [vmem:[#allocation40_spill] sm:$0xff] %v10320_v33  ;;  %v13477_v14 = vld [vmem:[#allocation81_spill] sm:$0xff]  ;;  %v13479_v33 = vld [vmem:[#allocation82_spill] sm:$0xff] }
 0x154   : > { %v8105_v45 = vpop.f32.mrf.mxu0  ;;  %8404 = vmatmul.mubr.msk.f32.gmra.mxu0 %vm330_vm1, %v13473_v10  ;;  %v8158_v63 = vpop.f32.mrf.mxu1 }
 0x155   : > { %13472 = vst [vmem:[#allocation38_spill] sm:$0xff] %v10314_v9  ;;  %v1599_v25 = vadd.f32 %v8105_v45, %v10109_v51  ;;  %8406 = vmatprep.mubr.msk.f32.mxu0 %vm330_vm1, %v13475_v13  ;;  %v13486_v9 = vld [vmem:[#allocation87_spill] sm:$0xff] }
 0x156   : > { %v1495_v2 = vpop.f32.mrf.mxu0  ;;  %v10332_v47 = vpop.f32.mrf.mxu1 }
 0x157   : > { %v10326_v61 = vadd.f32 %v1495_v2, %v10115_v17  ;;  %v10328_v57 = vadd.f32 %v8155_v49, %v1599_v25  ;;  %13478 = vst [vmem:[#allocation43_spill] sm:$0xff] %v10332_v47  ;;  %v13480_v2 = vld [vmem:[#allocation83_spill] sm:$0xff] }
 0x158   : > { %v8108_v48 = vpop.f32.mrf.mxu0  ;;  %8407 = vmatmul.mubr.msk.f32.gmra.mxu0 %vm330_vm1, %v13477_v14  ;;  %v8161_v13 = vpop.f32.mrf.mxu1  ;;  %v13482_v14 = vld [vmem:[#allocation84_spill] sm:$0xff] }
 0x159   : > { %13476 = vst [vmem:[#allocation41_spill] sm:$0xff] %v10326_v61  ;;  %v1601_v10 = vadd.f32 %v8108_v48, %v10123_v54  ;;  %8409 = vmatprep.mubr.msk.f32.mxu0 %vm330_vm1, %v13479_v33  ;;  %v13483_v61 = vld [vmem:[#allocation85_spill] sm:$0xff] }
 0x15a   : > { %v10337_v51 = vpop.f32.mrf.mxu0  ;;  %v10343_v49 = vpop.f32.mrf.mxu1 }
 0x15b   : > { %v10339_v45 = vadd.f32 %v8158_v63, %v1601_v10  ;;  %13481 = vst [vmem:[#allocation44_spill] sm:$0xff] %v10343_v49 }
 0x15c   : > { %v8111_v17 = vpop.f32.mrf.mxu0  ;;  %8410 = vmatmul.mubr.msk.f32.gmra.mxu0 %vm330_vm1, %v13480_v2  ;;  %v8164_v48 = vpop.f32.mrf.mxu1  ;;  %v13485_v2 = vld [vmem:[#allocation86_spill] sm:$0xff] }
 0x15d   : > { %v1603_v25 = vadd.f32 %v8111_v17, %v10137_v44  ;;  %8412 = vmatprep.mubr.msk.f32.mxu0 %vm330_vm1, %v13482_v14 }
 0x15e   : > { %v10348_v54 = vpop.f32.mrf.mxu0  ;;  %v10354_v63 = vpop.f32.mrf.mxu1 }
 0x15f   : > { %v10350_v33 = vadd.f32 %v8161_v13, %v1603_v25  ;;  %13484 = vst [vmem:[#allocation46_spill] sm:$0xff] %v10354_v63  ;;  %v13488_v25 = vld [vmem:[#allocation88_spill] sm:$0xff] }
 0x160   : > { %v8114_v47 = vpop.f32.mrf.mxu0  ;;  %8413 = vmatmul.mubr.msk.f32.gmra.mxu0 %vm330_vm1, %v13483_v61  ;;  %v8167_v17 = vpop.f32.mrf.mxu1 }
 0x161   : > { %v1605_v10 = vadd.f32 %v8114_v47, %v10151_v37  ;;  %8415 = vmatprep.mubr.msk.f32.mxu0 %vm330_vm1, %v13485_v2 }
 0x162   : > { %v10359_v44 = vpop.f32.mrf.mxu0  ;;  %v10365_v13 = vpop.f32.mrf.mxu1 }
 0x163   : > { %v10361_v14 = vadd.f32 %v8164_v48, %v1605_v10  ;;  %13487 = vst [vmem:[#allocation47_spill] sm:$0xff] %v10365_v13  ;;  %v13491_v10 = vld [vmem:[#allocation90_spill] sm:$0xff]  ;;  %v2958_v13 = vrot.slane %v10171_v58, 2 }
 0x164   : > { %v8117_v49 = vpop.f32.mrf.mxu0  ;;  %8416 = vmatmul.mubr.msk.f32.gmra.mxu0 %vm330_vm1, %v13486_v9  ;;  %v8170_v47 = vpop.f32.mrf.mxu1 }
 0x165   : > { %v1607_v61 = vadd.f32 %v8117_v49, %v10165_v36  ;;  %8418 = vmatprep.mubr.msk.f32.mxu0 %vm330_vm1, %v13488_v25  ;;  %v2957_v25 = vrot.slane %v10169_v60, 2 }
 0x166   : > { %v10370_v37 = vpop.f32.mrf.mxu0  ;;  %v10376_v48 = vpop.f32.mrf.mxu1 }
 0x167   : > { %v10372_v2 = vadd.f32 %v8167_v17, %v1607_v61  ;;  %13490 = vst [vmem:[#allocation49_spill] sm:$0xff] %v10376_v48  ;;  %v2959_v58 = vsel %vm1211_vm4, %v2957_v25, %v2958_v13 }
 0x168   : > { %v8120_v63 = vpop.f32.mrf.mxu0  ;;  %8419 = vmatmul.mubr.msk.f32.gmra.mxu0 %vm330_vm1, %v13489_v0  ;;  %v8173_v49 = vpop.f32.mrf.mxu1 }
 0x169   : > { %v1609_v9 = vadd.f32 %v8120_v63, %v10187_v19  ;;  %8421 = vmatprep.mubr.msk.f32.mxu0 %vm330_vm1, %v13491_v10  ;;  %v2960_v63 = vrot.slane %v10185_v18, 2 }
 0x16a   : > { %v10381_v36 = vpop.f32.mrf.mxu0  ;;  %v10389_v0 = vpop.f32.mrf.mxu1 }
 0x16b   : > { %v10385_v17 = vadd.f32 %v8170_v47, %v1609_v9  ;;  %13492 = vst [vmem:[#allocation50_spill] sm:$0xff] %v10389_v0 }
 0x16c   : > { %v8123_v61 = vpop.f32.mrf.mxu0  ;;  %8422 = vmatmul.mubr.msk.f32.gmra.mxu0 %vm330_vm1, %v9852_v5  ;;  %v8176_v60 = vpop.f32.mrf.mxu1 }
 0x16d   : > { %v1611_v19 = vadd.f32 %v8123_v61, %v10203_v16  ;;  %8424 = vmatprep.mubr.msk.f32.mxu0 %vm330_vm1, %v9988_v56  ;;  %v2961_v56 = vsel %vm1211_vm4, %v2958_v13, %v2960_v63 }
 0x16e   : > { %v10395_v10 = vpop.f32.mrf.mxu0  ;;  %v10402_v5 = vpop.f32.mrf.mxu1 }
 0x16f   : > { %13493 = vst [vmem:[#allocation52_spill] sm:$0xff] %v10395_v10  ;;  %v10398_v47 = vadd.f32 %v8173_v49, %v1611_v19  ;;  %13494 = vst [vmem:[#allocation53_spill] sm:$0xff] %v10402_v5 }
 0x170   : > { %v8126_v9 = vpop.f32.mrf.mxu0  ;;  %8425 = vmatmul.mubr.msk.f32.gmra.mxu0 %vm330_vm1, %v10000_v29  ;;  %v8179_v61 = vpop.f32.mrf.mxu1 }
 0x171   : > { %v1613_v16 = vadd.f32 %v8126_v9, %v10217_v35  ;;  %8427 = vmatprep.mubr.msk.f32.mxu0 %vm330_vm1, %v2959_v58 }
 0x172   : > { %v10407_v18 = vpop.f32.mrf.mxu0  ;;  %v10412_v49 = vpop.f32.mrf.mxu1 }
 0x173   : > { %13495 = vst [vmem:[#allocation55_spill] sm:$0xff] %v10407_v18  ;;  %v10409_v0 = vadd.f32 %v8176_v60, %v1613_v16  ;;  %13496 = vst [vmem:[#allocation56_spill] sm:$0xff] %v10412_v49 }
 0x174   : > { %v8129_v25 = vpop.f32.mrf.mxu0  ;;  %8428 = vmatmul.mubr.msk.f32.gmra.mxu0 %vm330_vm1, %v2961_v56  ;;  %v8234_v5 = vpop.f32.mrf.mxu1 }
 0x175   : > { %v1615_v29 = vadd.f32 %v8129_v25, %v10228_v42 }
 0x176   : > { %v10415_v19 = vpop.f32.mrf.mxu0  ;;  %v10419_v9 = vpop.f32.mrf.mxu1 }
 0x177   : > { %13497 = vst [vmem:[#allocation59_spill] sm:$0xff] %v10415_v19  ;;  %v10417_v35 = vadd.f32 %v8179_v61, %v1615_v29  ;;  %13498 = vst [vmem:[#allocation60_spill] sm:$0xff] %v10419_v9 }
 0x178   : > { %v8184_v58 = vpop.f32.mrf.mxu0  ;;  %v8237_v60 = vpop.f32.mrf.mxu1 }
 0x179   : > { %v2121_v13 = vadd.f32 %v8184_v58, %v10244_v11 }
 0x17a   : > { %v10422_v63 = vpop.f32.mrf.mxu0  ;;  %v10426_v48 = vpop.f32.mrf.mxu1 }
 0x17b   : > { %v10424_v16 = vadd.f32 %v8234_v5, %v2121_v13  ;;  %13499 = vst [vmem:[#allocation63_spill] sm:$0xff] %v10426_v48 }
 0x17c   : > { %v8187_v56 = vpop.f32.mrf.mxu0  ;;  %v8240_v49 = vpop.f32.mrf.mxu1 }
 0x17d   : > { %v2123_v42 = vadd.f32 %v8187_v56, %v10256_v8 }
 0x17e   : > { %v10429_v25 = vpop.f32.mrf.mxu0  ;;  %v10433_v19 = vpop.f32.mrf.mxu1 }
 0x17f   : > { %v10431_v61 = vadd.f32 %v8237_v60, %v2123_v42  ;;  %13500 = vst [vmem:[#allocation64_spill] sm:$0xff] %v10433_v19 }
 0x180   : > { %v8190_v29 = vpop.f32.mrf.mxu0  ;;  %v8243_v18 = vpop.f32.mrf.mxu1 }
 0x181   : > { %v2125_v11 = vadd.f32 %v8190_v29, %v10268_v20 }
 0x182   : > { %v10436_v58 = vpop.f32.mrf.mxu0  ;;  %v10440_v10 = vpop.f32.mrf.mxu1 }
 0x183   : > { %13501 = vst [vmem:[#allocation66_spill] sm:$0xff] %v10436_v58  ;;  %v10438_v5 = vadd.f32 %v8240_v49, %v2125_v11  ;;  %13502 = vst [vmem:[#allocation67_spill] sm:$0xff] %v10440_v10 }
 0x184   : > { %v8193_v13 = vpop.f32.mrf.mxu0  ;;  %v8246_v48 = vpop.f32.mrf.mxu1 }
 0x185   : > { %v2127_v8 = vadd.f32 %v8193_v13, %v10280_v62 }
 0x186   : > { %v10443_v56 = vpop.f32.mrf.mxu0  ;;  %v10447_v9 = vpop.f32.mrf.mxu1 }
 0x187   : > { %13503 = vst [vmem:[#allocation68_spill] sm:$0xff] %v10443_v56  ;;  %v10445_v60 = vadd.f32 %v8243_v18, %v2127_v8  ;;  %13504 = vst [vmem:[#allocation39_spill] sm:$0xff] %v10447_v9 }
 0x188   : > { %v8196_v42 = vpop.f32.mrf.mxu0  ;;  %v8249_v19 = vpop.f32.mrf.mxu1 }
 0x189   : > { %v2129_v20 = vadd.f32 %v8196_v42, %v10292_v55 }
 0x18a   : > { %v10450_v29 = vpop.f32.mrf.mxu0  ;;  %v10454_v58 = vpop.f32.mrf.mxu1 }
 0x18b   : > { %13505 = vst [vmem:[#allocation42_spill] sm:$0xff] %v10450_v29  ;;  %v10452_v49 = vadd.f32 %v8246_v48, %v2129_v20  ;;  %13506 = vst [vmem:[#allocation45_spill] sm:$0xff] %v10454_v58 }
 0x18c   : > { %v8199_v11 = vpop.f32.mrf.mxu0  ;;  %v8252_v10 = vpop.f32.mrf.mxu1 }
 0x18d   : > { %v2131_v62 = vadd.f32 %v8199_v11, %v10304_v27 }
 0x18e   : > { %v10457_v13 = vpop.f32.mrf.mxu0  ;;  %v10461_v56 = vpop.f32.mrf.mxu1 }
 0x18f   : > { %13507 = vst [vmem:[#allocation48_spill] sm:$0xff] %v10457_v13  ;;  %v10459_v18 = vadd.f32 %v8249_v19, %v2131_v62  ;;  %13508 = vst [vmem:[#allocation51_spill] sm:$0xff] %v10461_v56 }
 0x190   : > { %v8202_v8 = vpop.f32.mrf.mxu0  ;;  %v8255_v9 = vpop.f32.mrf.mxu1 }
 0x191   : > { %v2133_v55 = vadd.f32 %v8202_v8, %v10316_v32 }
 0x192   : > { %v10464_v42 = vpop.f32.mrf.mxu0  ;;  %v10468_v29 = vpop.f32.mrf.mxu1 }
 0x193   : > { %13509 = vst [vmem:[#allocation54_spill] sm:$0xff] %v10464_v42  ;;  %v10466_v48 = vadd.f32 %v8252_v10, %v2133_v55  ;;  %13510 = vst [vmem:[#allocation57_spill] sm:$0xff] %v10468_v29 }
 0x194   : > { %v8205_v20 = vpop.f32.mrf.mxu0  ;;  %v8258_v58 = vpop.f32.mrf.mxu1 }
 0x195   : > { %v2135_v27 = vadd.f32 %v8205_v20, %v10328_v57 }
 0x196   : > { %v10471_v11 = vpop.f32.mrf.mxu0  ;;  %v10475_v13 = vpop.f32.mrf.mxu1 }
 0x197   : > { %13511 = vst [vmem:[#allocation58_spill] sm:$0xff] %v10471_v11  ;;  %v10473_v19 = vadd.f32 %v8255_v9, %v2135_v27  ;;  %13512 = vst [vmem:[#allocation61_spill] sm:$0xff] %v10475_v13 }
 0x198   : > { %v8208_v62 = vpop.f32.mrf.mxu0  ;;  %v8261_v56 = vpop.f32.mrf.mxu1 }
 0x199   : > { %v2137_v32 = vadd.f32 %v8208_v62, %v10339_v45 }
 0x19a   : > { %v10478_v8 = vpop.f32.mrf.mxu0  ;;  %v10482_v42 = vpop.f32.mrf.mxu1 }
 0x19b   : > { %13513 = vst [vmem:[#allocation62_spill] sm:$0xff] %v10478_v8  ;;  %v10480_v10 = vadd.f32 %v8258_v58, %v2137_v32  ;;  %13514 = vst [vmem:[#allocation65_spill] sm:$0xff] %v10482_v42 }
 0x19c   : > { %v8211_v55 = vpop.f32.mrf.mxu0  ;;  %v8264_v29 = vpop.f32.mrf.mxu1 }
 0x19d   : > { %v2139_v57 = vadd.f32 %v8211_v55, %v10350_v33 }
 0x19e   : > { %v10485_v20 = vpop.f32.mrf.mxu0  ;;  %v10489_v11 = vpop.f32.mrf.mxu1 }
 0x19f   : > { %13515 = vst [vmem:[#allocation69_spill] sm:$0xff] %v10485_v20  ;;  %v10487_v9 = vadd.f32 %v8261_v56, %v2139_v57  ;;  %13516 = vst [vmem:[#allocation70_spill] sm:$0xff] %v10489_v11 }
 0x1a0   : > { %v8214_v27 = vpop.f32.mrf.mxu0  ;;  %v8267_v13 = vpop.f32.mrf.mxu1 }
 0x1a1   : > { %v2141_v45 = vadd.f32 %v8214_v27, %v10361_v14 }
 0x1a2   : > { %v10492_v62 = vpop.f32.mrf.mxu0  ;;  %v10496_v8 = vpop.f32.mrf.mxu1 }
 0x1a3   : > { %13517 = vst [vmem:[#allocation71_spill] sm:$0xff] %v10492_v62  ;;  %v10494_v58 = vadd.f32 %v8264_v29, %v2141_v45  ;;  %13518 = vst [vmem:[#allocation72_spill] sm:$0xff] %v10496_v8 }
 0x1a4   : > { %v8217_v32 = vpop.f32.mrf.mxu0  ;;  %v8270_v42 = vpop.f32.mrf.mxu1 }
 0x1a5   : > { %v2143_v33 = vadd.f32 %v8217_v32, %v10372_v2 }
 0x1a6   : > { %v10499_v55 = vpop.f32.mrf.mxu0  ;;  %v10503_v20 = vpop.f32.mrf.mxu1 }
 0x1a7   : > { %13519 = vst [vmem:[#allocation73_spill] sm:$0xff] %v10499_v55  ;;  %v10501_v56 = vadd.f32 %v8267_v13, %v2143_v33  ;;  %13520 = vst [vmem:[#allocation74_spill] sm:$0xff] %v10503_v20 }
 0x1a8   : > { %v8220_v57 = vpop.f32.mrf.mxu0  ;;  %v8273_v11 = vpop.f32.mrf.mxu1 }
 0x1a9   : > { %v2145_v14 = vadd.f32 %v8220_v57, %v10385_v17 }
 0x1aa   : > { %v10506_v27 = vpop.f32.mrf.mxu0  ;;  %v10510_v62 = vpop.f32.mrf.mxu1 }
 0x1ab   : > { %13521 = vst [vmem:[#allocation75_spill] sm:$0xff] %v10506_v27  ;;  %v10508_v29 = vadd.f32 %v8270_v42, %v2145_v14  ;;  %13522 = vst [vmem:[#allocation76_spill] sm:$0xff] %v10510_v62 }
 0x1ac   : > { %v8223_v45 = vpop.f32.mrf.mxu0  ;;  %v8276_v8 = vpop.f32.mrf.mxu1 }
 0x1ad   : > { %v2147_v2 = vadd.f32 %v8223_v45, %v10398_v47 }
 0x1ae   : > { %v10513_v32 = vpop.f32.mrf.mxu0  ;;  %v10517_v55 = vpop.f32.mrf.mxu1 }
 0x1af   : > { %13523 = vst [vmem:[#allocation77_spill] sm:$0xff] %v10513_v32  ;;  %v10515_v13 = vadd.f32 %v8273_v11, %v2147_v2  ;;  %13524 = vst [vmem:[#allocation78_spill] sm:$0xff] %v10517_v55 }
 0x1b0   : > { %v8226_v33 = vpop.f32.mrf.mxu0  ;;  %v8279_v20 = vpop.f32.mrf.mxu1 }
 0x1b1   : > { %v2149_v17 = vadd.f32 %v8226_v33, %v10409_v0 }
 0x1b2   : > { %v10520_v57 = vpop.f32.mrf.mxu0  ;;  %v10524_v27 = vpop.f32.mrf.mxu1 }
 0x1b3   : > { %13525 = vst [vmem:[#allocation79_spill] sm:$0xff] %v10520_v57  ;;  %v10522_v42 = vadd.f32 %v8276_v8, %v2149_v17  ;;  %13526 = vst [vmem:[#allocation80_spill] sm:$0xff] %v10524_v27 }
 0x1b4   : > { %v8229_v14 = vpop.f32.mrf.mxu0  ;;  %v10529_v62 = vpop.f32.mrf.mxu1 }
 0x1b5   : > { %v2151_v47 = vadd.f32 %v8229_v14, %v10417_v35 }
 0x1b6   : > { %v10527_v45 = vpop.f32.mrf.mxu0  ;;  %v10536_v0 = vpop.f32.mrf.mxu1 }
 0x1b7   : > { %13527 = vst [vmem:[#allocation81_spill] sm:$0xff] %v10527_v45  ;;  %v10531_v11 = vadd.f32 %v8279_v20, %v2151_v47 }
 0x1b8   : > { %v8284_v2 = vpop.f32.mrf.mxu0  ;;  %v10543_v27 = vpop.f32.mrf.mxu1 }
 0x1b9   : > { %v10534_v55 = vadd.f32 %v8284_v2, %v10424_v16  ;;  %13528 = vst [vmem:[#allocation82_spill] sm:$0xff] %v10543_v27 }
 0x1ba   : > { %v10538_v33 = vpop.f32.mrf.mxu0  ;;  %v10550_v47 = vpop.f32.mrf.mxu1 }
 0x1bc   : > { %v8287_v8 = vpop.f32.mrf.mxu0  ;;  %v10554_v45 = vpop.f32.mrf.mxu1 }
 0x1bd   : > { %v10541_v17 = vadd.f32 %v8287_v8, %v10431_v61  ;;  %13531 = vst [vmem:[#allocation85_spill] sm:$0xff] %v10554_v45 }
 0x1be   : > { %v10545_v35 = vpop.f32.mrf.mxu0  ;;  %v10561_v32 = vpop.f32.mrf.mxu1 }
 0x1c0   : > { %v8290_v14 = vpop.f32.mrf.mxu0 }
 0x1c1   : > { %v10548_v20 = vadd.f32 %v8290_v14, %v10438_v5 }
 0x1c2   : > { %v10552_v16 = vpop.f32.mrf.mxu0 }
 0x1c3   : > { %13529 = vst [vmem:[#allocation83_spill] sm:$0xff] %v10548_v20  ;;  %13530 = vst [vmem:[#allocation84_spill] sm:$0xff] %v10552_v16  ;;  %v10568_v20 = vpop.f32.mrf.mxu1 }
 0x1c4   : > { %v8293_v2 = vpop.f32.mrf.mxu0 }
 0x1c5   : > { %v10557_v57 = vadd.f32 %v8293_v2, %v10445_v60  ;;  %v10575_v2 = vpop.f32.mrf.mxu1 }
 0x1c6   : > { %v10559_v61 = vpop.f32.mrf.mxu0 }
 0x1c7   : > { %13532 = vst [vmem:[#allocation86_spill] sm:$0xff] %v10557_v57  ;;  %13533 = vst [vmem:[#allocation87_spill] sm:$0xff] %v10559_v61 }
 0x1c8   : > { %v8296_v8 = vpop.f32.mrf.mxu0 }
 0x1c9   : > { %v10564_v27 = vadd.f32 %v8296_v8, %v10452_v49  ;;  %v10582_v8 = vpop.f32.mrf.mxu1 }
 0x1ca   : > { %v10566_v5 = vpop.f32.mrf.mxu0 }
 0x1cb   : > { %13534 = vst [vmem:[#allocation88_spill] sm:$0xff] %v10564_v27  ;;  %13535 = vst [vmem:[#allocation89_spill] sm:$0xff] %v10566_v5 }
 0x1cc   : > { %v8299_v14 = vpop.f32.mrf.mxu0 }
 0x1cd   : > { %v10571_v16 = vadd.f32 %v8299_v14, %v10459_v18  ;;  %v10589_v14 = vpop.f32.mrf.mxu1 }
 0x1ce   : > { %v10573_v45 = vpop.f32.mrf.mxu0 }
 0x1cf   : > { %13536 = vst [vmem:[#allocation90_spill] sm:$0xff] %v10571_v16  ;;  %13537 = vst [vmem:[#allocation91_spill] sm:$0xff] %v10573_v45 }
 0x1d0   : > { %v8302_v60 = vpop.f32.mrf.mxu0 }
 0x1d1   : > { %v10578_v57 = vadd.f32 %v8302_v60, %v10466_v48  ;;  %v10596_v60 = vpop.f32.mrf.mxu1 }
 0x1d2   : > { %v10580_v61 = vpop.f32.mrf.mxu0 }
 0x1d3   : > { %13538 = vst [vmem:[#allocation92_spill] sm:$0xff] %v10578_v57  ;;  %13539 = vst [vmem:[#allocation93_spill] sm:$0xff] %v10580_v61 }
 0x1d4   : > { %v8305_v49 = vpop.f32.mrf.mxu0 }
 0x1d5   : > { %v10585_v27 = vadd.f32 %v8305_v49, %v10473_v19  ;;  %v10603_v49 = vpop.f32.mrf.mxu1 }
 0x1d6   : > { %v10587_v5 = vpop.f32.mrf.mxu0 }
 0x1d7   : > { %13540 = vst [vmem:[#allocation94_spill] sm:$0xff] %v10585_v27  ;;  %13541 = vst [vmem:[#allocation95_spill] sm:$0xff] %v10587_v5 }
 0x1d8   : > { %v8308_v18 = vpop.f32.mrf.mxu0 }
 0x1d9   : > { %v10592_v16 = vadd.f32 %v8308_v18, %v10480_v10  ;;  %v10610_v18 = vpop.f32.mrf.mxu1 }
 0x1da   : > { %v10594_v45 = vpop.f32.mrf.mxu0 }
 0x1db   : > { %13542 = vst [vmem:[#allocation96_spill] sm:$0xff] %v10592_v16  ;;  %13543 = vst [vmem:[#allocation97_spill] sm:$0xff] %v10594_v45 }
 0x1dc   : > { %v8311_v48 = vpop.f32.mrf.mxu0 }
 0x1dd   : > { %v10599_v57 = vadd.f32 %v8311_v48, %v10487_v9  ;;  %v10617_v48 = vpop.f32.mrf.mxu1 }
 0x1de   : > { %v10601_v61 = vpop.f32.mrf.mxu0 }
 0x1df   : > { %13544 = vst [vmem:[#allocation98_spill] sm:$0xff] %v10599_v57  ;;  %13545 = vst [vmem:[#allocation99_spill] sm:$0xff] %v10601_v61 }
 0x1e0   : > { %v8314_v19 = vpop.f32.mrf.mxu0 }
 0x1e1   : > { %v10606_v27 = vadd.f32 %v8314_v19, %v10494_v58  ;;  %v1850_v19 = vadd.f32 %v10236_v21, %v10242_v40  ;;  %v1153_v21 = vadd.f32 %v10149_v34, %v10155_v53  ;;  %v1163_v40 = vadd.f32 %v10163_v3, %v10173_v39 }
 0x1e2   : > { %v10608_v5 = vpop.f32.mrf.mxu0  ;;  %v1203_v3 = vadd.f32 %v10226_v50, %v10232_v15  ;;  %v1854_v39 = vadd.f32 %v10260_v6, %v10266_v46  ;;  %v1858_v15 = vadd.f32 %v10284_v30, %v10290_v24  ;;  %v13550_v6 = vld [vmem:[#allocation29_spill] sm:$0xff]  ;;  %v13559_v24 = vld [vmem:[#allocation66_spill] sm:$0xff] }
 0x1e3   : > { %13546 = vst [vmem:[#allocation100_spill] sm:$0xff] %v10606_v27  ;;  %13547 = vst [vmem:[#allocation101_spill] sm:$0xff] %v10608_v5  ;;  %v10626_v27 = vpop.f32.mrf.mxu1 }
 0x1e4   : > { %v8317_v10 = vpop.f32.mrf.mxu0 }
 0x1e5   : > { %v10613_v16 = vadd.f32 %v8317_v10, %v10501_v56  ;;  %v1133_v56 = vadd.f32 %v10121_v26, %v10127_v1  ;;  %v1143_v10 = vadd.f32 %v10135_v22, %v10141_v31  ;;  %v2120_v26 = vadd.f32 %v10422_v63, %v1850_v19  ;;  %v13552_v63 = vld [vmem:[#allocation38_spill] sm:$0xff]  ;;  %v13557_v19 = vld [vmem:[#allocation52_spill] sm:$0xff] }
 0x1e6   : > { %v10615_v45 = vpop.f32.mrf.mxu0  ;;  %v1183_v1 = vadd.f32 %v10200_v28, %v10207_v4  ;;  %v1193_v22 = vadd.f32 %v10215_v59, %v10221_v12  ;;  %v1852_v31 = vadd.f32 %v10248_v43, %v10254_v38  ;;  %v1604_v59 = vadd.f32 %v10359_v44, %v1153_v21  ;;  %v13549_v38 = vld [vmem:[#allocation30_spill] sm:$0xff]  ;;  %v13554_v44 = vld [vmem:[#allocation41_spill] sm:$0xff] }
 0x1e7   : > { %13548 = vst [vmem:[#allocation102_spill] sm:$0xff] %v10613_v16  ;;  %v1600_v34 = vadd.f32 %v10337_v51, %v1133_v56  ;;  %v1602_v4 = vadd.f32 %v10348_v54, %v1143_v10  ;;  %v1606_v12 = vadd.f32 %v10370_v37, %v1163_v40  ;;  %v1860_v46 = vadd.f32 %v13550_v6, %v13549_v38  ;;  %v13553_v54 = vld [vmem:[#allocation35_spill] sm:$0xff] }
 0x1e8   : > { %v8320_v9 = vpop.f32.mrf.mxu0  ;;  %v2122_v43 = vadd.f32 %v10429_v25, %v1852_v31  ;;  %v1610_v56 = vadd.f32 %v13557_v19, %v1183_v1  ;;  %v2124_v21 = vadd.f32 %v13559_v24, %v1854_v39  ;;  %v13562_v6 = vld [vmem:[#allocation47_spill] sm:$0xff]  ;;  %v13571_v24 = vld [vmem:[#allocation64_spill] sm:$0xff] }
 0x1e9   : > { %v10620_v57 = vadd.f32 %v8320_v9, %v10508_v29  ;;  %v321_v29 = vld [vmem:[%s13137_s2 + $0x4] sm:$0xf]  ;;  %v13555_v9 = vld [vmem:[#allocation40_spill] sm:$0xff]  ;;  %v13563_v1 = vld [vmem:[#allocation63_spill] sm:$0xff] }
 0x1ea   : > { %v10622_v61 = vpop.f32.mrf.mxu0  ;;  %8430 = vmatprep.subr.msk.mxu1 %vm690_vm0, %v321_v29  ;;  %v1864_v37 = vadd.f32 %v13555_v9, %v13554_v44 }
 0x1eb   : > { %8431 = vmatpush3.msk.msra.mxu1 %vm690_vm0, %v321_v29  ;;  %v13558_v29 = vld [vmem:[#allocation55_spill] sm:$0xff] }
 0x1ec   : > { %v8323_v58 = vpop.f32.mrf.mxu0  ;;  %v1612_v30 = vadd.f32 %v13558_v29, %v1193_v22  ;;  %v13564_v22 = vld [vmem:[#allocation49_spill] sm:$0xff] }
 0x1ed   : > { %v10629_v5 = vadd.f32 %v8323_v58, %v10515_v13  ;;  %v1173_v13 = vadd.f32 %v10181_v52, %v10191_v23  ;;  %v1856_v52 = vadd.f32 %v10272_v7, %v10278_v41  ;;  %v10662_v23 = vpop.f32.mrf.mxu1  ;;  %v13551_v41 = vld [vmem:[#allocation60_spill] sm:$0xff]  ;;  %v13556_v58 = vld [vmem:[#allocation43_spill] sm:$0xff]  ;;  %v13570_v29 = vld [vmem:[#allocation53_spill] sm:$0xff] }
 0x1ee   : > { %v10635_v16 = vpop.f32.mrf.mxu0  ;;  %v2389_v51 = vadd.f32 %v13551_v41, %v2120_v26  ;;  %v1866_v25 = vadd.f32 %v13556_v58, %v1600_v34  ;;  %v13560_v26 = vld [vmem:[#allocation44_spill] sm:$0xff]  ;;  %v10696_v34 = vadd.f32 %v13562_v6, %v1606_v12  ;;  %v2391_v41 = vadd.f32 %v13563_v1, %v2122_v43  ;;  %v13574_v6 = vld [vmem:[#allocation62_spill] sm:$0xff]  ;;  %v13575_v1 = vld [vmem:[#allocation69_spill] sm:$0xff] }
 0x1ef   : > { %v1608_v7 = vadd.f32 %v10381_v36, %v1173_v13  ;;  %v10688_v36 = vpop.f32.mrf.mxu1  ;;  %v1868_v31 = vadd.f32 %v13560_v26, %v1602_v4  ;;  %v13567_v4 = vld [vmem:[#allocation50_spill] sm:$0xff]  ;;  %v13569_v58 = vld [vmem:[#allocation48_spill] sm:$0xff] }
 0x1f0   : > { %v8326_v53 = vpop.f32.mrf.mxu0  ;;  %v2655_v40 = vadd.f32 %v10538_v33, %v2389_v51  ;;  %v13565_v33 = vld [vmem:[#allocation59_spill] sm:$0xff]  ;;  %v10709_v9 = vadd.f32 %v13567_v4, %v1610_v56  ;;  %v2130_v19 = vadd.f32 %v13569_v58, %v1860_v46  ;;  %v2657_v43 = vadd.f32 %v10545_v35, %v2391_v41 }
 0x1f1   : > { %v10665_v28 = vadd.f32 %v8326_v53, %v10522_v42  ;;  %v1862_v42 = vadd.f32 %v13553_v54, %v13552_v63  ;;  %v13561_v53 = vld [vmem:[#allocation46_spill] sm:$0xff]  ;;  %v10702_v39 = vadd.f32 %v13564_v22, %v1608_v7  ;;  %v1614_v51 = vadd.f32 %v13565_v33, %v1203_v3  ;;  %v13566_v54 = vld [vmem:[#allocation68_spill] sm:$0xff]  ;;  %v10719_v26 = vpop.f32.mrf.mxu1  ;;  %v13577_v33 = vld [vmem:[#allocation67_spill] sm:$0xff] }
 0x1f2   : > { %v10671_v50 = vpop.f32.mrf.mxu0  ;;  %v1870_v38 = vadd.f32 %v13561_v53, %v1604_v59  ;;  %v2126_v44 = vadd.f32 %v13566_v54, %v1856_v52  ;;  %v13568_v59 = vld [vmem:[#allocation42_spill] sm:$0xff]  ;;  %v10715_v7 = vadd.f32 %v13570_v29, %v1612_v30  ;;  %v2393_v3 = vadd.f32 %v13571_v24, %v2124_v21  ;;  %v13576_v22 = vld [vmem:[#allocation56_spill] sm:$0xff]  ;;  %v13584_v24 = vld [vmem:[#allocation61_spill] sm:$0xff] }
 0x1f3   : > { %v2128_v12 = vadd.f32 %v13568_v59, %v1858_v15  ;;  %v2925_v52 = vadd.f32 %v10536_v0, %v2655_v40  ;;  %v13573_v53 = vld [vmem:[#allocation58_spill] sm:$0xff]  ;;  %v2136_v46 = vadd.f32 %v13574_v6, %v1866_v25  ;;  %v2138_v35 = vadd.f32 %v13575_v1, %v1868_v31  ;;  %v13581_v25 = vld [vmem:[#allocation84_spill] sm:$0xff]  ;;  %v13586_v6 = vld [vmem:[#allocation83_spill] sm:$0xff] }
 0x1f4   : > { %v8329_v10 = vpop.f32.mrf.mxu0  ;;  %v2134_v15 = vadd.f32 %v13573_v53, %v1864_v37  ;;  %v10728_v30 = vadd.f32 %v13576_v22, %v1614_v51  ;;  %v2395_v21 = vadd.f32 %v13577_v33, %v2126_v44  ;;  %v13578_v0 = vld [vmem:[#allocation82_spill] sm:$0xff]  ;;  %v2927_v37 = vadd.f32 %v10550_v47, %v2657_v43  ;;  %v13583_v47 = vld [vmem:[#allocation57_spill] sm:$0xff] }
 0x1f5   : > { %v10691_v13 = vadd.f32 %v8329_v10, %v10531_v11  ;;  %v2926_v11 = vadd.f32 %v10529_v62, %v10534_v55  ;;  %v13572_v55 = vld [vmem:[#allocation54_spill] sm:$0xff]  ;;  %v2928_v40 = vadd.f32 %v13578_v0, %v10541_v17  ;;  %v2659_v58 = vadd.f32 %v13581_v25, %v2393_v3  ;;  %v13587_v1 = vld [vmem:[#allocation85_spill] sm:$0xff]  ;;  %v13588_v0 = vld [vmem:[#allocation87_spill] sm:$0xff] }
 0x1f6   : > { %v10699_v63 = vpop.f32.mrf.mxu0  ;;  %v2132_v56 = vadd.f32 %v13572_v55, %v1862_v42  ;;  %v13580_v42 = vld [vmem:[#allocation45_spill] sm:$0xff]  ;;  %v10753_v43 = vadd.f32 %v13583_v47, %v2134_v15  ;;  %v10756_v3 = vadd.f32 %v13584_v24, %v2136_v46 }
 0x1f7   : > { %v2399_v59 = vadd.f32 %v13580_v42, %v2130_v19  ;;  %v2929_v15 = vadd.f32 %v10561_v32, %v2659_v58  ;;  %v320_v42 = vld [vmem:[%s13137_s2] sm:$0xf]  ;;  %v13589_v58 = vld [vmem:[#allocation71_spill] sm:$0xff] }
 0x1f8   : > { %v8384_v10 = vpop.f32.mrf.mxu0  ;;  %8480 = vmatprep.subr.msk.mxu0 %vm690_vm0, %v320_v42 }
 0x1f9   : > { %v10721_v62 = vadd.f32 %v8384_v10, %v2926_v11  ;;  %v13579_v11 = vld [vmem:[#allocation39_spill] sm:$0xff]  ;;  %v10739_v10 = vpop.f32.mrf.mxu1  ;;  %8481 = vmatpush3.msk.msra.mxu0 %vm690_vm0, %v320_v42 }
 0x1fa   : > { %v3035_v41 = vpop.f32.mrf.mxu0  ;;  %v2397_v4 = vadd.f32 %v13579_v11, %v2128_v12  ;;  %v13582_v12 = vld [vmem:[#allocation51_spill] sm:$0xff] }
 0x1fb   : > { %v10733_v54 = vadd.f32 %v3035_v41, %v2925_v52  ;;  %v3297_v51 = vmul.f32 %v10721_v62, %v10721_v62  ;;  %v10750_v19 = vadd.f32 %v13582_v12, %v2132_v56  ;;  %v13585_v52 = vld [vmem:[#allocation65_spill] sm:$0xff]  ;;  %v2930_v41 = vadd.f32 %v13587_v1, %v13586_v6  ;;  %v10775_v25 = vpop.f32.mrf.mxu1 }
 0x1fc   : > { %v8387_v31 = vpop.f32.mrf.mxu0  ;;  %v10759_v55 = vadd.f32 %v13585_v52, %v2138_v35  ;;  %v3227_v22 = vsel %vm330_vm1, %v10721_v62, 0.0 }
 0x1fd   : > { %v3226_v44 = vsel %vm330_vm1, %v10733_v54, 0.0  ;;  %v3296_v17 = vmul.f32 %v10733_v54, %v10733_v54  ;;  %v10747_v29 = vadd.f32 %v8387_v31, %v2928_v40  ;;  %v2661_v40 = vadd.f32 %v13588_v0, %v2395_v21 }
 0x1fe   : > { %v3045_v53 = vpop.f32.mrf.mxu0  ;;  %v3228_v46 = vadd.f32 %v3227_v22, %v3226_v44  ;;  %v3329_v31 = vsel %vm330_vm1, %v3297_v51, 0.0  ;;  %v2140_v44 = vadd.f32 %v13589_v58, %v1870_v38  ;;  %v13591_v51 = vld [vmem:[#allocation89_spill] sm:$0xff] }
 0x1ff   : > { %v3328_v33 = vsel %vm330_vm1, %v3296_v17, 0.0  ;;  %v10766_v56 = vadd.f32 %v3045_v53, %v2927_v37  ;;  %v3299_v35 = vmul.f32 %v10747_v29, %v10747_v29  ;;  %v13590_v17 = vld [vmem:[#allocation86_spill] sm:$0xff]  ;;  %v2663_v53 = vadd.f32 %v13591_v51, %v2397_v4 }
 0x200   : > { %v8390_v11 = vpop.f32.mrf.mxu0  ;;  %v2932_v12 = vadd.f32 %v10568_v20, %v13590_v17  ;;  %v3330_v47 = vadd.f32 %v3329_v31, %v3328_v33  ;;  %v3231_v6 = vsel %vm330_vm1, %v10747_v29, 0.0  ;;  %v2931_v22 = vadd.f32 %v10575_v2, %v2661_v40  ;;  %v13592_v31 = vld [vmem:[#allocation70_spill] sm:$0xff]  ;;  %v13593_v40 = vld [vmem:[#allocation88_spill] sm:$0xff] }
 0x201   : > { %v3229_v37 = vsel %vm330_vm1, %v10766_v56, 0.0  ;;  %v3298_v32 = vmul.f32 %v10766_v56, %v10766_v56  ;;  %v10782_v21 = vadd.f32 %v8390_v11, %v2930_v41  ;;  %v3333_v38 = vsel %vm330_vm1, %v3299_v35, 0.0 }
 0x202   : > { %v3230_v24 = vadd.f32 %v3229_v37, %v3228_v46  ;;  %v3055_v52 = vpop.f32.mrf.mxu0  ;;  %v10797_v46 = vpop.f32.mrf.mxu1  ;;  %v10808_v2 = vadd.f32 %v13592_v31, %v2140_v44  ;;  %v2934_v35 = vadd.f32 %v10582_v8, %v13593_v40  ;;  %v2933_v17 = vadd.f32 %v10589_v14, %v2663_v53 }
 0x203   : > { %v3331_v1 = vsel %vm330_vm1, %v3298_v32, 0.0  ;;  %v10793_v41 = vadd.f32 %v3055_v52, %v2929_v15  ;;  %v3301_v11 = vmul.f32 %v10782_v21, %v10782_v21 }
 0x204   : > { %v3332_v0 = vadd.f32 %v3331_v1, %v3330_v47  ;;  %v3232_v20 = vadd.f32 %v3231_v6, %v3230_v24  ;;  %v8393_v33 = vpop.f32.mrf.mxu0  ;;  %v3235_v47 = vsel %vm330_vm1, %v10782_v21, 0.0 }
 0x205   : > { %v3233_v4 = vsel %vm330_vm1, %v10793_v41, 0.0  ;;  %v3300_v42 = vmul.f32 %v10793_v41, %v10793_v41  ;;  %v10805_v15 = vadd.f32 %v8393_v33, %v2932_v12  ;;  %v13594_v12 = vld [vmem:[#allocation91_spill] sm:$0xff]  ;;  %v13596_v33 = vld [vmem:[#allocation90_spill] sm:$0xff] }
 0x206   : > { %v3234_v37 = vadd.f32 %v3233_v4, %v3232_v20  ;;  %v3334_v32 = vadd.f32 %v3333_v38, %v3332_v0  ;;  %v3065_v58 = vpop.f32.mrf.mxu0  ;;  %v2665_v51 = vadd.f32 %v13594_v12, %v2399_v59  ;;  %v10821_v20 = vpop.f32.mrf.mxu1  ;;  %v3337_v38 = vsel %vm330_vm1, %v3301_v11, 0.0  ;;  %v13595_v59 = vld [vmem:[#allocation73_spill] sm:$0xff] }
 0x207   : > { %v3335_v24 = vsel %vm330_vm1, %v3300_v42, 0.0  ;;  %v10816_v52 = vadd.f32 %v3065_v58, %v2931_v22  ;;  %v3303_v44 = vmul.f32 %v10805_v15, %v10805_v15  ;;  %v2142_v0 = vadd.f32 %v13595_v59, %v10696_v34 }
 0x208   : > { %v3336_v6 = vadd.f32 %v3335_v24, %v3334_v32  ;;  %v3236_v1 = vadd.f32 %v3235_v47, %v3234_v37  ;;  %v8396_v8 = vpop.f32.mrf.mxu0  ;;  %v2936_v4 = vadd.f32 %v10596_v60, %v13596_v33  ;;  %v13597_v37 = vld [vmem:[#allocation93_spill] sm:$0xff]  ;;  %v3239_v32 = vsel %vm330_vm1, %v10805_v15, 0.0 }
 0x209   : > { %v3237_v14 = vsel %vm330_vm1, %v10816_v52, 0.0  ;;  %v3302_v53 = vmul.f32 %v10816_v52, %v10816_v52  ;;  %v10828_v22 = vadd.f32 %v8396_v8, %v2934_v35  ;;  %v2667_v11 = vadd.f32 %v13597_v37, %v10750_v19  ;;  %v10848_v19 = vpop.f32.mrf.mxu1  ;;  %v13600_v37 = vld [vmem:[#allocation95_spill] sm:$0xff] }
 0x20a   : > { %v3238_v42 = vadd.f32 %v3237_v14, %v3236_v1  ;;  %v3338_v31 = vadd.f32 %v3337_v38, %v3336_v6  ;;  %v3075_v40 = vpop.f32.mrf.mxu0  ;;  %v2935_v35 = vadd.f32 %v10603_v49, %v2665_v51  ;;  %v3341_v34 = vsel %vm330_vm1, %v3303_v44, 0.0  ;;  %v10846_v6 = vld [vmem:[%s13137_s2 + $0x8] sm:$0xf]  ;;  %v13598_v44 = vld [vmem:[#allocation72_spill] sm:$0xff] }
 0x20b   : > { %v3339_v58 = vsel %vm330_vm1, %v3302_v53, 0.0  ;;  %v10839_v47 = vadd.f32 %v3075_v40, %v2933_v17  ;;  %v3305_v1 = vmul.f32 %v10828_v22, %v10828_v22  ;;  %8530 = vmatprep.subr.msk.mxu1 %vm690_vm0, %v10846_v6  ;;  %v10861_v8 = vadd.f32 %v13598_v44, %v2142_v0  ;;  %v13599_v38 = vld [vmem:[#allocation92_spill] sm:$0xff] }
 0x20c   : > { %v3340_v24 = vadd.f32 %v3339_v58, %v3338_v31  ;;  %v3240_v12 = vadd.f32 %v3239_v32, %v3238_v42  ;;  %v8399_v60 = vpop.f32.mrf.mxu0  ;;  %v2938_v14 = vadd.f32 %v10610_v18, %v13599_v38  ;;  %v2937_v42 = vadd.f32 %v10617_v48, %v2667_v11 }
 0x20d   : > { %v3241_v17 = vsel %vm330_vm1, %v10839_v47, 0.0  ;;  %v3304_v49 = vmul.f32 %v10839_v47, %v10839_v47  ;;  %v10856_v51 = vadd.f32 %v8399_v60, %v2936_v4  ;;  %v3243_v31 = vsel %vm330_vm1, %v10828_v22, 0.0 }
 0x20e   : > { %v3242_v53 = vadd.f32 %v3241_v17, %v3240_v12  ;;  %v3342_v59 = vadd.f32 %v3341_v34, %v3340_v24  ;;  %v3085_v33 = vpop.f32.mrf.mxu0  ;;  %v2669_v32 = vadd.f32 %v13600_v37, %v10753_v43  ;;  %v10875_v34 = vpop.f32.mrf.mxu1  ;;  %v3345_v48 = vsel %vm330_vm1, %v3305_v1, 0.0  ;;  %v13601_v43 = vld [vmem:[#allocation75_spill] sm:$0xff]  ;;  %v13602_v17 = vld [vmem:[#allocation94_spill] sm:$0xff] }
 0x20f   : > { %v3343_v4 = vsel %vm330_vm1, %v3304_v49, 0.0  ;;  %v10869_v40 = vadd.f32 %v3085_v33, %v2935_v35  ;;  %v3307_v58 = vmul.f32 %v10856_v51, %v10856_v51  ;;  %v2144_v60 = vadd.f32 %v13601_v43, %v10702_v39 }
 0x210   : > { %v3344_v0 = vadd.f32 %v3343_v4, %v3342_v59  ;;  %v3244_v18 = vadd.f32 %v3243_v31, %v3242_v53  ;;  %v8402_v12 = vpop.f32.mrf.mxu0  ;;  %v2940_v49 = vadd.f32 %v10626_v27, %v13602_v17  ;;  %v13603_v59 = vld [vmem:[#allocation97_spill] sm:$0xff]  ;;  %v3247_v33 = vsel %vm330_vm1, %v10856_v51, 0.0 }
 0x211   : > { %v3245_v11 = vsel %vm330_vm1, %v10869_v40, 0.0  ;;  %v3306_v35 = vmul.f32 %v10869_v40, %v10869_v40  ;;  %v10882_v24 = vadd.f32 %v8402_v12, %v2938_v14  ;;  %v2671_v1 = vadd.f32 %v13603_v59, %v10756_v3 }
 0x212   : > { %v3246_v44 = vadd.f32 %v3245_v11, %v3244_v18  ;;  %v3346_v38 = vadd.f32 %v3345_v48, %v3344_v0  ;;  %v3095_v53 = vpop.f32.mrf.mxu0  ;;  %v2939_v14 = vadd.f32 %v10662_v23, %v2669_v32  ;;  %v3349_v39 = vsel %vm330_vm1, %v3307_v58, 0.0  ;;  %v10897_v18 = vpop.f32.mrf.mxu1  ;;  %v13604_v11 = vld [vmem:[#allocation74_spill] sm:$0xff]  ;;  %v13605_v32 = vld [vmem:[#allocation96_spill] sm:$0xff] }
 0x213   : > { %v3347_v31 = vsel %vm330_vm1, %v3306_v35, 0.0  ;;  %v10893_v4 = vadd.f32 %v3095_v53, %v2937_v42  ;;  %v3309_v0 = vmul.f32 %v10882_v24, %v10882_v24  ;;  %v2413_v23 = vadd.f32 %v13604_v11, %v2144_v60 }
 0x214   : > { %v3348_v37 = vadd.f32 %v3347_v31, %v3346_v38  ;;  %v3248_v12 = vadd.f32 %v3247_v33, %v3246_v44  ;;  %v8405_v27 = vpop.f32.mrf.mxu0  ;;  %v2942_v58 = vadd.f32 %v10688_v36, %v13605_v32  ;;  %v2941_v44 = vadd.f32 %v10719_v26, %v2671_v1 }
 0x215   : > { %v3249_v3 = vsel %vm330_vm1, %v10893_v4, 0.0  ;;  %v3308_v48 = vmul.f32 %v10893_v4, %v10893_v4  ;;  %v10905_v42 = vadd.f32 %v8405_v27, %v2940_v49  ;;  %v3251_v38 = vsel %vm330_vm1, %v10882_v24, 0.0  ;;  %v13606_v49 = vld [vmem:[#allocation99_spill] sm:$0xff] }
 0x216   : > { %v3250_v35 = vadd.f32 %v3249_v3, %v3248_v12  ;;  %v3350_v43 = vadd.f32 %v3349_v39, %v3348_v37  ;;  %v3105_v17 = vpop.f32.mrf.mxu0  ;;  %v2673_v33 = vadd.f32 %v13606_v49, %v10759_v55  ;;  %v10920_v39 = vpop.f32.mrf.mxu1  ;;  %v3353_v26 = vsel %vm330_vm1, %v3309_v0, 0.0  ;;  %v13607_v55 = vld [vmem:[#allocation77_spill] sm:$0xff]  ;;  %v13608_v3 = vld [vmem:[#allocation98_spill] sm:$0xff] }
 0x217   : > { %v3351_v53 = vsel %vm330_vm1, %v3308_v48, 0.0  ;;  %v10914_v59 = vadd.f32 %v3105_v17, %v2939_v14  ;;  %v3311_v60 = vmul.f32 %v10905_v42, %v10905_v42  ;;  %v2146_v27 = vadd.f32 %v13607_v55, %v10709_v9 }
 0x218   : > { %v3352_v31 = vadd.f32 %v3351_v53, %v3350_v43  ;;  %v3252_v36 = vadd.f32 %v3251_v38, %v3250_v35  ;;  %v8408_v12 = vpop.f32.mrf.mxu0  ;;  %v2944_v48 = vadd.f32 %v10739_v10, %v13608_v3  ;;  %v13609_v43 = vld [vmem:[#allocation101_spill] sm:$0xff]  ;;  %v3255_v17 = vsel %vm330_vm1, %v10905_v42, 0.0 }
 0x219   : > { %v3253_v1 = vsel %vm330_vm1, %v10914_v59, 0.0  ;;  %v3310_v14 = vmul.f32 %v10914_v59, %v10914_v59  ;;  %v10927_v37 = vadd.f32 %v8408_v12, %v2942_v58  ;;  %v2675_v0 = vadd.f32 %v13609_v43, %v10808_v2 }
 0x21a   : > { %v3254_v11 = vadd.f32 %v3253_v1, %v3252_v36  ;;  %v3354_v32 = vadd.f32 %v3353_v26, %v3352_v31  ;;  %v3115_v35 = vpop.f32.mrf.mxu0  ;;  %v2943_v58 = vadd.f32 %v10775_v25, %v2673_v33  ;;  %v3357_v9 = vsel %vm330_vm1, %v3311_v60, 0.0  ;;  %v10942_v36 = vpop.f32.mrf.mxu1  ;;  %v13610_v1 = vld [vmem:[#allocation76_spill] sm:$0xff] }
 0x21b   : > { %v3355_v38 = vsel %vm330_vm1, %v3310_v14, 0.0  ;;  %v10938_v53 = vadd.f32 %v3115_v35, %v2941_v44  ;;  %v3313_v31 = vmul.f32 %v10927_v37, %v10927_v37  ;;  %v2415_v25 = vadd.f32 %v13610_v1, %v2146_v27  ;;  %v13611_v33 = vld [vmem:[#allocation100_spill] sm:$0xff] }
 0x21c   : > { %v3356_v49 = vadd.f32 %v3355_v38, %v3354_v32  ;;  %v3256_v12 = vadd.f32 %v3255_v17, %v3254_v11  ;;  %v8411_v10 = vpop.f32.mrf.mxu0  ;;  %v2946_v60 = vadd.f32 %v10797_v46, %v13611_v33  ;;  %v2945_v11 = vadd.f32 %v10821_v20, %v2675_v0 }
 0x21d   : > { %v3257_v2 = vsel %vm330_vm1, %v10938_v53, 0.0  ;;  %v3312_v26 = vmul.f32 %v10938_v53, %v10938_v53  ;;  %v10950_v44 = vadd.f32 %v8411_v10, %v2944_v48  ;;  %v3259_v32 = vsel %vm330_vm1, %v10927_v37, 0.0 }
 0x21e   : > { %v3258_v14 = vadd.f32 %v3257_v2, %v3256_v12  ;;  %v3358_v55 = vadd.f32 %v3357_v9, %v3356_v49  ;;  %v3125_v3 = vpop.f32.mrf.mxu0  ;;  %v2677_v48 = vadd.f32 %v10615_v45, %v10861_v8  ;;  %v2896_v9 = vpop.f32.mrf.mxu1  ;;  %v3361_v49 = vsel %vm330_vm1, %v3313_v31, 0.0  ;;  %v13612_v12 = vld [vmem:[#allocation79_spill] sm:$0xff]  ;;  %v13613_v8 = vld [vmem:[#allocation102_spill] sm:$0xff] }
 0x21f   : > { %v3359_v35 = vsel %vm330_vm1, %v3312_v26, 0.0  ;;  %v10959_v43 = vadd.f32 %v3125_v3, %v2943_v58  ;;  %v3315_v27 = vmul.f32 %v10950_v44, %v10950_v44  ;;  %v2148_v45 = vadd.f32 %v13612_v12, %v10715_v7 }
 0x220   : > { %v3360_v17 = vadd.f32 %v3359_v35, %v3358_v55  ;;  %v3260_v46 = vadd.f32 %v3259_v32, %v3258_v14  ;;  %v8414_v38 = vpop.f32.mrf.mxu0  ;;  %v2948_v10 = vadd.f32 %v10848_v19, %v13613_v8  ;;  %v2679_v33 = vadd.f32 %v10622_v61, %v2413_v23  ;;  %v8376_v19 = vpop.f32.mrf.mxu1 }
 0x221   : > { %v3261_v20 = vsel %vm330_vm1, %v10959_v43, 0.0  ;;  %v3314_v0 = vmul.f32 %v10959_v43, %v10959_v43  ;;  %v10970_v58 = vadd.f32 %v8414_v38, %v2946_v60  ;;  %v3263_v31 = vsel %vm330_vm1, %v10950_v44, 0.0 }
 0x222   : > { %v3262_v2 = vadd.f32 %v3261_v20, %v3260_v46  ;;  %v3362_v26 = vadd.f32 %v3361_v49, %v3360_v17  ;;  %v3135_v1 = vpop.f32.mrf.mxu0  ;;  %v2947_v60 = vadd.f32 %v10875_v34, %v2677_v48  ;;  %v3365_v3 = vsel %vm330_vm1, %v3315_v27, 0.0 }
 0x223   : > { %v3363_v14 = vsel %vm330_vm1, %v3314_v0, 0.0  ;;  %v10980_v55 = vadd.f32 %v3135_v1, %v2945_v11  ;;  %v3317_v17 = vmul.f32 %v10970_v58, %v10970_v58  ;;  %v13614_v11 = vld [vmem:[#allocation78_spill] sm:$0xff]  ;;  %v2950_v34 = vadd.f32 %v10897_v18, %v10620_v57  ;;  %v2906_v18 = vpop.f32.mrf.mxu1 }
 0x224   : > { %v3364_v7 = vadd.f32 %v3363_v14, %v3362_v26  ;;  %v3264_v32 = vadd.f32 %v3263_v31, %v3262_v2  ;;  %v8417_v35 = vpop.f32.mrf.mxu0  ;;  %v2417_v38 = vadd.f32 %v13614_v11, %v2148_v45  ;;  %v2949_v20 = vadd.f32 %v10920_v39, %v2679_v33  ;;  %v13615_v14 = vld [vmem:[#allocation81_spill] sm:$0xff] }
 0x225   : > { %v3265_v61 = vsel %vm330_vm1, %v10980_v55, 0.0  ;;  %v3316_v23 = vmul.f32 %v10980_v55, %v10980_v55  ;;  %v10990_v46 = vadd.f32 %v8417_v35, %v2948_v10  ;;  %v3267_v0 = vsel %vm330_vm1, %v10970_v58, 0.0 }
 0x226   : > { %v3266_v48 = vadd.f32 %v3265_v61, %v3264_v32  ;;  %v3366_v27 = vadd.f32 %v3365_v3, %v3364_v7  ;;  %v3145_v49 = vpop.f32.mrf.mxu0  ;;  %v2681_v10 = vadd.f32 %v10635_v16, %v2415_v25  ;;  %v3369_v1 = vsel %vm330_vm1, %v3317_v17, 0.0 }
 0x227   : > { %v3367_v12 = vsel %vm330_vm1, %v3316_v23, 0.0  ;;  %v10999_v8 = vadd.f32 %v3145_v49, %v2947_v60  ;;  %v3319_v45 = vmul.f32 %v10990_v46, %v10990_v46  ;;  %v2150_v16 = vadd.f32 %v13615_v14, %v10728_v30  ;;  %v13616_v49 = vld [vmem:[#allocation80_spill] sm:$0xff] }
 0x228   : > { %v3368_v2 = vadd.f32 %v3367_v12, %v3366_v27  ;;  %v3268_v26 = vadd.f32 %v3267_v0, %v3266_v48  ;;  %v8420_v57 = vpop.f32.mrf.mxu0  ;;  %v2952_v25 = vadd.f32 %v10942_v36, %v10629_v5  ;;  %v2683_v32 = vadd.f32 %v10671_v50, %v2417_v38  ;;  %v8379_v27 = vpop.f32.mrf.mxu1 }
 0x229   : > { %v3269_v39 = vsel %vm330_vm1, %v10999_v8, 0.0  ;;  %v3318_v33 = vmul.f32 %v10999_v8, %v10999_v8  ;;  %v11009_v31 = vadd.f32 %v8420_v57, %v2950_v34  ;;  %v3271_v35 = vsel %vm330_vm1, %v10990_v46, 0.0 }
 0x22a   : > { %v3270_v60 = vadd.f32 %v3269_v39, %v3268_v26  ;;  %v3370_v3 = vadd.f32 %v3369_v1, %v3368_v2  ;;  %v3155_v7 = vpop.f32.mrf.mxu0  ;;  %v2951_v23 = vadd.f32 %v2896_v9, %v2681_v10  ;;  %v3373_v11 = vsel %vm330_vm1, %v3319_v45, 0.0 }
 0x22b   : > { %v3371_v17 = vsel %vm330_vm1, %v3318_v33, 0.0  ;;  %v11019_v61 = vadd.f32 %v3155_v7, %v2949_v20  ;;  %v3321_v5 = vmul.f32 %v11009_v31, %v11009_v31  ;;  %v2419_v20 = vadd.f32 %v13616_v49, %v2150_v16 }
 0x22c   : > { %v3372_v34 = vadd.f32 %v3371_v17, %v3370_v3  ;;  %v3272_v30 = vadd.f32 %v3271_v35, %v3270_v60  ;;  %v8423_v48 = vpop.f32.mrf.mxu0  ;;  %v2954_v9 = vadd.f32 %v8376_v19, %v10665_v28  ;;  %v2953_v2 = vadd.f32 %v2906_v18, %v2683_v32  ;;  %v2916_v28 = vpop.f32.mrf.mxu1 }
 0x22d   : > { %v3273_v50 = vsel %vm330_vm1, %v11019_v61, 0.0  ;;  %v3320_v36 = vmul.f32 %v11019_v61, %v11019_v61  ;;  %v11028_v38 = vadd.f32 %v8423_v48, %v2952_v25  ;;  %v3275_v45 = vsel %vm330_vm1, %v11009_v31, 0.0 }
 0x22e   : > { %v3274_v0 = vadd.f32 %v3273_v50, %v3272_v30  ;;  %v3374_v12 = vadd.f32 %v3373_v11, %v3372_v34  ;;  %v3165_v10 = vpop.f32.mrf.mxu0  ;;  %v2685_v1 = vadd.f32 %v10699_v63, %v2419_v20  ;;  %v3377_v19 = vsel %vm330_vm1, %v3321_v5, 0.0 }
 0x22f   : > { %v3375_v26 = vsel %vm330_vm1, %v3320_v36, 0.0  ;;  %v11035_v57 = vadd.f32 %v3165_v10, %v2951_v23  ;;  %v3323_v33 = vmul.f32 %v11028_v38, %v11028_v38  ;;  %v2956_v32 = vadd.f32 %v8379_v27, %v10691_v13 }
 0x230   : > { %v3376_v39 = vadd.f32 %v3375_v26, %v3374_v12  ;;  %v3276_v14 = vadd.f32 %v3275_v45, %v3274_v0  ;;  %v8426_v16 = vpop.f32.mrf.mxu0  ;;  %v3279_v35 = vsel %vm330_vm1, %v11028_v38, 0.0  ;;  %v2955_v11 = vadd.f32 %v2916_v28, %v2685_v1 }
 0x231   : > { %v3277_v18 = vsel %vm330_vm1, %v11035_v57, 0.0  ;;  %v3322_v25 = vmul.f32 %v11035_v57, %v11035_v57  ;;  %v11045_v60 = vadd.f32 %v8426_v16, %v2954_v9  ;;  %v3381_v34 = vsel %vm330_vm1, %v3323_v33, 0.0 }
 0x232   : > { %v3278_v3 = vadd.f32 %v3277_v18, %v3276_v14  ;;  %v3378_v7 = vadd.f32 %v3377_v19, %v3376_v39  ;;  %v3175_v63 = vpop.f32.mrf.mxu0 }
 0x233   : > { %v3379_v17 = vsel %vm330_vm1, %v3322_v25, 0.0  ;;  %v11051_v23 = vadd.f32 %v3175_v63, %v2953_v2  ;;  %v3325_v50 = vmul.f32 %v11045_v60, %v11045_v60  ;;  %v3283_v0 = vsel %vm330_vm1, %v11045_v60, 0.0 }
 0x234   : > { %v3380_v30 = vadd.f32 %v3379_v17, %v3378_v7  ;;  %v3280_v48 = vadd.f32 %v3279_v35, %v3278_v3  ;;  %v8429_v5 = vpop.f32.mrf.mxu0 }
 0x235   : > { %v3281_v36 = vsel %vm330_vm1, %v11051_v23, 0.0  ;;  %v3324_v13 = vmul.f32 %v11051_v23, %v11051_v23  ;;  %v11060_v27 = vadd.f32 %v8429_v5, %v2956_v32  ;;  %v3385_v26 = vsel %vm330_vm1, %v3325_v50, 0.0 }
 0x236   : > { %v3282_v49 = vadd.f32 %v3281_v36, %v3280_v48  ;;  %v3382_v20 = vadd.f32 %v3381_v34, %v3380_v30  ;;  %v3185_v9 = vpop.f32.mrf.mxu0 }
 0x237   : > { %v3383_v12 = vsel %vm330_vm1, %v3324_v13, 0.0  ;;  %v3224_v10 = vadd.f32 %v3185_v9, %v2955_v11  ;;  %v3327_v1 = vmul.f32 %v11060_v27, %v11060_v27  ;;  %v3287_v28 = vsel %vm330_vm1, %v11060_v27, 0.0  ;;  %v11076_v13 = vld [vmem:[%s13137_s2 + $0xc] sm:$0xf] }
 0x238   : > { %v3384_v2 = vadd.f32 %v3383_v12, %v3382_v20  ;;  %v3284_v45 = vadd.f32 %v3283_v0, %v3282_v49  ;;  %8580 = vmatprep.subr.msk.mxu0 %vm690_vm0, %v11076_v13 }
 0x239   : > { %v3285_v39 = vsel %vm330_vm1, %v3224_v10, 0.0  ;;  %v3326_v33 = vmul.f32 %v3224_v10, %v3224_v10  ;;  %v3389_v3 = vsel %vm330_vm1, %v3327_v1, 0.0 }
 0x23a   : > { %v3286_v14 = vadd.f32 %v3285_v39, %v3284_v45  ;;  %v3386_v16 = vadd.f32 %v3385_v26, %v3384_v2  ;;  %v3407_v26 = vlaneseq  ;;  %v441_v39 = vld [vmem:[%s13138_s3] sm:$0x1] }
 0x23b   : > { %v3387_v19 = vsel %vm330_vm1, %v3326_v33, 0.0 }
 0x23c   : > { %v3288_v18 = vadd.f32 %v3287_v28, %v3286_v14  ;;  %v3388_v25 = vadd.f32 %v3387_v19, %v3386_v16  ;;  %v3408_v1 = vshrl.u32 %v3407_v26, 7  ;;  %v442_v28 = vld [vmem:[%s13139_s4] sm:$0x1] }
 0x23e   : > { %v3289_v7 = vrot.slane %v3288_v18, 4  ;;  %v3390_v63 = vadd.f32 %v3389_v3, %v3388_v25  ;;  %v11083_v33 = vsub.s32 0, %v3408_v1 }
 0x240   : > { %v3290_v32 = vadd.f32 %v3289_v7, %v3288_v18  ;;  %v3391_v35 = vrot.slane %v3390_v63, 4  ;;  %13617 = vst [vmem:[#allocation30_spill] sm:$0xff] %v11083_v33 }
 0x242   : > { %v3291_v17 = vrot.slane %v3290_v32, 2  ;;  %v3392_v11 = vadd.f32 %v3391_v35, %v3390_v63 }
 0x244   : > { %v3292_v34 = vadd.f32 %v3291_v17, %v3290_v32  ;;  %v3393_v30 = vrot.slane %v3392_v11, 2 }
 0x246   : > { %v3293_v48 = vrot.slane %v3292_v34, 1  ;;  %v3394_v5 = vadd.f32 %v3393_v30, %v3392_v11 }
 0x248   : > { %v3294_v50 = vadd.f32 %v3293_v48, %v3292_v34  ;;  %v3395_v36 = vrot.slane %v3394_v5, 1 }
 0x24a   : > { %v3295_v49 = vmul.f32 0.00390625, %v3294_v50  ;;  %v3396_v20 = vadd.f32 %v3395_v36, %v3394_v5 }
 0x24c   : > { %v3397_v9 = vmul.f32 0.00390625, %v3396_v20  ;;  %v3398_v0 = vmul.f32 %v3295_v49, %v3295_v49 }
 0x24e   : > { %v3399_v12 = vsub.f32 %v3397_v9, %v3398_v0 }
 0x250   : > { %v3400_v2 = vmax.f32 %v3399_v12, 0.0 }
 0x252   : > { %v3401_v45 = vadd.f32 1e-05, %v3400_v2 }
 0x254   : > { %8888 = vrsqrt.f32 %v3401_v45 }
 0x261   : > { %v8889_v14 = vpop.eup %8888 }
 0x262   : > { %v3403_v16 = vmul.f32 %v8889_v14, %v441_v39 }
 0x264   : > { %v3404_v19 = vmul.f32 %v3403_v16, %v3295_v49  ;;  %v3410_v18 = vrot.slane %v3403_v16, %v11083_v33 }
 0x266   : > { %v3405_v25 = vsub.f32 %v442_v28, %v3404_v19  ;;  %v3442_v3 = vmul.f32 %v3410_v18, %v3224_v10  ;;  %v3412_v7 = vmul.f32 %v3410_v18, %v10733_v54  ;;  %v3413_v63 = vmul.f32 %v3410_v18, %v10721_v62 }
 0x267   : > { %v3414_v32 = vmul.f32 %v3410_v18, %v10766_v56  ;;  %v3415_v35 = vmul.f32 %v3410_v18, %v10747_v29  ;;  %v3416_v17 = vmul.f32 %v3410_v18, %v10793_v41  ;;  %v3417_v11 = vmul.f32 %v3410_v18, %v10782_v21 }
 0x268   : > { %v3448_v34 = vrot.slane %v3405_v25, %v11083_v33  ;;  %v3418_v30 = vmul.f32 %v3410_v18, %v10816_v52  ;;  %v3419_v48 = vmul.f32 %v3410_v18, %v10805_v15  ;;  %v3420_v10 = vmul.f32 %v3410_v18, %v10839_v47 }
 0x269   : > { %v3421_v54 = vmul.f32 %v3410_v18, %v10828_v22  ;;  %v3422_v62 = vmul.f32 %v3410_v18, %v10869_v40  ;;  %v3423_v56 = vmul.f32 %v3410_v18, %v10856_v51  ;;  %v3424_v29 = vmul.f32 %v3410_v18, %v10893_v4 }
 0x26a   : > { %v3480_v5 = vadd.f32 %v3448_v34, %v3442_v3  ;;  %v3425_v41 = vmul.f32 %v3410_v18, %v10882_v24  ;;  %v3426_v21 = vmul.f32 %v3410_v18, %v10914_v59  ;;  %v3427_v50 = vmul.f32 %v3410_v18, %v10905_v42 }
 0x26b   : > { %v3428_v52 = vmul.f32 %v3410_v18, %v10938_v53  ;;  %v3429_v15 = vmul.f32 %v3410_v18, %v10927_v37  ;;  %v3430_v47 = vmul.f32 %v3410_v18, %v10959_v43  ;;  %v3431_v22 = vmul.f32 %v3410_v18, %v10950_v44 }
 0x26c   : > { %v3512_v40 = vmax.f32 %v3480_v5, 0.0  ;;  %v3432_v51 = vmul.f32 %v3410_v18, %v10980_v55  ;;  %v3433_v4 = vmul.f32 %v3410_v18, %v10970_v58  ;;  %v3434_v36 = vmul.f32 %v3410_v18, %v10999_v8 }
 0x26d   : > { %v3435_v24 = vmul.f32 %v3410_v18, %v10990_v46  ;;  %v3436_v59 = vmul.f32 %v3410_v18, %v11019_v61  ;;  %v3437_v42 = vmul.f32 %v3410_v18, %v11009_v31  ;;  %v3438_v53 = vmul.f32 %v3410_v18, %v11035_v57 }
 0x26e   : > { %3544 = vst.msk [vmem:[#allocation2 + $0x181] sm:$0xff] %vm330_vm1, %v3512_v40  ;;  %v3439_v37 = vmul.f32 %v3410_v18, %v11028_v38  ;;  %v3440_v44 = vmul.f32 %v3410_v18, %v11051_v23  ;;  %v3441_v43 = vmul.f32 %v3410_v18, %v11045_v60  ;;  %v3443_v58 = vmul.f32 %v3410_v18, %v11060_v27 }
 0x26f   : > { %v3450_v55 = vadd.f32 %v3448_v34, %v3412_v7  ;;  %v3451_v8 = vadd.f32 %v3448_v34, %v3413_v63  ;;  %v3452_v49 = vadd.f32 %v3448_v34, %v3414_v32  ;;  %v3453_v46 = vadd.f32 %v3448_v34, %v3415_v35 }
 0x270   : > { %v3454_v20 = vadd.f32 %v3448_v34, %v3416_v17  ;;  %v3455_v61 = vadd.f32 %v3448_v34, %v3417_v11  ;;  %v3456_v9 = vadd.f32 %v3448_v34, %v3418_v30  ;;  %v3457_v31 = vadd.f32 %v3448_v34, %v3419_v48 }
 0x271   : > { %v3458_v0 = vadd.f32 %v3448_v34, %v3420_v10  ;;  %v3459_v57 = vadd.f32 %v3448_v34, %v3421_v54  ;;  %v3460_v12 = vadd.f32 %v3448_v34, %v3422_v62  ;;  %v3461_v2 = vadd.f32 %v3448_v34, %v3423_v56 }
 0x272   : > { %v3462_v45 = vadd.f32 %v3448_v34, %v3424_v29  ;;  %v3463_v38 = vadd.f32 %v3448_v34, %v3425_v41  ;;  %v3464_v26 = vadd.f32 %v3448_v34, %v3426_v21  ;;  %v3465_v23 = vadd.f32 %v3448_v34, %v3427_v50 }
 0x273   : > { %v3466_v1 = vadd.f32 %v3448_v34, %v3428_v52  ;;  %v11122_v60 = vadd.f32 %v3448_v34, %v3429_v15  ;;  %v11124_v27 = vadd.f32 %v3448_v34, %v3430_v47  ;;  %v11126_v39 = vadd.f32 %v3448_v34, %v3431_v22 }
 0x274   : > { %v11128_v14 = vadd.f32 %v3448_v34, %v3432_v51  ;;  %v11130_v16 = vadd.f32 %v3448_v34, %v3433_v4  ;;  %v11132_v28 = vadd.f32 %v3448_v34, %v3434_v36  ;;  %v11134_v19 = vadd.f32 %v3448_v34, %v3435_v24 }
 0x275   : > { %v11136_v18 = vadd.f32 %v3448_v34, %v3436_v59  ;;  %v11138_v25 = vadd.f32 %v3448_v34, %v3437_v42  ;;  %v11140_v3 = vadd.f32 %v3448_v34, %v3438_v53  ;;  %v11142_v7 = vadd.f32 %v3448_v34, %v3439_v37  ;;  %v3566_v63 = vld [vmem:[#allocation2 + $0x182] sm:$0x1] }
 0x276   : > { %v11144_v32 = vadd.f32 %v3448_v34, %v3440_v44  ;;  %v11146_v35 = vadd.f32 %v3448_v34, %v3441_v43  ;;  %v11148_v17 = vadd.f32 %v3448_v34, %v3443_v58  ;;  %v3482_v11 = vmax.f32 %v3450_v55, 0.0  ;;  %3602 = vst.msk [vmem:[#allocation2 + $0x180] sm:$0x1] %vm404_vm2, %v3566_v63 }
 0x277   : > { %v3483_v30 = vmax.f32 %v3451_v8, 0.0  ;;  %v3484_v48 = vmax.f32 %v3452_v49, 0.0  ;;  %v3485_v10 = vmax.f32 %v3453_v46, 0.0  ;;  %v3486_v54 = vmax.f32 %v3454_v20, 0.0 }
 0x278   : > { %v3487_v62 = vmax.f32 %v3455_v61, 0.0  ;;  %v3488_v56 = vmax.f32 %v3456_v9, 0.0  ;;  %v3489_v29 = vmax.f32 %v3457_v31, 0.0  ;;  %v3490_v5 = vmax.f32 %v3458_v0, 0.0  ;;  %3514 = vst.msk [vmem:[#allocation2 + $0x19] sm:$0xff] %vm330_vm1, %v3482_v11 }
 0x279   : > { %v3491_v41 = vmax.f32 %v3459_v57, 0.0  ;;  %v3492_v21 = vmax.f32 %v3460_v12, 0.0  ;;  %v3493_v50 = vmax.f32 %v3461_v2, 0.0  ;;  %v3494_v52 = vmax.f32 %v3462_v45, 0.0  ;;  %3515 = vst.msk [vmem:[#allocation2 + $0x21] sm:$0xff] %vm330_vm1, %v3483_v30  ;;  %3516 = vst.msk [vmem:[#allocation2 + $0x31] sm:$0xff] %vm330_vm1, %v3484_v48 }
 0x27a   : > { %3517 = vst.msk [vmem:[#allocation2 + $0x39] sm:$0xff] %vm330_vm1, %v3485_v10  ;;  %3518 = vst.msk [vmem:[#allocation2 + $0x49] sm:$0xff] %vm330_vm1, %v3486_v54  ;;  %v3495_v34 = vmax.f32 %v3463_v38, 0.0  ;;  %v3496_v15 = vmax.f32 %v3464_v26, 0.0  ;;  %v3497_v47 = vmax.f32 %v3465_v23, 0.0  ;;  %v3498_v22 = vmax.f32 %v3466_v1, 0.0 }
 0x27b   : > { %3546 = vst.msk [vmem:[#allocation2 + $0x1] sm:$0xff] %vm330_vm1, %v3484_v48  ;;  %3547 = vst.msk [vmem:[#allocation2 + $0x9] sm:$0xff] %vm330_vm1, %v3485_v10  ;;  %v3499_v40 = vmax.f32 %v11122_v60, 0.0  ;;  %v3500_v51 = vmax.f32 %v11124_v27, 0.0  ;;  %v3501_v4 = vmax.f32 %v11126_v39, 0.0  ;;  %v3502_v36 = vmax.f32 %v11128_v14, 0.0 }
 0x27c   : > { %3519 = vst.msk [vmem:[#allocation2 + $0x51] sm:$0xff] %vm330_vm1, %v3487_v62  ;;  %3520 = vst.msk [vmem:[#allocation2 + $0x61] sm:$0xff] %vm330_vm1, %v3488_v56  ;;  %v3503_v24 = vmax.f32 %v11130_v16, 0.0  ;;  %v3504_v59 = vmax.f32 %v11132_v28, 0.0  ;;  %v3505_v42 = vmax.f32 %v11134_v19, 0.0  ;;  %v3506_v53 = vmax.f32 %v11136_v18, 0.0 }
 0x27d   : > { %3521 = vst.msk [vmem:[#allocation2 + $0x69] sm:$0xff] %vm330_vm1, %v3489_v29  ;;  %3522 = vst.msk [vmem:[#allocation2 + $0x79] sm:$0xff] %vm330_vm1, %v3490_v5  ;;  %v3507_v37 = vmax.f32 %v11138_v25, 0.0  ;;  %v3508_v44 = vmax.f32 %v11140_v3, 0.0  ;;  %v3509_v43 = vmax.f32 %v11142_v7, 0.0  ;;  %v3510_v58 = vmax.f32 %v11144_v32, 0.0 }
 0x27e   : > { %3523 = vst.msk [vmem:[#allocation2 + $0x81] sm:$0xff] %vm330_vm1, %v3491_v41  ;;  %3524 = vst.msk [vmem:[#allocation2 + $0x91] sm:$0xff] %vm330_vm1, %v3492_v21  ;;  %v3511_v55 = vmax.f32 %v11146_v35, 0.0  ;;  %v3513_v8 = vmax.f32 %v11148_v17, 0.0  ;;  %v11248_v11 = vld [vmem:[%s13137_s2 + $0x10] sm:$0xf] }
 0x27f   : > { %3525 = vst.msk [vmem:[#allocation2 + $0x99] sm:$0xff] %vm330_vm1, %v3493_v50  ;;  %3526 = vst.msk [vmem:[#allocation2 + $0xa9] sm:$0xff] %vm330_vm1, %v3494_v52  ;;  %v3551_v49 = vld [vmem:[#allocation2 + $0x1a] sm:$0x1] }
 0x280   : > { %3527 = vst.msk [vmem:[#allocation2 + $0xb1] sm:$0xff] %vm330_vm1, %v3495_v34  ;;  %3528 = vst.msk [vmem:[#allocation2 + $0xc1] sm:$0xff] %vm330_vm1, %v3496_v15  ;;  %v3552_v61 = vld [vmem:[#allocation2 + $0x32] sm:$0x1]  ;;  %v3569_v9 = vld [vmem:[#allocation2 + $0x27] sm:$0x1] }
 0x281   : > { %3529 = vst.msk [vmem:[#allocation2 + $0xc9] sm:$0xff] %vm330_vm1, %v3497_v47  ;;  %3530 = vst.msk [vmem:[#allocation2 + $0xd9] sm:$0xff] %vm330_vm1, %v3498_v22  ;;  %v3553_v31 = vld [vmem:[#allocation2 + $0x4a] sm:$0x1]  ;;  %v3570_v0 = vld [vmem:[#allocation2 + $0x3f] sm:$0x1] }
 0x282   : > { %3531 = vst.msk [vmem:[#allocation2 + $0xe1] sm:$0xff] %vm330_vm1, %v3499_v40  ;;  %3532 = vst.msk [vmem:[#allocation2 + $0xf1] sm:$0xff] %vm330_vm1, %v3500_v51  ;;  %v3550_v46 = vld [vmem:[#allocation2 + $0x2] sm:$0x1]  ;;  %v3568_v20 = vld [vmem:[#allocation2 + $0xf] sm:$0x1] }
 0x283   : > { %3533 = vst.msk [vmem:[#allocation2 + $0xf9] sm:$0xff] %vm330_vm1, %v3501_v4  ;;  %3534 = vst.msk [vmem:[#allocation2 + $0x109] sm:$0xff] %vm330_vm1, %v3502_v36  ;;  %v3554_v57 = vld [vmem:[#allocation2 + $0x62] sm:$0x1]  ;;  %v3571_v12 = vld [vmem:[#allocation2 + $0x57] sm:$0x1] }
 0x284   : > { %3535 = vst.msk [vmem:[#allocation2 + $0x111] sm:$0xff] %vm330_vm1, %v3503_v24  ;;  %3536 = vst.msk [vmem:[#allocation2 + $0x121] sm:$0xff] %vm330_vm1, %v3504_v59  ;;  %v3555_v2 = vld [vmem:[#allocation2 + $0x7a] sm:$0x1]  ;;  %v3572_v45 = vld [vmem:[#allocation2 + $0x6f] sm:$0x1] }
 0x285   : > { %3537 = vst.msk [vmem:[#allocation2 + $0x129] sm:$0xff] %vm330_vm1, %v3505_v42  ;;  %3538 = vst.msk [vmem:[#allocation2 + $0x139] sm:$0xff] %vm330_vm1, %v3506_v53  ;;  %v3556_v38 = vld [vmem:[#allocation2 + $0x92] sm:$0x1]  ;;  %v3573_v26 = vld [vmem:[#allocation2 + $0x87] sm:$0x1] }
 0x286   : > { %3539 = vst.msk [vmem:[#allocation2 + $0x141] sm:$0xff] %vm330_vm1, %v3507_v37  ;;  %3540 = vst.msk [vmem:[#allocation2 + $0x151] sm:$0xff] %vm330_vm1, %v3508_v44  ;;  %v11211_v23 = vld [vmem:[#allocation2 + $0x8] sm:$0xff]  ;;  %v3574_v60 = vld [vmem:[#allocation2 + $0x9f] sm:$0x1] }
 0x287   : > { %3541 = vst.msk [vmem:[#allocation2 + $0x159] sm:$0xff] %vm330_vm1, %v3509_v43  ;;  %3542 = vst.msk [vmem:[#allocation2 + $0x169] sm:$0xff] %vm330_vm1, %v3510_v58  ;;  %v3557_v1 = vld [vmem:[#allocation2 + $0xaa] sm:$0x1]  ;;  %v3558_v39 = vld [vmem:[#allocation2 + $0xc2] sm:$0x1] }
 0x288   : > { %3548 = vst.msk [vmem:[#allocation2 + $0x199] sm:$0xff] %vm330_vm1, %v3510_v58  ;;  %3543 = vst.msk [vmem:[#allocation2 + $0x171] sm:$0xff] %vm330_vm1, %v3511_v55  ;;  %v11223_v28 = vld [vmem:[#allocation2 + $0x20] sm:$0xff]  ;;  %v3727_v25 = vrot.slane %v11211_v23, 1  ;;  %v11252_v48 = vld [vmem:[#allocation2 + $0x38] sm:$0xff] }
 0x289   : > { %3545 = vst.msk [vmem:[#allocation2 + $0x189] sm:$0xff] %vm330_vm1, %v3513_v8  ;;  %3549 = vst.msk [vmem:[#allocation2 + $0x1a1] sm:$0xff] %vm330_vm1, %v3511_v55  ;;  %v3732_v17 = vrot.slane %v11223_v28, 1  ;;  %v11256_v54 = vld [vmem:[#allocation2 + $0x50] sm:$0xff]  ;;  %v3737_v29 = vrot.slane %v11252_v48, 1  ;;  %v11297_v36 = vld [vmem:[#allocation2 + $0x68] sm:$0xff] }
 0x28a   : > { %3587 = vst.msk [vmem:[#allocation2 + $0x18] sm:$0x1] %vm404_vm2, %v3551_v49  ;;  %3586 = vst.msk [vmem:[#allocation2] sm:$0x1] %vm404_vm2, %v3550_v46  ;;  %v3742_v41 = vrot.slane %v11256_v54, 1 }
 0x28b   : > { %3604 = vst.msk [vmem:[#allocation2 + $0x11] sm:$0x1] %vm404_vm2, %v3568_v20  ;;  %3588 = vst.msk [vmem:[#allocation2 + $0x30] sm:$0x1] %vm404_vm2, %v3552_v61  ;;  %v3575_v21 = vld [vmem:[#allocation2 + $0xb7] sm:$0x1] }
 0x28c   : > { %3605 = vst.msk [vmem:[#allocation2 + $0x29] sm:$0x1] %vm404_vm2, %v3569_v9  ;;  %3589 = vst.msk [vmem:[#allocation2 + $0x48] sm:$0x1] %vm404_vm2, %v3553_v31  ;;  %v3559_v34 = vld [vmem:[#allocation2 + $0xda] sm:$0x1] }
 0x28d   : > { %3606 = vst.msk [vmem:[#allocation2 + $0x41] sm:$0x1] %vm404_vm2, %v3570_v0  ;;  %3590 = vst.msk [vmem:[#allocation2 + $0x60] sm:$0x1] %vm404_vm2, %v3554_v57  ;;  %v3576_v15 = vld [vmem:[#allocation2 + $0xcf] sm:$0x1] }
 0x28e   : > { %3607 = vst.msk [vmem:[#allocation2 + $0x59] sm:$0x1] %vm404_vm2, %v3571_v12  ;;  %3591 = vst.msk [vmem:[#allocation2 + $0x78] sm:$0x1] %vm404_vm2, %v3555_v2  ;;  %v3560_v40 = vld [vmem:[#allocation2 + $0xf2] sm:$0x1] }
 0x28f   : > { %3608 = vst.msk [vmem:[#allocation2 + $0x71] sm:$0x1] %vm404_vm2, %v3572_v45  ;;  %3592 = vst.msk [vmem:[#allocation2 + $0x90] sm:$0x1] %vm404_vm2, %v3556_v38  ;;  %v3577_v51 = vld [vmem:[#allocation2 + $0xe7] sm:$0x1] }
 0x290   : > { %3609 = vst.msk [vmem:[#allocation2 + $0x89] sm:$0x1] %vm404_vm2, %v3573_v26  ;;  %3593 = vst.msk [vmem:[#allocation2 + $0xa8] sm:$0x1] %vm404_vm2, %v3557_v1  ;;  %v3561_v24 = vld [vmem:[#allocation2 + $0x10a] sm:$0x1] }
 0x291   : > { %v11215_v27 = vld [vmem:[#allocation2 + $0x18] sm:$0xff]  ;;  %3610 = vst.msk [vmem:[#allocation2 + $0xa1] sm:$0x1] %vm404_vm2, %v3574_v60  ;;  %v11219_v14 = vld [vmem:[#allocation2] sm:$0xff]  ;;  %3594 = vst.msk [vmem:[#allocation2 + $0xc0] sm:$0x1] %vm404_vm2, %v3558_v39 }
 0x292   : > { %v11221_v16 = vld [vmem:[#allocation2 + $0x10] sm:$0x3]  ;;  %v3726_v19 = vrot.slane %v11219_v14, 1  ;;  %8482 = vmatprep.mubr.msk.f32.mxu0 %vm330_vm1, %v11219_v14  ;;  %v3731_v18 = vrot.slane %v11215_v27, 1  ;;  %3611 = vst.msk [vmem:[#allocation2 + $0xb9] sm:$0x1] %vm404_vm2, %v3575_v21 }
 0x293   : > { %v3729_v3 = vrot.slane %v11221_v16, 1  ;;  %v11232_v7 = vld [vmem:[#allocation2 + $0x28] sm:$0x3]  ;;  %8483 = vmatmul.mubr.msk.f32.vlgmr.msra.gmra.mxu0 %vm330_vm1, %v11211_v23  ;;  %v11236_v63 = vld [vmem:[#allocation2 + $0x30] sm:$0xff]  ;;  %3595 = vst.msk [vmem:[#allocation2 + $0xd8] sm:$0x1] %vm404_vm2, %v3559_v34 }
 0x294   : > { %8485 = vmatprep.mubr.msk.f32.mxu0 %vm330_vm1, %v11215_v27  ;;  %v3728_v32 = vsel %vm545_vm3, %v3726_v19, %v3727_v25  ;;  %8581 = vmatpush3.msk.msra.mxu0 %vm690_vm0, %v11076_v13  ;;  %v3734_v30 = vrot.slane %v11232_v7, 1  ;;  %v11254_v10 = vld [vmem:[#allocation2 + $0x40] sm:$0x3]  ;;  %v11260_v62 = vsel %vm545_vm3, %v3731_v18, %v3732_v17  ;;  %v3736_v13 = vrot.slane %v11236_v63, 1  ;;  %v11263_v56 = vld [vmem:[#allocation2 + $0x48] sm:$0xff]  ;;  %v11400_v34 = vld [vmem:[#allocation2 + $0xb0] sm:$0xff] }
 0x295   : > { %v3730_v35 = vsel %vm545_vm3, %v3727_v25, %v3729_v3  ;;  %8432 = vmatprep.mubr.msk.f32.mxu1 %vm330_vm1, %v3728_v32  ;;  %v3739_v5 = vrot.slane %v11254_v10, 1  ;;  %v3741_v50 = vrot.slane %v11263_v56, 1  ;;  %v11282_v52 = vld [vmem:[#allocation2 + $0x60] sm:$0xff]  ;;  %v11290_v22 = vld [vmem:[#allocation2 + $0x58] sm:$0x3]  ;;  %v4395_v4 = vrot.slane %v11215_v27, 2 }
 0x296   : > { %8433 = vmatmul.mubr.msk.f32.vlgmr.msra.gmra.mxu1 %vm330_vm1, %v3730_v35  ;;  %v11288_v47 = vsel %vm545_vm3, %v3736_v13, %v3737_v29  ;;  %3612 = vst.msk [vmem:[#allocation2 + $0xd1] sm:$0x1] %vm404_vm2, %v3576_v15  ;;  %3596 = vst.msk [vmem:[#allocation2 + $0xf0] sm:$0x1] %vm404_vm2, %v3560_v40  ;;  %v3578_v59 = vld [vmem:[#allocation2 + $0xff] sm:$0x1] }
 0x297   : > { %8531 = vmatpush3.msk.msra.mxu1 %vm690_vm0, %v10846_v6  ;;  %8435 = vmatprep.mubr.msk.f32.mxu1 %vm330_vm1, %v11260_v62  ;;  %v11279_v6 = vsel %vm545_vm3, %v3732_v17, %v3734_v30  ;;  %3613 = vst.msk [vmem:[#allocation2 + $0xe9] sm:$0x1] %vm404_vm2, %v3577_v51  ;;  %3597 = vst.msk [vmem:[#allocation2 + $0x108] sm:$0x1] %vm404_vm2, %v3561_v24  ;;  %v3562_v42 = vld [vmem:[#allocation2 + $0x122] sm:$0x1]  ;;  %v11308_v44 = vsel %vm545_vm3, %v3737_v29, %v3739_v5 }
 0x298   : > { %8486 = vmatmul.mubr.msk.f32.gmra.mxu0 %vm330_vm1, %v11223_v28  ;;  %8630 = vmatprep.subr.msk.mxu1 %vm690_vm0, %v11248_v11  ;;  %3614 = vst.msk [vmem:[#allocation2 + $0x101] sm:$0x1] %vm404_vm2, %v3578_v59  ;;  %v3579_v53 = vld [vmem:[#allocation2 + $0x117] sm:$0x1]  ;;  %v3563_v37 = vld [vmem:[#allocation2 + $0x13a] sm:$0x1]  ;;  %v11318_v49 = vsel %vm545_vm3, %v3741_v50, %v3742_v41 }
 0x299   : > { %8488 = vmatprep.mubr.msk.f32.mxu0 %vm330_vm1, %v11236_v63  ;;  %v3744_v43 = vrot.slane %v11290_v22, 1  ;;  %v3746_v58 = vrot.slane %v11282_v52, 1  ;;  %3598 = vst.msk [vmem:[#allocation2 + $0x120] sm:$0x1] %vm404_vm2, %v3562_v42  ;;  %3615 = vst.msk [vmem:[#allocation2 + $0x119] sm:$0x1] %vm404_vm2, %v3579_v53 }
 0x29a   : > { %8436 = vmatmul.mubr.msk.f32.gmra.mxu1 %vm330_vm1, %v11279_v6  ;;  %3599 = vst.msk [vmem:[#allocation2 + $0x138] sm:$0x1] %vm404_vm2, %v3563_v37  ;;  %v3580_v55 = vld [vmem:[#allocation2 + $0x12f] sm:$0x1]  ;;  %v3564_v8 = vld [vmem:[#allocation2 + $0x152] sm:$0x1] }
 0x29b   : > { %8438 = vmatprep.mubr.msk.f32.mxu1 %vm330_vm1, %v11288_v47  ;;  %13618 = vst [vmem:[#allocation29_spill] sm:$0xff] %v11318_v49  ;;  %v11320_v46 = vld [vmem:[#allocation2 + $0x70] sm:$0x3]  ;;  %3616 = vst.msk [vmem:[#allocation2 + $0x131] sm:$0x1] %vm404_vm2, %v3580_v55  ;;  %v11326_v9 = vld [vmem:[#allocation2 + $0x78] sm:$0xff]  ;;  %v11340_v45 = vsel %vm545_vm3, %v3742_v41, %v3744_v43 }
 0x29c   : > { %8489 = vmatmul.mubr.msk.f32.gmra.mxu0 %vm330_vm1, %v11252_v48  ;;  %3600 = vst.msk [vmem:[#allocation2 + $0x150] sm:$0x1] %vm404_vm2, %v3564_v8  ;;  %v3581_v20 = vld [vmem:[#allocation2 + $0x147] sm:$0x1]  ;;  %v3565_v61 = vld [vmem:[#allocation2 + $0x16a] sm:$0x1] }
 0x29d   : > { %8491 = vmatprep.mubr.msk.f32.mxu0 %vm330_vm1, %v11263_v56  ;;  %3617 = vst.msk [vmem:[#allocation2 + $0x149] sm:$0x1] %vm404_vm2, %v3581_v20  ;;  %3601 = vst.msk [vmem:[#allocation2 + $0x168] sm:$0x1] %vm404_vm2, %v3565_v61  ;;  %v3582_v31 = vld [vmem:[#allocation2 + $0x15f] sm:$0x1] }
 0x29e   : > { %8439 = vmatmul.mubr.msk.f32.gmra.mxu1 %vm330_vm1, %v11308_v44  ;;  %v3583_v0 = vld [vmem:[#allocation2 + $0x177] sm:$0x1]  ;;  %v3747_v57 = vrot.slane %v11297_v36, 1  ;;  %3618 = vst.msk [vmem:[#allocation2 + $0x161] sm:$0x1] %vm404_vm2, %v3582_v31  ;;  %v4396_v12 = vrot.slane %v11223_v28, 2 }
 0x29f   : > { %8441 = vmatprep.mubr.msk.f32.mxu1 %vm330_vm1, %v11318_v49  ;;  %3619 = vst.msk [vmem:[#allocation2 + $0x179] sm:$0x1] %vm404_vm2, %v3583_v0  ;;  %v4398_v2 = vrot.slane %v11232_v7, 2  ;;  %13619 = vst [vmem:[#allocation60_spill] sm:$0xff] %v11340_v45  ;;  %v3749_v38 = vrot.slane %v11320_v46, 1  ;;  %v11343_v26 = vld [vmem:[#allocation2 + $0x80] sm:$0xff] }
 0x2a0   : > { %8492 = vmatmul.mubr.msk.f32.gmra.mxu0 %vm330_vm1, %v11256_v54  ;;  %v11348_v1 = vsel %vm545_vm3, %v3746_v58, %v3747_v57  ;;  %v3751_v60 = vrot.slane %v11326_v9, 1  ;;  %v11351_v39 = vld [vmem:[#allocation2 + $0x88] sm:$0x3]  ;;  %v11354_v19 = vsel %vm1211_vm4, %v4395_v4, %v4396_v12  ;;  %v11361_v25 = vld [vmem:[#allocation2 + $0x90] sm:$0xff]  ;;  %v3752_v3 = vrot.slane %v11343_v26, 1  ;;  %v11372_v35 = vld [vmem:[#allocation2 + $0x98] sm:$0xff] }
 0x2a1   : > { %8494 = vmatprep.mubr.msk.f32.mxu0 %vm330_vm1, %v11282_v52  ;;  %13620 = vst [vmem:[#allocation38_spill] sm:$0xff] %v11348_v1  ;;  %v11357_v18 = vsel %vm1211_vm4, %v4396_v12, %v4398_v2  ;;  %v11369_v7 = vsel %vm545_vm3, %v3747_v57, %v3749_v38  ;;  %v3754_v32 = vrot.slane %v11351_v39, 1  ;;  %13622 = vst [vmem:[#allocation41_spill] sm:$0xff] %v11372_v35  ;;  %v3756_v30 = vrot.slane %v11361_v25, 1  ;;  %v11380_v13 = vld [vmem:[#allocation2 + $0xa0] sm:$0x3] }
 0x2a2   : > { %8442 = vmatmul.mubr.msk.f32.gmra.mxu1 %vm330_vm1, %v11340_v45  ;;  %13621 = vst [vmem:[#allocation35_spill] sm:$0xff] %v11369_v7  ;;  %v11377_v17 = vsel %vm545_vm3, %v3751_v60, %v3752_v3  ;;  %v11384_v29 = vld [vmem:[#allocation2 + $0xa8] sm:$0xff]  ;;  %v3757_v5 = vrot.slane %v11372_v35, 1  ;;  %v11392_v41 = vld [vmem:[%s13137_s2 + $0x14] sm:$0xf]  ;;  %v3759_v50 = vrot.slane %v11380_v13, 1 }
 0x2a3   : > { %8444 = vmatprep.mubr.msk.f32.mxu1 %vm330_vm1, %v11348_v1  ;;  %13623 = vst [vmem:[#allocation40_spill] sm:$0xff] %v11377_v17  ;;  %v11397_v21 = vsel %vm545_vm3, %v3752_v3, %v3754_v32  ;;  %13625 = vst [vmem:[#allocation52_spill] sm:$0xff] %v11400_v34  ;;  %8680 = vmatprep.subr.msk.mxu0 %vm690_vm0, %v11392_v41  ;;  %v3584_v15 = vld [vmem:[#allocation2 + $0x18f] sm:$0x1]  ;;  %v3567_v40 = vld [vmem:[#allocation2 + $0x19a] sm:$0x1] }
 0x2a4   : > { %8495 = vmatmul.mubr.msk.f32.gmra.mxu0 %vm330_vm1, %v11297_v36  ;;  %13624 = vst [vmem:[#allocation43_spill] sm:$0xff] %v11397_v21  ;;  %v11407_v51 = vsel %vm545_vm3, %v3756_v30, %v3757_v5  ;;  %v3761_v4 = vrot.slane %v11384_v29, 1  ;;  %v11410_v24 = vld [vmem:[#allocation2 + $0xb8] sm:$0x3]  ;;  %3620 = vst.msk [vmem:[#allocation2 + $0x191] sm:$0x1] %vm404_vm2, %v3584_v15  ;;  %v11425_v37 = vsel %vm545_vm3, %v3757_v5, %v3759_v50 }
 0x2a5   : > { %8497 = vmatprep.mubr.msk.f32.mxu0 %vm330_vm1, %v11326_v9  ;;  %13626 = vst [vmem:[#allocation55_spill] sm:$0xff] %v11407_v51  ;;  %3603 = vst.msk [vmem:[#allocation2 + $0x198] sm:$0x1] %vm404_vm2, %v3567_v40  ;;  %v3585_v59 = vld [vmem:[#allocation2 + $0x1a7] sm:$0x1]  ;;  %v3762_v53 = vrot.slane %v11400_v34, 1 }
 0x2a6   : > { %8445 = vmatmul.mubr.msk.f32.gmra.mxu1 %vm330_vm1, %v11369_v7  ;;  %v11416_v42 = vld [vmem:[#allocation2 + $0xc0] sm:$0xff]  ;;  %3621 = vst.msk [vmem:[#allocation2 + $0x1a9] sm:$0x1] %vm404_vm2, %v3585_v59  ;;  %13627 = vst [vmem:[#allocation66_spill] sm:$0xff] %v11425_v37  ;;  %v3764_v43 = vrot.slane %v11410_v24, 1  ;;  %v11428_v58 = vld [vmem:[#allocation2 + $0xc8] sm:$0xff] }
 0x2a7   : > { %8447 = vmatprep.mubr.msk.f32.mxu1 %vm330_vm1, %v11377_v17  ;;  %13628 = vst [vmem:[#allocation44_spill] sm:$0xff] %v11428_v58  ;;  %v11433_v55 = vsel %vm545_vm3, %v3761_v4, %v3762_v53  ;;  %v3766_v8 = vrot.slane %v11416_v42, 1  ;;  %v11436_v20 = vld [vmem:[#allocation2 + $0xd0] sm:$0x3]  ;;  %v11440_v61 = vld [vmem:[#allocation2 + $0xd8] sm:$0xff]  ;;  %v3767_v31 = vrot.slane %v11428_v58, 1 }
 0x2a8   : > { %8498 = vmatmul.mubr.msk.f32.gmra.mxu0 %vm330_vm1, %v11343_v26  ;;  %13629 = vst [vmem:[#allocation46_spill] sm:$0xff] %v11433_v55  ;;  %v11448_v0 = vsel %vm545_vm3, %v3762_v53, %v3764_v43  ;;  %v3769_v57 = vrot.slane %v11436_v20, 1  ;;  %v11451_v12 = vld [vmem:[#allocation2 + $0xe0] sm:$0xff]  ;;  %v3771_v38 = vrot.slane %v11440_v61, 1  ;;  %v11459_v60 = vld [vmem:[#allocation2 + $0xe8] sm:$0x3] }
 0x2a9   : > { %8500 = vmatprep.mubr.msk.f32.mxu0 %vm330_vm1, %v11361_v25  ;;  %13630 = vst [vmem:[#allocation47_spill] sm:$0xff] %v11448_v0  ;;  %13631 = vst [vmem:[#allocation63_spill] sm:$0xff] %v11451_v12  ;;  %v11456_v2 = vsel %vm545_vm3, %v3766_v8, %v3767_v31  ;;  %v11463_v3 = vld [vmem:[#allocation2 + $0xf0] sm:$0xff]  ;;  %v3772_v32 = vrot.slane %v11451_v12, 1  ;;  %v3774_v5 = vrot.slane %v11459_v60, 1  ;;  %v11474_v50 = vld [vmem:[#allocation2 + $0xf8] sm:$0xff] }
 0x2aa   : > { %8448 = vmatmul.mubr.msk.f32.gmra.mxu1 %vm330_vm1, %v11397_v21  ;;  %13632 = vst [vmem:[#allocation49_spill] sm:$0xff] %v11456_v2  ;;  %v11471_v30 = vsel %vm545_vm3, %v3767_v31, %v3769_v57  ;;  %13634 = vst [vmem:[#allocation68_spill] sm:$0xff] %v11474_v50  ;;  %v3776_v40 = vrot.slane %v11463_v3, 1  ;;  %v11482_v4 = vld [vmem:[#allocation2 + $0x100] sm:$0x3]  ;;  %v11486_v59 = vld [vmem:[#allocation2 + $0x108] sm:$0xff] }
 0x2ab   : > { %8450 = vmatprep.mubr.msk.f32.mxu1 %vm330_vm1, %v11407_v51  ;;  %13633 = vst [vmem:[#allocation59_spill] sm:$0xff] %v11471_v30  ;;  %v11479_v15 = vsel %vm545_vm3, %v3771_v38, %v3772_v32  ;;  %v3777_v53 = vrot.slane %v11474_v50, 1  ;;  %v11494_v43 = vsel %vm545_vm3, %v3772_v32, %v3774_v5  ;;  %v3779_v8 = vrot.slane %v11482_v4, 1  ;;  %v11497_v31 = vld [vmem:[#allocation2 + $0x110] sm:$0xff]  ;;  %v11505_v33 = vld [vmem:[#allocation2 + $0x118] sm:$0x3] }
 0x2ac   : > { %8501 = vmatmul.mubr.msk.f32.gmra.mxu0 %vm330_vm1, %v11372_v35  ;;  %13635 = vst [vmem:[#allocation50_spill] sm:$0xff] %v11479_v15  ;;  %13636 = vst [vmem:[#allocation42_spill] sm:$0xff] %v11494_v43  ;;  %v3781_v38 = vrot.slane %v11486_v59, 1  ;;  %v3782_v32 = vrot.slane %v11497_v31, 1  ;;  %v11555_v51 = vld [vmem:[#allocation2 + $0x150] sm:$0xff]  ;;  %v11578_v7 = vld [vmem:[#allocation2 + $0x168] sm:$0xff] }
 0x2ad   : > { %8503 = vmatprep.mubr.msk.f32.mxu0 %vm330_vm1, %v11384_v29  ;;  %13637 = vst [vmem:[#allocation48_spill] sm:$0xff] %v11497_v31  ;;  %v11502_v57 = vsel %vm545_vm3, %v3776_v40, %v3777_v53  ;;  %v11517_v5 = vsel %vm545_vm3, %v3777_v53, %v3779_v8  ;;  %v3784_v40 = vrot.slane %v11505_v33, 1  ;;  %v3796_v21 = vrot.slane %v11555_v51, 1  ;;  %v11574_v17 = vld [vmem:[#allocation2 + $0x160] sm:$0x3]  ;;  %13648 = vst [vmem:[#allocation45_spill] sm:$0xff] %v11578_v7 }
 0x2ae   : > { %8451 = vmatmul.mubr.msk.f32.gmra.mxu1 %vm330_vm1, %v11425_v37  ;;  %13638 = vst [vmem:[#allocation53_spill] sm:$0xff] %v11502_v57  ;;  %13639 = vst [vmem:[#allocation64_spill] sm:$0xff] %v11517_v5  ;;  %v11551_v37 = vld [vmem:[#allocation2 + $0x148] sm:$0x3]  ;;  %v3801_v1 = vrot.slane %v11578_v7, 1  ;;  %v4391_v49 = vrot.slane %v11211_v23, 2 }
 0x2af   : > { %8453 = vmatprep.mubr.msk.f32.mxu1 %vm330_vm1, %v11433_v55  ;;  %v11540_v8 = vsel %vm545_vm3, %v3782_v32, %v3784_v40  ;;  %v3794_v40 = vrot.slane %v11551_v37, 1  ;;  %v11597_v45 = vld [vmem:[#allocation2 + $0x178] sm:$0x3] }
 0x2b0   : > { %8504 = vmatmul.mubr.msk.f32.gmra.mxu0 %vm330_vm1, %v11400_v34  ;;  %13642 = vst [vmem:[#allocation62_spill] sm:$0xff] %v11540_v8 }
 0x2b1   : > { %8506 = vmatprep.mubr.msk.f32.mxu0 %vm330_vm1, %v11416_v42 }
 0x2b2   : > { %8454 = vmatmul.mubr.msk.f32.gmra.mxu1 %vm330_vm1, %v11448_v0  ;;  %v11532_v0 = vld [vmem:[#allocation2 + $0x138] sm:$0xff] }
 0x2b3   : > { %8456 = vmatprep.mubr.msk.f32.mxu1 %vm330_vm1, %v11456_v2  ;;  %v11528_v2 = vld [vmem:[#allocation2 + $0x130] sm:$0x3]  ;;  %v3791_v55 = vrot.slane %v11532_v0, 1 }
 0x2b4   : > { %8507 = vmatmul.mubr.msk.f32.gmra.mxu0 %vm330_vm1, %v11428_v58 }
 0x2b5   : > { %8509 = vmatprep.mubr.msk.f32.mxu0 %vm330_vm1, %v11440_v61 }
 0x2b6   : > { %8457 = vmatmul.mubr.msk.f32.gmra.mxu1 %vm330_vm1, %v11471_v30 }
 0x2b7   : > { %8459 = vmatprep.mubr.msk.f32.mxu1 %vm330_vm1, %v11479_v15  ;;  %v11509_v15 = vld [vmem:[#allocation2 + $0x120] sm:$0xff] }
 0x2b8   : > { %8510 = vmatmul.mubr.msk.f32.gmra.mxu0 %vm330_vm1, %v11451_v12  ;;  %v3786_v30 = vrot.slane %v11509_v15, 1 }
 0x2b9   : > { %8512 = vmatprep.mubr.msk.f32.mxu0 %vm330_vm1, %v11463_v3 }
 0x2ba   : > { %8460 = vmatmul.mubr.msk.f32.gmra.mxu1 %vm330_vm1, %v11494_v43  ;;  %v11520_v43 = vld [vmem:[#allocation2 + $0x128] sm:$0xff] }
 0x2bb   : > { %8462 = vmatprep.mubr.msk.f32.mxu1 %vm330_vm1, %v11502_v57  ;;  %13640 = vst [vmem:[#allocation54_spill] sm:$0xff] %v11520_v43  ;;  %v11525_v57 = vsel %vm545_vm3, %v3781_v38, %v3782_v32  ;;  %v3787_v53 = vrot.slane %v11520_v43, 1  ;;  %v3789_v38 = vrot.slane %v11528_v2, 1 }
 0x2bc   : > { %8513 = vmatmul.mubr.msk.f32.gmra.mxu0 %vm330_vm1, %v11474_v50  ;;  %13641 = vst [vmem:[#allocation58_spill] sm:$0xff] %v11525_v57 }
 0x2bd   : > { %8515 = vmatprep.mubr.msk.f32.mxu0 %vm330_vm1, %v11486_v59 }
 0x2be   : > { %8463 = vmatmul.mubr.msk.f32.gmra.mxu1 %vm330_vm1, %v11517_v5  ;;  %v11543_v5 = vld [vmem:[#allocation2 + $0x140] sm:$0xff] }
 0x2bf   : > { %8465 = vmatprep.mubr.msk.f32.mxu1 %vm330_vm1, %v11525_v57  ;;  %13643 = vst [vmem:[#allocation69_spill] sm:$0xff] %v11543_v5  ;;  %v11548_v57 = vsel %vm545_vm3, %v3786_v30, %v3787_v53  ;;  %v3792_v32 = vrot.slane %v11543_v5, 1  ;;  %v11563_v30 = vsel %vm545_vm3, %v3787_v53, %v3789_v38  ;;  %v3799_v38 = vrot.slane %v11574_v17, 1 }
 0x2c0   : > { %8516 = vmatmul.mubr.msk.f32.gmra.mxu0 %vm330_vm1, %v11497_v31  ;;  %13644 = vst [vmem:[#allocation56_spill] sm:$0xff] %v11548_v57  ;;  %13645 = vst [vmem:[#allocation67_spill] sm:$0xff] %v11563_v30 }
 0x2c1   : > { %8518 = vmatprep.mubr.msk.f32.mxu0 %vm330_vm1, %v11509_v15 }
 0x2c2   : > { %8466 = vmatmul.mubr.msk.f32.gmra.mxu1 %vm330_vm1, %v11540_v8  ;;  %v11566_v8 = vld [vmem:[#allocation2 + $0x158] sm:$0xff] }
 0x2c3   : > { %8468 = vmatprep.mubr.msk.f32.mxu1 %vm330_vm1, %v11548_v57  ;;  %13646 = vst [vmem:[#allocation82_spill] sm:$0xff] %v11566_v8  ;;  %v11571_v57 = vsel %vm545_vm3, %v3791_v55, %v3792_v32  ;;  %v3797_v53 = vrot.slane %v11566_v8, 1  ;;  %v11586_v55 = vsel %vm545_vm3, %v3792_v32, %v3794_v40 }
 0x2c4   : > { %8519 = vmatmul.mubr.msk.f32.gmra.mxu0 %vm330_vm1, %v11520_v43  ;;  %13647 = vst [vmem:[#allocation39_spill] sm:$0xff] %v11571_v57  ;;  %13649 = vst [vmem:[#allocation84_spill] sm:$0xff] %v11586_v55 }
 0x2c5   : > { %8521 = vmatprep.mubr.msk.f32.mxu0 %vm330_vm1, %v11532_v0  ;;  %v11607_v40 = vsel %vm545_vm3, %v3797_v53, %v3799_v38  ;;  %v11634_v38 = vld [vmem:[%s13137_s2 + $0x1c] sm:$0xf] }
 0x2c6   : > { %8469 = vmatmul.mubr.msk.f32.gmra.mxu1 %vm330_vm1, %v11563_v30  ;;  %v11589_v30 = vld [vmem:[#allocation2 + $0x170] sm:$0xff] }
 0x2c7   : > { %8471 = vmatprep.mubr.msk.f32.mxu1 %vm330_vm1, %v11571_v57  ;;  %v11594_v57 = vsel %vm545_vm3, %v3796_v21, %v3797_v53  ;;  %v3802_v32 = vrot.slane %v11589_v30, 1  ;;  %v3804_v21 = vrot.slane %v11597_v45, 1 }
 0x2c8   : > { %8522 = vmatmul.mubr.msk.f32.gmra.mxu0 %vm330_vm1, %v11543_v5  ;;  %13650 = vst [vmem:[#allocation51_spill] sm:$0xff] %v11594_v57 }
 0x2c9   : > { %8524 = vmatprep.mubr.msk.f32.mxu0 %vm330_vm1, %v11555_v51  ;;  %v11624_v53 = vsel %vm545_vm3, %v3802_v32, %v3804_v21 }
 0x2ca   : > { %8472 = vmatmul.mubr.msk.f32.gmra.mxu1 %vm330_vm1, %v11586_v55  ;;  %v4390_v55 = vrot.slane %v11219_v14, 2  ;;  %v4393_v14 = vrot.slane %v11221_v16, 2  ;;  %v4400_v16 = vrot.slane %v11236_v63, 2 }
 0x2cb   : > { %8474 = vmatprep.mubr.msk.f32.mxu1 %vm330_vm1, %v11594_v57  ;;  %v11614_v57 = vsel %vm545_vm3, %v3801_v1, %v3802_v32  ;;  %v4408_v32 = vrot.slane %v11290_v22, 2 }
 0x2cc   : > { %8525 = vmatmul.mubr.msk.f32.gmra.mxu0 %vm330_vm1, %v11566_v8  ;;  %v4392_v1 = vsel %vm1211_vm4, %v4390_v55, %v4391_v49  ;;  %v4394_v23 = vsel %vm1211_vm4, %v4391_v49, %v4393_v14  ;;  %v4403_v49 = vrot.slane %v11254_v10, 2  ;;  %v4406_v55 = vrot.slane %v11256_v54, 2 }
 0x2cd   : > { %8527 = vmatprep.mubr.msk.f32.mxu0 %vm330_vm1, %v11578_v7  ;;  %v4410_v14 = vrot.slane %v11282_v52, 2 }
 0x2ce   : > { %8475 = vmatmul.mubr.msk.f32.gmra.mxu1 %vm330_vm1, %v11607_v40  ;;  %v11695_v22 = vsel %vm1211_vm4, %v4406_v55, %v4408_v32  ;;  %v4420_v32 = vrot.slane %v11361_v25, 2 }
 0x2cf   : > { %8477 = vmatprep.mubr.msk.f32.mxu1 %vm330_vm1, %v11614_v57 }
 0x2d0   : > { %8528 = vmatmul.mubr.msk.f32.gmra.mxu0 %vm330_vm1, %v11589_v30 }
 0x2d1   : > { %8582 = vmatprep.mubr.msk.f32.mxu0 %vm330_vm1, %v11215_v27  ;;  %v11646_v27 = vld [vmem:[%s13137_s2 + $0x18] sm:$0xf] }
 0x2d2   : > { %8478 = vmatmul.mubr.msk.f32.gmra.mxu1 %vm330_vm1, %v11624_v53 }
 0x2d3   : > { %8532 = vmatprep.mubr.msk.f32.mxu1 %vm330_vm1, %v4392_v1  ;;  %v4411_v1 = vrot.slane %v11297_v36, 2 }
 0x2d4   : > { %8583 = vmatmul.mubr.msk.f32.vlgmr.msra.gmra.mxu0 %vm330_vm1, %v11223_v28  ;;  %v4401_v28 = vrot.slane %v11252_v48, 2 }
 0x2d5   : > { %8585 = vmatprep.mubr.msk.f32.mxu0 %vm330_vm1, %v11236_v63  ;;  %8681 = vmatpush3.msk.msra.mxu0 %vm690_vm0, %v11392_v41  ;;  %v4405_v41 = vrot.slane %v11263_v56, 2 }
 0x2d6   : > { %8533 = vmatmul.mubr.msk.f32.vlgmr.msra.gmra.mxu1 %vm330_vm1, %v4394_v23  ;;  %8780 = vmatprep.subr.msk.mxu0 %vm690_vm0, %v11634_v38  ;;  %v11678_v10 = vsel %vm1211_vm4, %v4401_v28, %v4403_v49  ;;  %v4413_v23 = vrot.slane %v11320_v46, 2  ;;  %v4416_v49 = vrot.slane %v11343_v26, 2 }
 0x2d7   : > { %8631 = vmatpush3.msk.msra.mxu1 %vm690_vm0, %v11248_v11  ;;  %8535 = vmatprep.mubr.msk.f32.mxu1 %vm330_vm1, %v11354_v19  ;;  %v11667_v11 = vsel %vm1211_vm4, %v4400_v16, %v4401_v28  ;;  %v11684_v21 = vsel %vm1211_vm4, %v4405_v41, %v4406_v55  ;;  %v11701_v16 = vsel %vm1211_vm4, %v4410_v14, %v4411_v1  ;;  %v4415_v28 = vrot.slane %v11326_v9, 2 }
 0x2d8   : > { %8586 = vmatmul.mubr.msk.f32.gmra.mxu0 %vm330_vm1, %v11252_v48  ;;  %8730 = vmatprep.subr.msk.mxu1 %vm690_vm0, %v11646_v27  ;;  %v11712_v46 = vsel %vm1211_vm4, %v4411_v1, %v4413_v23  ;;  %v4418_v41 = vrot.slane %v11351_v39, 2  ;;  %v4421_v14 = vrot.slane %v11372_v35, 2  ;;  %v4423_v1 = vrot.slane %v11380_v13, 2 }
 0x2d9   : > { %8588 = vmatprep.mubr.msk.f32.mxu0 %vm330_vm1, %v11263_v56  ;;  %13651 = vst [vmem:[#allocation57_spill] sm:$0xff] %v11712_v46  ;;  %v11718_v55 = vsel %vm1211_vm4, %v4415_v28, %v4416_v49  ;;  %v4425_v28 = vrot.slane %v11384_v29, 2 }
 0x2da   : > { %8536 = vmatmul.mubr.msk.f32.gmra.mxu1 %vm330_vm1, %v11357_v18  ;;  %13652 = vst [vmem:[#allocation61_spill] sm:$0xff] %v11718_v55  ;;  %v11729_v39 = vsel %vm1211_vm4, %v4416_v49, %v4418_v41  ;;  %v11735_v23 = vsel %vm1211_vm4, %v4420_v32, %v4421_v14  ;;  %v11746_v13 = vsel %vm1211_vm4, %v4421_v14, %v4423_v1  ;;  %v4428_v49 = vrot.slane %v11410_v24, 2 }
 0x2db   : > { %8538 = vmatprep.mubr.msk.f32.mxu1 %vm330_vm1, %v11667_v11  ;;  %13653 = vst [vmem:[#allocation65_spill] sm:$0xff] %v11729_v39  ;;  %13654 = vst [vmem:[#allocation83_spill] sm:$0xff] %v11735_v23  ;;  %v4430_v32 = vrot.slane %v11416_v42, 2  ;;  %v4433_v14 = vrot.slane %v11436_v20, 2  ;;  %v4438_v20 = vrot.slane %v11459_v60, 2  ;;  %v4443_v60 = vrot.slane %v11482_v4, 2 }
 0x2dc   : > { %8589 = vmatmul.mubr.msk.f32.gmra.mxu0 %vm330_vm1, %v11256_v54  ;;  %13655 = vst [vmem:[#allocation85_spill] sm:$0xff] %v11746_v13  ;;  %v4448_v4 = vrot.slane %v11505_v33, 2 }
 0x2dd   : > { %8591 = vmatprep.mubr.msk.f32.mxu0 %vm330_vm1, %v11282_v52 }
 0x2de   : > { %8539 = vmatmul.mubr.msk.f32.gmra.mxu1 %vm330_vm1, %v11678_v10 }
 0x2df   : > { %8541 = vmatprep.mubr.msk.f32.mxu1 %vm330_vm1, %v11684_v21 }
 0x2e0   : > { %8592 = vmatmul.mubr.msk.f32.gmra.mxu0 %vm330_vm1, %v11297_v36 }
 0x2e1   : > { %8594 = vmatprep.mubr.msk.f32.mxu0 %vm330_vm1, %v11326_v9 }
 0x2e2   : > { %8542 = vmatmul.mubr.msk.f32.gmra.mxu1 %vm330_vm1, %v11695_v22 }
 0x2e3   : > { %8544 = vmatprep.mubr.msk.f32.mxu1 %vm330_vm1, %v11701_v16 }
 0x2e4   : > { %8595 = vmatmul.mubr.msk.f32.gmra.mxu0 %vm330_vm1, %v11343_v26 }
 0x2e5   : > { %8597 = vmatprep.mubr.msk.f32.mxu0 %vm330_vm1, %v11361_v25 }
 0x2e6   : > { %8545 = vmatmul.mubr.msk.f32.gmra.mxu1 %vm330_vm1, %v11712_v46 }
 0x2e7   : > { %8547 = vmatprep.mubr.msk.f32.mxu1 %vm330_vm1, %v11718_v55 }
 0x2e8   : > { %8598 = vmatmul.mubr.msk.f32.gmra.mxu0 %vm330_vm1, %v11372_v35  ;;  %v4426_v35 = vrot.slane %v11400_v34, 2 }
 0x2e9   : > { %8600 = vmatprep.mubr.msk.f32.mxu0 %vm330_vm1, %v11384_v29 }
 0x2ea   : > { %8548 = vmatmul.mubr.msk.f32.gmra.mxu1 %vm330_vm1, %v11729_v39  ;;  %v11752_v41 = vsel %vm1211_vm4, %v4425_v28, %v4426_v35  ;;  %v11763_v24 = vsel %vm1211_vm4, %v4426_v35, %v4428_v49  ;;  %v4435_v28 = vrot.slane %v11440_v61, 2 }
 0x2eb   : > { %8550 = vmatprep.mubr.msk.f32.mxu1 %vm330_vm1, %v11735_v23  ;;  %13656 = vst [vmem:[#allocation87_spill] sm:$0xff] %v11752_v41  ;;  %13657 = vst [vmem:[#allocation71_spill] sm:$0xff] %v11763_v24 }
 0x2ec   : > { %8601 = vmatmul.mubr.msk.f32.gmra.mxu0 %vm330_vm1, %v11400_v34  ;;  %v4431_v34 = vrot.slane %v11428_v58, 2 }
 0x2ed   : > { %8603 = vmatprep.mubr.msk.f32.mxu0 %vm330_vm1, %v11416_v42 }
 0x2ee   : > { %8551 = vmatmul.mubr.msk.f32.gmra.mxu1 %vm330_vm1, %v11746_v13  ;;  %v11769_v1 = vsel %vm1211_vm4, %v4430_v32, %v4431_v34  ;;  %v11780_v35 = vsel %vm1211_vm4, %v4431_v34, %v4433_v14  ;;  %v4440_v32 = vrot.slane %v11463_v3, 2 }
 0x2ef   : > { %8553 = vmatprep.mubr.msk.f32.mxu1 %vm330_vm1, %v11752_v41  ;;  %13658 = vst [vmem:[#allocation86_spill] sm:$0xff] %v11769_v1  ;;  %13659 = vst [vmem:[#allocation89_spill] sm:$0xff] %v11780_v35 }
 0x2f0   : > { %8604 = vmatmul.mubr.msk.f32.gmra.mxu0 %vm330_vm1, %v11428_v58  ;;  %v4436_v58 = vrot.slane %v11451_v12, 2 }
 0x2f1   : > { %8606 = vmatprep.mubr.msk.f32.mxu0 %vm330_vm1, %v11440_v61 }
 0x2f2   : > { %8554 = vmatmul.mubr.msk.f32.gmra.mxu1 %vm330_vm1, %v11763_v24  ;;  %v11786_v49 = vsel %vm1211_vm4, %v4435_v28, %v4436_v58  ;;  %v11797_v34 = vsel %vm1211_vm4, %v4436_v58, %v4438_v20  ;;  %v4445_v28 = vrot.slane %v11486_v59, 2 }
 0x2f3   : > { %8556 = vmatprep.mubr.msk.f32.mxu1 %vm330_vm1, %v11769_v1  ;;  %13660 = vst [vmem:[#allocation70_spill] sm:$0xff] %v11786_v49  ;;  %13661 = vst [vmem:[#allocation88_spill] sm:$0xff] %v11797_v34 }
 0x2f4   : > { %8607 = vmatmul.mubr.msk.f32.gmra.mxu0 %vm330_vm1, %v11451_v12  ;;  %v4441_v12 = vrot.slane %v11474_v50, 2 }
 0x2f5   : > { %8609 = vmatprep.mubr.msk.f32.mxu0 %vm330_vm1, %v11463_v3 }
 0x2f6   : > { %8557 = vmatmul.mubr.msk.f32.gmra.mxu1 %vm330_vm1, %v11780_v35  ;;  %v11803_v14 = vsel %vm1211_vm4, %v4440_v32, %v4441_v12  ;;  %v11814_v58 = vsel %vm1211_vm4, %v4441_v12, %v4443_v60  ;;  %v4450_v32 = vrot.slane %v11509_v15, 2  ;;  %v4453_v12 = vrot.slane %v11528_v2, 2 }
 0x2f7   : > { %8559 = vmatprep.mubr.msk.f32.mxu1 %vm330_vm1, %v11786_v49  ;;  %13662 = vst [vmem:[#allocation91_spill] sm:$0xff] %v11803_v14  ;;  %13663 = vst [vmem:[#allocation73_spill] sm:$0xff] %v11814_v58 }
 0x2f8   : > { %8610 = vmatmul.mubr.msk.f32.gmra.mxu0 %vm330_vm1, %v11474_v50  ;;  %v4446_v50 = vrot.slane %v11497_v31, 2 }
 0x2f9   : > { %8612 = vmatprep.mubr.msk.f32.mxu0 %vm330_vm1, %v11486_v59 }
 0x2fa   : > { %8560 = vmatmul.mubr.msk.f32.gmra.mxu1 %vm330_vm1, %v11797_v34  ;;  %v11820_v20 = vsel %vm1211_vm4, %v4445_v28, %v4446_v50  ;;  %v11831_v33 = vsel %vm1211_vm4, %v4446_v50, %v4448_v4  ;;  %v4455_v28 = vrot.slane %v11532_v0, 2  ;;  %v4458_v50 = vrot.slane %v11551_v37, 2 }
 0x2fb   : > { %8562 = vmatprep.mubr.msk.f32.mxu1 %vm330_vm1, %v11803_v14  ;;  %13664 = vst [vmem:[#allocation90_spill] sm:$0xff] %v11820_v20  ;;  %13665 = vst [vmem:[#allocation93_spill] sm:$0xff] %v11831_v33 }
 0x2fc   : > { %8613 = vmatmul.mubr.msk.f32.gmra.mxu0 %vm330_vm1, %v11497_v31  ;;  %v4451_v31 = vrot.slane %v11520_v43, 2 }
 0x2fd   : > { %8615 = vmatprep.mubr.msk.f32.mxu0 %vm330_vm1, %v11509_v15 }
 0x2fe   : > { %8563 = vmatmul.mubr.msk.f32.gmra.mxu1 %vm330_vm1, %v11814_v58  ;;  %v11837_v60 = vsel %vm1211_vm4, %v4450_v32, %v4451_v31  ;;  %v11848_v2 = vsel %vm1211_vm4, %v4451_v31, %v4453_v12  ;;  %v4460_v32 = vrot.slane %v11555_v51, 2  ;;  %v4463_v31 = vrot.slane %v11574_v17, 2 }
 0x2ff   : > { %8565 = vmatprep.mubr.msk.f32.mxu1 %vm330_vm1, %v11820_v20  ;;  %13666 = vst [vmem:[#allocation72_spill] sm:$0xff] %v11837_v60  ;;  %13667 = vst [vmem:[#allocation92_spill] sm:$0xff] %v11848_v2 }
 0x300   : > { %8616 = vmatmul.mubr.msk.f32.gmra.mxu0 %vm330_vm1, %v11520_v43  ;;  %v4456_v43 = vrot.slane %v11543_v5, 2 }
 0x301   : > { %8618 = vmatprep.mubr.msk.f32.mxu0 %vm330_vm1, %v11532_v0 }
 0x302   : > { %8566 = vmatmul.mubr.msk.f32.gmra.mxu1 %vm330_vm1, %v11831_v33  ;;  %v11854_v4 = vsel %vm1211_vm4, %v4455_v28, %v4456_v43  ;;  %v11865_v37 = vsel %vm1211_vm4, %v4456_v43, %v4458_v50  ;;  %v4465_v28 = vrot.slane %v11578_v7, 2  ;;  %v4466_v43 = vrot.slane %v11589_v30, 2 }
 0x303   : > { %8568 = vmatprep.mubr.msk.f32.mxu1 %vm330_vm1, %v11837_v60  ;;  %13668 = vst [vmem:[#allocation95_spill] sm:$0xff] %v11854_v4  ;;  %13669 = vst [vmem:[#allocation75_spill] sm:$0xff] %v11865_v37  ;;  %v4468_v50 = vrot.slane %v11597_v45, 2  ;;  %v11916_v45 = vld [vmem:[%s13137_s2 + $0x20] sm:$0xf] }
 0x304   : > { %8619 = vmatmul.mubr.msk.f32.gmra.mxu0 %vm330_vm1, %v11543_v5  ;;  %v4461_v5 = vrot.slane %v11566_v8, 2 }
 0x305   : > { %8621 = vmatprep.mubr.msk.f32.mxu0 %vm330_vm1, %v11555_v51 }
 0x306   : > { %8569 = vmatmul.mubr.msk.f32.gmra.mxu1 %vm330_vm1, %v11848_v2  ;;  %v11871_v12 = vsel %vm1211_vm4, %v4460_v32, %v4461_v5  ;;  %v11884_v17 = vsel %vm1211_vm4, %v4461_v5, %v4463_v31  ;;  %v11890_v32 = vsel %vm1211_vm4, %v4465_v28, %v4466_v43  ;;  %v11901_v5 = vsel %vm1211_vm4, %v4466_v43, %v4468_v50  ;;  %v13680_v31 = vld [vmem:[#allocation55_spill] sm:$0xff]  ;;  %v13681_v28 = vld [vmem:[#allocation66_spill] sm:$0xff] }
 0x307   : > { %8571 = vmatprep.mubr.msk.f32.mxu1 %vm330_vm1, %v11854_v4  ;;  %13670 = vst [vmem:[#allocation94_spill] sm:$0xff] %v11871_v12  ;;  %13671 = vst [vmem:[#allocation97_spill] sm:$0xff] %v11884_v17  ;;  %v13682_v43 = vld [vmem:[#allocation46_spill] sm:$0xff]  ;;  %v13683_v50 = vld [vmem:[#allocation47_spill] sm:$0xff] }
 0x308   : > { %8622 = vmatmul.mubr.msk.f32.gmra.mxu0 %vm330_vm1, %v11566_v8  ;;  %v11878_v8 = vld [vmem:[#allocation2 + $0x180] sm:$0xff]  ;;  %13672 = vst [vmem:[#allocation74_spill] sm:$0xff] %v11890_v32  ;;  %13673 = vst [vmem:[#allocation96_spill] sm:$0xff] %v11901_v5 }
 0x309   : > { %8624 = vmatprep.mubr.msk.f32.mxu0 %vm330_vm1, %v11578_v7  ;;  %v11894_v7 = vld [vmem:[#allocation2 + $0x188] sm:$0xff] }
 0x30a   : > { %8572 = vmatmul.mubr.msk.f32.gmra.mxu1 %vm330_vm1, %v11865_v37 }
 0x30b   : > { %8574 = vmatprep.mubr.msk.f32.mxu1 %vm330_vm1, %v11871_v12 }
 0x30c   : > { %8625 = vmatmul.mubr.msk.f32.gmra.mxu0 %vm330_vm1, %v11589_v30 }
 0x30d   : > { %8627 = vmatprep.mubr.msk.f32.mxu0 %vm330_vm1, %v11878_v8 }
 0x30e   : > { %8575 = vmatmul.mubr.msk.f32.gmra.mxu1 %vm330_vm1, %v11884_v17 }
 0x30f   : > { %8577 = vmatprep.mubr.msk.f32.mxu1 %vm330_vm1, %v11890_v32 }
 0x310   : > { %8628 = vmatmul.mubr.msk.f32.gmra.mxu0 %vm330_vm1, %v11894_v7 }
 0x311   : > { %8682 = vmatprep.mubr.msk.f32.mxu0 %vm330_vm1, %v11354_v19  ;;  %v13676_v19 = vld [vmem:[#allocation38_spill] sm:$0xff] }
 0x312   : > { %8578 = vmatmul.mubr.msk.f32.gmra.mxu1 %vm330_vm1, %v11901_v5 }
 0x313   : > { %8632 = vmatprep.mubr.msk.f32.mxu1 %vm330_vm1, %v11260_v62  ;;  %v13674_v62 = vld [vmem:[#allocation29_spill] sm:$0xff] }
 0x314   : > { %8683 = vmatmul.mubr.msk.f32.vlgmr.msra.gmra.mxu0 %vm330_vm1, %v11357_v18  ;;  %v13677_v18 = vld [vmem:[#allocation35_spill] sm:$0xff] }
 0x315   : > { %8685 = vmatprep.mubr.msk.f32.mxu0 %vm330_vm1, %v11667_v11  ;;  %8781 = vmatpush3.msk.msra.mxu0 %vm690_vm0, %v11634_v38  ;;  %v13678_v38 = vld [vmem:[#allocation40_spill] sm:$0xff] }
 0x316   : > { %8633 = vmatmul.mubr.msk.f32.vlgmr.msra.gmra.mxu1 %vm330_vm1, %v11279_v6  ;;  %v13675_v6 = vld [vmem:[#allocation60_spill] sm:$0xff] }
 0x317   : > { %8731 = vmatpush3.msk.msra.mxu1 %vm690_vm0, %v11646_v27  ;;  %8635 = vmatprep.mubr.msk.f32.mxu1 %vm330_vm1, %v11288_v47  ;;  %v13679_v27 = vld [vmem:[#allocation43_spill] sm:$0xff] }
 0x318   : > { %8686 = vmatmul.mubr.msk.f32.gmra.mxu0 %vm330_vm1, %v11678_v10  ;;  %8830 = vmatprep.subr.msk.mxu1 %vm690_vm0, %v11916_v45 }
 0x319   : > { %8688 = vmatprep.mubr.msk.f32.mxu0 %vm330_vm1, %v11684_v21 }
 0x31a   : > { %8636 = vmatmul.mubr.msk.f32.gmra.mxu1 %vm330_vm1, %v11308_v44 }
 0x31b   : > { %8638 = vmatprep.mubr.msk.f32.mxu1 %vm330_vm1, %v13674_v62 }
 0x31c   : > { %8689 = vmatmul.mubr.msk.f32.gmra.mxu0 %vm330_vm1, %v11695_v22 }
 0x31d   : > { %8691 = vmatprep.mubr.msk.f32.mxu0 %vm330_vm1, %v11701_v16 }
 0x31e   : > { %8639 = vmatmul.mubr.msk.f32.gmra.mxu1 %vm330_vm1, %v13675_v6 }
 0x31f   : > { %8641 = vmatprep.mubr.msk.f32.mxu1 %vm330_vm1, %v13676_v19 }
 0x320   : > { %8692 = vmatmul.mubr.msk.f32.gmra.mxu0 %vm330_vm1, %v11712_v46 }
 0x321   : > { %8694 = vmatprep.mubr.msk.f32.mxu0 %vm330_vm1, %v11718_v55  ;;  %v5062_v55 = vrot.slane %v11894_v7, 1 }
 0x322   : > { %8642 = vmatmul.mubr.msk.f32.gmra.mxu1 %vm330_vm1, %v13677_v18 }
 0x323   : > { %8644 = vmatprep.mubr.msk.f32.mxu1 %vm330_vm1, %v13678_v38 }
 0x324   : > { %8695 = vmatmul.mubr.msk.f32.gmra.mxu0 %vm330_vm1, %v11729_v39 }
 0x325   : > { %8697 = vmatprep.mubr.msk.f32.mxu0 %vm330_vm1, %v11735_v23  ;;  %v13684_v23 = vld [vmem:[#allocation49_spill] sm:$0xff] }
 0x326   : > { %8645 = vmatmul.mubr.msk.f32.gmra.mxu1 %vm330_vm1, %v13679_v27 }
 0x327   : > { %8647 = vmatprep.mubr.msk.f32.mxu1 %vm330_vm1, %v13680_v31 }
 0x328   : > { %8698 = vmatmul.mubr.msk.f32.gmra.mxu0 %vm330_vm1, %v11746_v13  ;;  %v13686_v13 = vld [vmem:[#allocation50_spill] sm:$0xff] }
 0x329   : > { %8700 = vmatprep.mubr.msk.f32.mxu0 %vm330_vm1, %v11752_v41  ;;  %v13685_v41 = vld [vmem:[#allocation59_spill] sm:$0xff] }
 0x32a   : > { %8648 = vmatmul.mubr.msk.f32.gmra.mxu1 %vm330_vm1, %v13681_v28 }
 0x32b   : > { %8650 = vmatprep.mubr.msk.f32.mxu1 %vm330_vm1, %v13682_v43 }
 0x32c   : > { %8701 = vmatmul.mubr.msk.f32.gmra.mxu0 %vm330_vm1, %v11763_v24  ;;  %v13688_v24 = vld [vmem:[#allocation53_spill] sm:$0xff] }
 0x32d   : > { %8703 = vmatprep.mubr.msk.f32.mxu0 %vm330_vm1, %v11769_v1  ;;  %v13687_v1 = vld [vmem:[#allocation42_spill] sm:$0xff] }
 0x32e   : > { %8651 = vmatmul.mubr.msk.f32.gmra.mxu1 %vm330_vm1, %v13683_v50 }
 0x32f   : > { %8653 = vmatprep.mubr.msk.f32.mxu1 %vm330_vm1, %v13684_v23 }
 0x330   : > { %8704 = vmatmul.mubr.msk.f32.gmra.mxu0 %vm330_vm1, %v11780_v35  ;;  %v13690_v35 = vld [vmem:[#allocation58_spill] sm:$0xff] }
 0x331   : > { %8706 = vmatprep.mubr.msk.f32.mxu0 %vm330_vm1, %v11786_v49  ;;  %v13689_v49 = vld [vmem:[#allocation64_spill] sm:$0xff] }
 0x332   : > { %8654 = vmatmul.mubr.msk.f32.gmra.mxu1 %vm330_vm1, %v13685_v41 }
 0x333   : > { %8656 = vmatprep.mubr.msk.f32.mxu1 %vm330_vm1, %v13686_v13 }
 0x334   : > { %8707 = vmatmul.mubr.msk.f32.gmra.mxu0 %vm330_vm1, %v11797_v34  ;;  %v13692_v34 = vld [vmem:[#allocation56_spill] sm:$0xff] }
 0x335   : > { %8709 = vmatprep.mubr.msk.f32.mxu0 %vm330_vm1, %v11803_v14  ;;  %v13691_v14 = vld [vmem:[#allocation62_spill] sm:$0xff] }
 0x336   : > { %8657 = vmatmul.mubr.msk.f32.gmra.mxu1 %vm330_vm1, %v13687_v1 }
 0x337   : > { %8659 = vmatprep.mubr.msk.f32.mxu1 %vm330_vm1, %v13688_v24 }
 0x338   : > { %8710 = vmatmul.mubr.msk.f32.gmra.mxu0 %vm330_vm1, %v11814_v58  ;;  %v13694_v58 = vld [vmem:[#allocation39_spill] sm:$0xff] }
 0x339   : > { %8712 = vmatprep.mubr.msk.f32.mxu0 %vm330_vm1, %v11820_v20  ;;  %v13693_v20 = vld [vmem:[#allocation67_spill] sm:$0xff] }
 0x33a   : > { %8660 = vmatmul.mubr.msk.f32.gmra.mxu1 %vm330_vm1, %v13689_v49 }
 0x33b   : > { %8662 = vmatprep.mubr.msk.f32.mxu1 %vm330_vm1, %v13690_v35 }
 0x33c   : > { %8713 = vmatmul.mubr.msk.f32.gmra.mxu0 %vm330_vm1, %v11831_v33  ;;  %v13696_v33 = vld [vmem:[#allocation51_spill] sm:$0xff] }
 0x33d   : > { %8715 = vmatprep.mubr.msk.f32.mxu0 %vm330_vm1, %v11837_v60  ;;  %v13695_v60 = vld [vmem:[#allocation84_spill] sm:$0xff] }
 0x33e   : > { %8663 = vmatmul.mubr.msk.f32.gmra.mxu1 %vm330_vm1, %v13691_v14 }
 0x33f   : > { %8665 = vmatprep.mubr.msk.f32.mxu1 %vm330_vm1, %v13692_v34 }
 0x340   : > { %8716 = vmatmul.mubr.msk.f32.gmra.mxu0 %vm330_vm1, %v11848_v2  ;;  %v3674_v2 = vld [vmem:[#allocation2 + $0x190] sm:$0x3] }
 0x341   : > { %8718 = vmatprep.mubr.msk.f32.mxu0 %vm330_vm1, %v11854_v4  ;;  %v5330_v4 = vrot.slane %v11878_v8, 2  ;;  %v5333_v39 = vrot.slane %v3674_v2, 2 }
 0x342   : > { %8666 = vmatmul.mubr.msk.f32.gmra.mxu1 %vm330_vm1, %v13693_v20 }
 0x343   : > { %8668 = vmatprep.mubr.msk.f32.mxu1 %vm330_vm1, %v13694_v58 }
 0x344   : > { %8719 = vmatmul.mubr.msk.f32.gmra.mxu0 %vm330_vm1, %v11865_v37  ;;  %v5061_v37 = vrot.slane %v11878_v8, 1 }
 0x345   : > { %8721 = vmatprep.mubr.msk.f32.mxu0 %vm330_vm1, %v11871_v12  ;;  %v5331_v12 = vrot.slane %v11894_v7, 2 }
 0x346   : > { %8669 = vmatmul.mubr.msk.f32.gmra.mxu1 %vm330_vm1, %v13695_v60  ;;  %v12044_v46 = vsel %vm545_vm3, %v5061_v37, %v5062_v55 }
 0x347   : > { %8671 = vmatprep.mubr.msk.f32.mxu1 %vm330_vm1, %v13696_v33 }
 0x348   : > { %8722 = vmatmul.mubr.msk.f32.gmra.mxu0 %vm330_vm1, %v11884_v17  ;;  %v12036_v17 = vsel %vm1211_vm4, %v5330_v4, %v5331_v12 }
 0x349   : > { %8724 = vmatprep.mubr.msk.f32.mxu0 %vm330_vm1, %v11890_v32  ;;  %v5064_v32 = vrot.slane %v3674_v2, 1 }
 0x34a   : > { %8672 = vmatmul.mubr.msk.f32.gmra.mxu1 %vm330_vm1, %v11607_v40 }
 0x34b   : > { %8674 = vmatprep.mubr.msk.f32.mxu1 %vm330_vm1, %v11614_v57  ;;  %v12056_v2 = vsel %vm545_vm3, %v5062_v55, %v5064_v32 }
 0x34c   : > { %8725 = vmatmul.mubr.msk.f32.gmra.mxu0 %vm330_vm1, %v11901_v5  ;;  %v12049_v5 = vsel %vm1211_vm4, %v5331_v12, %v5333_v39 }
 0x34d   : > { %8727 = vmatprep.mubr.msk.f32.mxu0 %vm330_vm1, %v12036_v17 }
 0x34e   : > { %8675 = vmatmul.mubr.msk.f32.gmra.mxu1 %vm330_vm1, %v11624_v53 }
 0x34f   : > { %8677 = vmatprep.mubr.msk.f32.mxu1 %vm330_vm1, %v12044_v46 }
 0x350   : > { %8728 = vmatmul.mubr.msk.f32.gmra.mxu0 %vm330_vm1, %v12049_v5 }
 0x351   : > { %8782 = vmatprep.mubr.msk.f32.mxu0 %vm330_vm1, %v11288_v47 }
 0x352   : > { %8678 = vmatmul.mubr.msk.f32.gmra.mxu1 %vm330_vm1, %v12056_v2 }
 0x353   : > { %v8484_v4 = vpop.f32.mrf.mxu0  ;;  %8732 = vmatprep.mubr.msk.f32.mxu1 %vm330_vm1, %v11236_v63 }
 0x354   : > { %8783 = vmatmul.mubr.msk.f32.vlgmr.msra.gmra.mxu0 %vm330_vm1, %v11308_v44 }
 0x355   : > { %8785 = vmatprep.mubr.msk.f32.mxu0 %vm330_vm1, %v13674_v62  ;;  %v4231_v39 = vpop.f32.mrf.mxu0 }
 0x356   : > { %v8434_v37 = vpop.f32.mrf.mxu1  ;;  %8733 = vmatmul.mubr.msk.f32.vlgmr.msra.gmra.mxu1 %vm330_vm1, %v11252_v48 }
 0x357   : > { %v12068_v47 = vadd.f32 %v8484_v4, %v8434_v37  ;;  %8831 = vmatpush3.msk.msra.mxu1 %vm690_vm0, %v11916_v45  ;;  %8735 = vmatprep.mubr.msk.f32.mxu1 %vm330_vm1, %v11263_v56 }
 0x358   : > { %v8487_v63 = vpop.f32.mrf.mxu0  ;;  %8786 = vmatmul.mubr.msk.f32.gmra.mxu0 %vm330_vm1, %v13675_v6  ;;  %v3939_v44 = vpop.f32.mrf.mxu1 }
 0x359   : > { %v12076_v55 = vadd.f32 %v4231_v39, %v3939_v44  ;;  %8788 = vmatprep.mubr.msk.f32.mxu0 %vm330_vm1, %v13676_v19  ;;  %v13697_v44 = vld [vmem:[#allocation41_spill] sm:$0xff] }
 0x35a   : > { %v4241_v12 = vpop.f32.mrf.mxu0  ;;  %v8437_v48 = vpop.f32.mrf.mxu1  ;;  %8736 = vmatmul.mubr.msk.f32.gmra.mxu1 %vm330_vm1, %v11256_v54 }
 0x35b   : > { %v12082_v32 = vadd.f32 %v8487_v63, %v8437_v48  ;;  %8738 = vmatprep.mubr.msk.f32.mxu1 %vm330_vm1, %v11282_v52 }
 0x35c   : > { %v8490_v56 = vpop.f32.mrf.mxu0  ;;  %8789 = vmatmul.mubr.msk.f32.gmra.mxu0 %vm330_vm1, %v13677_v18  ;;  %v3949_v45 = vpop.f32.mrf.mxu1 }
 0x35d   : > { %v12088_v62 = vadd.f32 %v4241_v12, %v3949_v45  ;;  %8791 = vmatprep.mubr.msk.f32.mxu0 %vm330_vm1, %v13678_v38 }
 0x35e   : > { %v4251_v6 = vpop.f32.mrf.mxu0  ;;  %v8440_v19 = vpop.f32.mrf.mxu1  ;;  %8739 = vmatmul.mubr.msk.f32.gmra.mxu1 %vm330_vm1, %v11297_v36 }
 0x35f   : > { %v12094_v54 = vadd.f32 %v8490_v56, %v8440_v19  ;;  %8741 = vmatprep.mubr.msk.f32.mxu1 %vm330_vm1, %v11326_v9  ;;  %v13698_v56 = vld [vmem:[#allocation52_spill] sm:$0xff] }
 0x360   : > { %v8493_v52 = vpop.f32.mrf.mxu0  ;;  %8792 = vmatmul.mubr.msk.f32.gmra.mxu0 %vm330_vm1, %v13679_v27  ;;  %v3959_v18 = vpop.f32.mrf.mxu1 }
 0x361   : > { %v12100_v4 = vadd.f32 %v4251_v6, %v3959_v18  ;;  %8794 = vmatprep.mubr.msk.f32.mxu0 %vm330_vm1, %v13680_v31 }
 0x362   : > { %v4261_v38 = vpop.f32.mrf.mxu0  ;;  %v8443_v39 = vpop.f32.mrf.mxu1  ;;  %8742 = vmatmul.mubr.msk.f32.gmra.mxu1 %vm330_vm1, %v11343_v26 }
 0x363   : > { %v12106_v36 = vadd.f32 %v8493_v52, %v8443_v39  ;;  %8744 = vmatprep.mubr.msk.f32.mxu1 %vm330_vm1, %v11361_v25  ;;  %v13699_v52 = vld [vmem:[#allocation44_spill] sm:$0xff] }
 0x364   : > { %v8496_v9 = vpop.f32.mrf.mxu0  ;;  %8795 = vmatmul.mubr.msk.f32.gmra.mxu0 %vm330_vm1, %v13681_v28  ;;  %v3969_v27 = vpop.f32.mrf.mxu1 }
 0x365   : > { %v12112_v37 = vadd.f32 %v4261_v38, %v3969_v27  ;;  %8797 = vmatprep.mubr.msk.f32.mxu0 %vm330_vm1, %v13682_v43 }
 0x366   : > { %v4271_v31 = vpop.f32.mrf.mxu0  ;;  %v8446_v63 = vpop.f32.mrf.mxu1  ;;  %8745 = vmatmul.mubr.msk.f32.gmra.mxu1 %vm330_vm1, %v13697_v44  ;;  %v13701_v44 = vld [vmem:[#allocation68_spill] sm:$0xff] }
 0x367   : > { %v12118_v26 = vadd.f32 %v8496_v9, %v8446_v63  ;;  %8747 = vmatprep.mubr.msk.f32.mxu1 %vm330_vm1, %v11384_v29  ;;  %v13700_v9 = vld [vmem:[#allocation63_spill] sm:$0xff] }
 0x368   : > { %v8499_v25 = vpop.f32.mrf.mxu0  ;;  %8798 = vmatmul.mubr.msk.f32.gmra.mxu0 %vm330_vm1, %v13683_v50  ;;  %v3979_v28 = vpop.f32.mrf.mxu1 }
 0x369   : > { %v12124_v12 = vadd.f32 %v4271_v31, %v3979_v28  ;;  %8800 = vmatprep.mubr.msk.f32.mxu0 %vm330_vm1, %v13684_v23 }
 0x36a   : > { %v4281_v43 = vpop.f32.mrf.mxu0  ;;  %v8449_v48 = vpop.f32.mrf.mxu1  ;;  %8748 = vmatmul.mubr.msk.f32.gmra.mxu1 %vm330_vm1, %v13698_v56 }
 0x36b   : > { %v12130_v45 = vadd.f32 %v8499_v25, %v8449_v48  ;;  %8750 = vmatprep.mubr.msk.f32.mxu1 %vm330_vm1, %v11416_v42  ;;  %v13702_v48 = vld [vmem:[#allocation48_spill] sm:$0xff] }
 0x36c   : > { %v8502_v29 = vpop.f32.mrf.mxu0  ;;  %8801 = vmatmul.mubr.msk.f32.gmra.mxu0 %vm330_vm1, %v13685_v41  ;;  %v3989_v50 = vpop.f32.mrf.mxu1 }
 0x36d   : > { %v12136_v6 = vadd.f32 %v4281_v43, %v3989_v50  ;;  %8803 = vmatprep.mubr.msk.f32.mxu0 %vm330_vm1, %v13686_v13 }
 0x36e   : > { %v4291_v23 = vpop.f32.mrf.mxu0  ;;  %v8452_v19 = vpop.f32.mrf.mxu1  ;;  %8751 = vmatmul.mubr.msk.f32.gmra.mxu1 %vm330_vm1, %v13699_v52 }
 0x36f   : > { %v12142_v18 = vadd.f32 %v8502_v29, %v8452_v19  ;;  %8753 = vmatprep.mubr.msk.f32.mxu1 %vm330_vm1, %v11440_v61 }
 0x370   : > { %v8505_v42 = vpop.f32.mrf.mxu0  ;;  %8804 = vmatmul.mubr.msk.f32.gmra.mxu0 %vm330_vm1, %v13687_v1  ;;  %v3999_v41 = vpop.f32.mrf.mxu1 }
 0x371   : > { %v12148_v38 = vadd.f32 %v4291_v23, %v3999_v41  ;;  %8806 = vmatprep.mubr.msk.f32.mxu0 %vm330_vm1, %v13688_v24  ;;  %v13703_v23 = vld [vmem:[#allocation54_spill] sm:$0xff]  ;;  %v13704_v41 = vld [vmem:[#allocation69_spill] sm:$0xff] }
 0x372   : > { %v4301_v13 = vpop.f32.mrf.mxu0  ;;  %v8455_v39 = vpop.f32.mrf.mxu1  ;;  %8754 = vmatmul.mubr.msk.f32.gmra.mxu1 %vm330_vm1, %v13700_v9 }
 0x373   : > { %v12154_v27 = vadd.f32 %v8505_v42, %v8455_v39  ;;  %8756 = vmatprep.mubr.msk.f32.mxu1 %vm330_vm1, %v11463_v3 }
 0x374   : > { %v8508_v61 = vpop.f32.mrf.mxu0  ;;  %8807 = vmatmul.mubr.msk.f32.gmra.mxu0 %vm330_vm1, %v13689_v49  ;;  %v4009_v1 = vpop.f32.mrf.mxu1 }
 0x375   : > { %v12160_v31 = vadd.f32 %v4301_v13, %v4009_v1  ;;  %8809 = vmatprep.mubr.msk.f32.mxu0 %vm330_vm1, %v13690_v35  ;;  %v13705_v1 = vld [vmem:[#allocation82_spill] sm:$0xff] }
 0x376   : > { %v4311_v24 = vpop.f32.mrf.mxu0  ;;  %v8458_v63 = vpop.f32.mrf.mxu1  ;;  %8757 = vmatmul.mubr.msk.f32.gmra.mxu1 %vm330_vm1, %v13701_v44 }
 0x377   : > { %v12166_v25 = vadd.f32 %v8508_v61, %v8458_v63  ;;  %8759 = vmatprep.mubr.msk.f32.mxu1 %vm330_vm1, %v11486_v59  ;;  %v12220_v63 = vld [vmem:[#allocation2 + $0x1a0] sm:$0xff] }
 0x378   : > { %v8511_v3 = vpop.f32.mrf.mxu0  ;;  %8810 = vmatmul.mubr.msk.f32.gmra.mxu0 %vm330_vm1, %v13691_v14  ;;  %v4019_v49 = vpop.f32.mrf.mxu1 }
 0x379   : > { %v12172_v28 = vadd.f32 %v4311_v24, %v4019_v49  ;;  %8812 = vmatprep.mubr.msk.f32.mxu0 %vm330_vm1, %v13692_v34 }
 0x37a   : > { %v4321_v35 = vpop.f32.mrf.mxu0  ;;  %v8461_v43 = vpop.f32.mrf.mxu1  ;;  %8760 = vmatmul.mubr.msk.f32.gmra.mxu1 %vm330_vm1, %v13702_v48  ;;  %v5867_v48 = vrot.slane %v12220_v63, 1 }
 0x37b   : > { %v12178_v56 = vadd.f32 %v8511_v3, %v8461_v43  ;;  %8762 = vmatprep.mubr.msk.f32.mxu1 %vm330_vm1, %v11509_v15  ;;  %v12225_v3 = vld [vmem:[#allocation2 + $0x1a8] sm:$0x3] }
 0x37c   : > { %v8514_v59 = vpop.f32.mrf.mxu0  ;;  %8813 = vmatmul.mubr.msk.f32.gmra.mxu0 %vm330_vm1, %v13693_v20  ;;  %v4029_v14 = vpop.f32.mrf.mxu1 }
 0x37d   : > { %v12184_v29 = vadd.f32 %v4321_v35, %v4029_v14  ;;  %8815 = vmatprep.mubr.msk.f32.mxu0 %vm330_vm1, %v13694_v58 }
 0x37e   : > { %v4331_v34 = vpop.f32.mrf.mxu0  ;;  %v8464_v50 = vpop.f32.mrf.mxu1  ;;  %8763 = vmatmul.mubr.msk.f32.gmra.mxu1 %vm330_vm1, %v13703_v23 }
 0x37f   : > { %v12190_v19 = vadd.f32 %v8514_v59, %v8464_v50  ;;  %8765 = vmatprep.mubr.msk.f32.mxu1 %vm330_vm1, %v11532_v0 }
 0x380   : > { %v8517_v15 = vpop.f32.mrf.mxu0  ;;  %8816 = vmatmul.mubr.msk.f32.gmra.mxu0 %vm330_vm1, %v13695_v60  ;;  %v4039_v20 = vpop.f32.mrf.mxu1 }
 0x381   : > { %v12196_v52 = vadd.f32 %v4331_v34, %v4039_v20  ;;  %8818 = vmatprep.mubr.msk.f32.mxu0 %vm330_vm1, %v13696_v33  ;;  %v12212_v33 = vld [vmem:[#allocation2 + $0x198] sm:$0xff] }
 0x382   : > { %v4341_v58 = vpop.f32.mrf.mxu0  ;;  %v8467_v42 = vpop.f32.mrf.mxu1  ;;  %8766 = vmatmul.mubr.msk.f32.gmra.mxu1 %vm330_vm1, %v13704_v41 }
 0x383   : > { %v12202_v13 = vadd.f32 %v8517_v15, %v8467_v42  ;;  %8768 = vmatprep.mubr.msk.f32.mxu1 %vm330_vm1, %v11555_v51  ;;  %v13706_v51 = vld [vmem:[#allocation45_spill] sm:$0xff] }
 0x384   : > { %v8520_v0 = vpop.f32.mrf.mxu0  ;;  %8819 = vmatmul.mubr.msk.f32.gmra.mxu0 %vm330_vm1, %v11607_v40  ;;  %v4049_v60 = vpop.f32.mrf.mxu1 }
 0x385   : > { %v12208_v39 = vadd.f32 %v4341_v58, %v4049_v60  ;;  %8821 = vmatprep.mubr.msk.f32.mxu0 %vm330_vm1, %v11614_v57  ;;  %v5866_v57 = vrot.slane %v12212_v33, 1 }
 0x386   : > { %v4351_v9 = vpop.f32.mrf.mxu0  ;;  %v8470_v61 = vpop.f32.mrf.mxu1  ;;  %8769 = vmatmul.mubr.msk.f32.gmra.mxu1 %vm330_vm1, %v13705_v1 }
 0x387   : > { %v12216_v24 = vadd.f32 %v8520_v0, %v8470_v61  ;;  %8771 = vmatprep.mubr.msk.f32.mxu1 %vm330_vm1, %v13706_v51 }
 0x388   : > { %v8523_v40 = vpop.f32.mrf.mxu0  ;;  %8822 = vmatmul.mubr.msk.f32.gmra.mxu0 %vm330_vm1, %v11624_v53  ;;  %v4059_v44 = vpop.f32.mrf.mxu1  ;;  %v5869_v53 = vrot.slane %v12225_v3, 1 }
 0x389   : > { %v12227_v49 = vadd.f32 %v4351_v9, %v4059_v44  ;;  %8824 = vmatprep.mubr.msk.f32.mxu0 %vm330_vm1, %v12044_v46  ;;  %v5868_v46 = vsel %vm545_vm3, %v5866_v57, %v5867_v48 }
 0x38a   : > { %v4361_v35 = vpop.f32.mrf.mxu0  ;;  %v8473_v43 = vpop.f32.mrf.mxu1  ;;  %8772 = vmatmul.mubr.msk.f32.gmra.mxu1 %vm330_vm1, %v11589_v30 }
 0x38b   : > { %v12234_v59 = vadd.f32 %v8523_v40, %v8473_v43  ;;  %8774 = vmatprep.mubr.msk.f32.mxu1 %vm330_vm1, %v11878_v8  ;;  %v5870_v8 = vsel %vm545_vm3, %v5867_v48, %v5869_v53 }
 0x38c   : > { %v8526_v14 = vpop.f32.mrf.mxu0  ;;  %8825 = vmatmul.mubr.msk.f32.gmra.mxu0 %vm330_vm1, %v12056_v2  ;;  %v4069_v34 = vpop.f32.mrf.mxu1 }
 0x38d   : > { %v12242_v50 = vadd.f32 %v4361_v35, %v4069_v34  ;;  %8827 = vmatprep.mubr.msk.f32.mxu0 %vm330_vm1, %v5868_v46  ;;  %v13707_v46 = vld [vmem:[#allocation57_spill] sm:$0xff] }
 0x38e   : > { %v4371_v30 = vpop.f32.mrf.mxu0  ;;  %v8476_v23 = vpop.f32.mrf.mxu1  ;;  %8775 = vmatmul.mubr.msk.f32.gmra.mxu1 %vm330_vm1, %v11894_v7 }
 0x38f   : > { %v12247_v15 = vadd.f32 %v8526_v14, %v8476_v23  ;;  %8777 = vmatprep.mubr.msk.f32.mxu1 %vm330_vm1, %v12212_v33 }
 0x390   : > { %v8529_v2 = vpop.f32.mrf.mxu0  ;;  %8828 = vmatmul.mubr.msk.f32.gmra.mxu0 %vm330_vm1, %v5870_v8  ;;  %v4079_v20 = vpop.f32.mrf.mxu1 }
 0x391   : > { %v12253_v58 = vadd.f32 %v4371_v30, %v4079_v20  ;;  %v13708_v30 = vld [vmem:[#allocation61_spill] sm:$0xff] }
 0x392   : > { %v4381_v42 = vpop.f32.mrf.mxu0  ;;  %v8479_v41 = vpop.f32.mrf.mxu1  ;;  %8778 = vmatmul.mubr.msk.f32.gmra.mxu1 %vm330_vm1, %v12220_v63 }
 0x393   : > { %v12257_v0 = vadd.f32 %v8529_v2, %v8479_v41  ;;  %8832 = vmatprep.mubr.msk.f32.mxu1 %vm330_vm1, %v11667_v11 }
 0x394   : > { %v8584_v7 = vpop.f32.mrf.mxu0  ;;  %v4089_v60 = vpop.f32.mrf.mxu1 }
 0x395   : > { %v12261_v9 = vadd.f32 %v4381_v42, %v4089_v60  ;;  %v13709_v42 = vld [vmem:[#allocation65_spill] sm:$0xff] }
 0x396   : > { %v4869_v61 = vpop.f32.mrf.mxu0  ;;  %v8534_v1 = vpop.f32.mrf.mxu1  ;;  %8833 = vmatmul.mubr.msk.f32.vlgmr.msra.gmra.mxu1 %vm330_vm1, %v11678_v10 }
 0x397   : > { %v4763_v51 = vadd.f32 %v8534_v1, %v12068_v47  ;;  %8835 = vmatprep.mubr.msk.f32.mxu1 %vm330_vm1, %v11684_v21 }
 0x398   : > { %v8587_v40 = vpop.f32.mrf.mxu0  ;;  %v4603_v44 = vpop.f32.mrf.mxu1 }
 0x399   : > { %v4762_v57 = vadd.f32 %v4603_v44, %v12076_v55  ;;  %v12269_v35 = vadd.f32 %v8584_v7, %v4763_v51  ;;  %v13710_v7 = vld [vmem:[#allocation83_spill] sm:$0xff]  ;;  %v13711_v44 = vld [vmem:[#allocation85_spill] sm:$0xff] }
 0x39a   : > { %v4879_v11 = vpop.f32.mrf.mxu0  ;;  %v8537_v43 = vpop.f32.mrf.mxu1  ;;  %8836 = vmatmul.mubr.msk.f32.gmra.mxu1 %vm330_vm1, %v11695_v22 }
 0x39b   : > { %v4765_v48 = vadd.f32 %v8537_v43, %v12082_v32  ;;  %8838 = vmatprep.mubr.msk.f32.mxu1 %vm330_vm1, %v11701_v16  ;;  %v12276_v10 = vadd.f32 %v4869_v61, %v4762_v57 }
 0x39c   : > { %v8590_v47 = vpop.f32.mrf.mxu0  ;;  %v4613_v21 = vpop.f32.mrf.mxu1 }
 0x39d   : > { %v4764_v53 = vadd.f32 %v4613_v21, %v12088_v62  ;;  %v12279_v14 = vadd.f32 %v8587_v40, %v4765_v48 }
 0x39e   : > { %v4889_v55 = vpop.f32.mrf.mxu0  ;;  %v8540_v34 = vpop.f32.mrf.mxu1  ;;  %8839 = vmatmul.mubr.msk.f32.gmra.mxu1 %vm330_vm1, %v13707_v46  ;;  %v13714_v46 = vld [vmem:[#allocation86_spill] sm:$0xff] }
 0x39f   : > { %v4767_v22 = vadd.f32 %v8540_v34, %v12094_v54  ;;  %8841 = vmatprep.mubr.msk.f32.mxu1 %vm330_vm1, %v13708_v30  ;;  %v12286_v32 = vadd.f32 %v4879_v11, %v4764_v53  ;;  %v13712_v11 = vld [vmem:[#allocation87_spill] sm:$0xff] }
 0x3a0   : > { %v8593_v16 = vpop.f32.mrf.mxu0  ;;  %v4623_v23 = vpop.f32.mrf.mxu1 }
 0x3a1   : > { %v4766_v8 = vadd.f32 %v4623_v23, %v12100_v4  ;;  %v12289_v2 = vadd.f32 %v8590_v47, %v4767_v22 }
 0x3a2   : > { %v4899_v62 = vpop.f32.mrf.mxu0  ;;  %v8543_v20 = vpop.f32.mrf.mxu1  ;;  %8842 = vmatmul.mubr.msk.f32.gmra.mxu1 %vm330_vm1, %v13709_v42  ;;  %v13716_v42 = vld [vmem:[#allocation70_spill] sm:$0xff] }
 0x3a3   : > { %v4769_v41 = vadd.f32 %v8543_v20, %v12106_v36  ;;  %8844 = vmatprep.mubr.msk.f32.mxu1 %vm330_vm1, %v13710_v7  ;;  %v12296_v54 = vadd.f32 %v4889_v55, %v4766_v8  ;;  %v13713_v55 = vld [vmem:[#allocation71_spill] sm:$0xff] }
 0x3a4   : > { %v8596_v60 = vpop.f32.mrf.mxu0  ;;  %v4633_v61 = vpop.f32.mrf.mxu1 }
 0x3a5   : > { %v4768_v1 = vadd.f32 %v4633_v61, %v12112_v37  ;;  %v12299_v51 = vadd.f32 %v8593_v16, %v4769_v41 }
 0x3a6   : > { %v4909_v4 = vpop.f32.mrf.mxu0  ;;  %v8546_v40 = vpop.f32.mrf.mxu1  ;;  %8845 = vmatmul.mubr.msk.f32.gmra.mxu1 %vm330_vm1, %v13711_v44  ;;  %v13718_v44 = vld [vmem:[#allocation91_spill] sm:$0xff] }
 0x3a7   : > { %v4771_v57 = vadd.f32 %v8546_v40, %v12118_v26  ;;  %8847 = vmatprep.mubr.msk.f32.mxu1 %vm330_vm1, %v13712_v11  ;;  %v12306_v36 = vadd.f32 %v4899_v62, %v4768_v1  ;;  %v13715_v62 = vld [vmem:[#allocation89_spill] sm:$0xff] }
 0x3a8   : > { %v8599_v43 = vpop.f32.mrf.mxu0  ;;  %v4643_v48 = vpop.f32.mrf.mxu1 }
 0x3a9   : > { %v4770_v47 = vadd.f32 %v4643_v48, %v12124_v12  ;;  %v12309_v21 = vadd.f32 %v8596_v60, %v4771_v57 }
 0x3aa   : > { %v4919_v37 = vpop.f32.mrf.mxu0  ;;  %v8549_v53 = vpop.f32.mrf.mxu1  ;;  %8848 = vmatmul.mubr.msk.f32.gmra.mxu1 %vm330_vm1, %v13713_v55  ;;  %v13720_v55 = vld [vmem:[#allocation90_spill] sm:$0xff] }
 0x3ab   : > { %v4773_v34 = vadd.f32 %v8549_v53, %v12130_v45  ;;  %8850 = vmatprep.mubr.msk.f32.mxu1 %vm330_vm1, %v13714_v46  ;;  %v12316_v26 = vadd.f32 %v4909_v4, %v4770_v47  ;;  %v13717_v4 = vld [vmem:[#allocation88_spill] sm:$0xff] }
 0x3ac   : > { %v8602_v22 = vpop.f32.mrf.mxu0  ;;  %v4653_v30 = vpop.f32.mrf.mxu1 }
 0x3ad   : > { %v4772_v16 = vadd.f32 %v4653_v30, %v12136_v6  ;;  %v12319_v23 = vadd.f32 %v8599_v43, %v4773_v34 }
 0x3ae   : > { %v4929_v12 = vpop.f32.mrf.mxu0  ;;  %v8552_v8 = vpop.f32.mrf.mxu1  ;;  %8851 = vmatmul.mubr.msk.f32.gmra.mxu1 %vm330_vm1, %v13715_v62  ;;  %v13722_v62 = vld [vmem:[#allocation72_spill] sm:$0xff] }
 0x3af   : > { %v4775_v20 = vadd.f32 %v8552_v8, %v12142_v18  ;;  %8853 = vmatprep.mubr.msk.f32.mxu1 %vm330_vm1, %v13716_v42  ;;  %v12326_v45 = vadd.f32 %v4919_v37, %v4772_v16  ;;  %v13719_v37 = vld [vmem:[#allocation73_spill] sm:$0xff] }
 0x3b0   : > { %v8605_v41 = vpop.f32.mrf.mxu0  ;;  %v4663_v7 = vpop.f32.mrf.mxu1 }
 0x3b1   : > { %v4774_v60 = vadd.f32 %v4663_v7, %v12148_v38  ;;  %v12329_v61 = vadd.f32 %v8602_v22, %v4775_v20 }
 0x3b2   : > { %v4939_v6 = vpop.f32.mrf.mxu0  ;;  %v8555_v1 = vpop.f32.mrf.mxu1  ;;  %8854 = vmatmul.mubr.msk.f32.gmra.mxu1 %vm330_vm1, %v13717_v4  ;;  %v13724_v4 = vld [vmem:[#allocation95_spill] sm:$0xff] }
 0x3b3   : > { %v4777_v40 = vadd.f32 %v8555_v1, %v12154_v27  ;;  %8856 = vmatprep.mubr.msk.f32.mxu1 %vm330_vm1, %v13718_v44  ;;  %v12336_v18 = vadd.f32 %v4929_v12, %v4774_v60  ;;  %v13721_v12 = vld [vmem:[#allocation93_spill] sm:$0xff] }
 0x3b4   : > { %v8608_v57 = vpop.f32.mrf.mxu0  ;;  %v4673_v11 = vpop.f32.mrf.mxu1 }
 0x3b5   : > { %v4776_v43 = vadd.f32 %v4673_v11, %v12160_v31  ;;  %v12339_v48 = vadd.f32 %v8605_v41, %v4777_v40 }
 0x3b6   : > { %v4949_v38 = vpop.f32.mrf.mxu0  ;;  %v8558_v47 = vpop.f32.mrf.mxu1  ;;  %8857 = vmatmul.mubr.msk.f32.gmra.mxu1 %vm330_vm1, %v13719_v37  ;;  %v13726_v37 = vld [vmem:[#allocation94_spill] sm:$0xff] }
 0x3b7   : > { %v4779_v53 = vadd.f32 %v8558_v47, %v12166_v25  ;;  %8859 = vmatprep.mubr.msk.f32.mxu1 %vm330_vm1, %v13720_v55  ;;  %v12346_v27 = vadd.f32 %v4939_v6, %v4776_v43  ;;  %v13723_v6 = vld [vmem:[#allocation92_spill] sm:$0xff] }
 0x3b8   : > { %v8611_v34 = vpop.f32.mrf.mxu0  ;;  %v4683_v46 = vpop.f32.mrf.mxu1 }
 0x3b9   : > { %v4778_v22 = vadd.f32 %v4683_v46, %v12172_v28  ;;  %v12349_v30 = vadd.f32 %v8608_v57, %v4779_v53 }
 0x3ba   : > { %v4959_v31 = vpop.f32.mrf.mxu0  ;;  %v8561_v16 = vpop.f32.mrf.mxu1  ;;  %8860 = vmatmul.mubr.msk.f32.gmra.mxu1 %vm330_vm1, %v13721_v12  ;;  %v13728_v12 = vld [vmem:[#allocation74_spill] sm:$0xff] }
 0x3bb   : > { %v4781_v8 = vadd.f32 %v8561_v16, %v12178_v56  ;;  %8862 = vmatprep.mubr.msk.f32.mxu1 %vm330_vm1, %v13722_v62  ;;  %v12356_v25 = vadd.f32 %v4949_v38, %v4778_v22  ;;  %v13725_v38 = vld [vmem:[#allocation75_spill] sm:$0xff] }
 0x3bc   : > { %v8614_v20 = vpop.f32.mrf.mxu0  ;;  %v4693_v42 = vpop.f32.mrf.mxu1 }
 0x3bd   : > { %v4780_v41 = vadd.f32 %v4693_v42, %v12184_v29  ;;  %v12359_v7 = vadd.f32 %v8611_v34, %v4781_v8 }
 0x3be   : > { %v4969_v28 = vpop.f32.mrf.mxu0  ;;  %v8564_v60 = vpop.f32.mrf.mxu1  ;;  %8863 = vmatmul.mubr.msk.f32.gmra.mxu1 %vm330_vm1, %v13723_v6 }
 0x3bf   : > { %v4783_v1 = vadd.f32 %v8564_v60, %v12190_v19  ;;  %8865 = vmatprep.mubr.msk.f32.mxu1 %vm330_vm1, %v13724_v4  ;;  %v12366_v56 = vadd.f32 %v4959_v31, %v4780_v41  ;;  %v13727_v31 = vld [vmem:[#allocation97_spill] sm:$0xff]  ;;  %v6135_v60 = vrot.slane %v12212_v33, 2 }
 0x3c0   : > { %v8617_v40 = vpop.f32.mrf.mxu0  ;;  %v4703_v44 = vpop.f32.mrf.mxu1 }
 0x3c1   : > { %v4782_v57 = vadd.f32 %v4703_v44, %v12196_v52  ;;  %v12369_v11 = vadd.f32 %v8614_v20, %v4783_v1  ;;  %v6138_v44 = vrot.slane %v12225_v3, 2 }
 0x3c2   : > { %v4979_v29 = vpop.f32.mrf.mxu0  ;;  %v8567_v43 = vpop.f32.mrf.mxu1  ;;  %8866 = vmatmul.mubr.msk.f32.gmra.mxu1 %vm330_vm1, %v13725_v38 }
 0x3c3   : > { %v4785_v47 = vadd.f32 %v8567_v43, %v12202_v13  ;;  %8868 = vmatprep.mubr.msk.f32.mxu1 %vm330_vm1, %v13726_v37  ;;  %v12376_v19 = vadd.f32 %v4969_v28, %v4782_v57  ;;  %v13729_v28 = vld [vmem:[#allocation96_spill] sm:$0xff] }
 0x3c4   : > { %v8620_v53 = vpop.f32.mrf.mxu0  ;;  %v4713_v55 = vpop.f32.mrf.mxu1 }
 0x3c5   : > { %v4784_v34 = vadd.f32 %v4713_v55, %v12208_v39  ;;  %v12379_v46 = vadd.f32 %v8617_v40, %v4785_v47 }
 0x3c6   : > { %v4989_v52 = vpop.f32.mrf.mxu0  ;;  %v8570_v22 = vpop.f32.mrf.mxu1  ;;  %8869 = vmatmul.mubr.msk.f32.gmra.mxu1 %vm330_vm1, %v13727_v31 }
 0x3c7   : > { %v4787_v16 = vadd.f32 %v8570_v22, %v12216_v24  ;;  %8871 = vmatprep.mubr.msk.f32.mxu1 %vm330_vm1, %v13728_v12  ;;  %v12386_v13 = vadd.f32 %v4979_v29, %v4784_v34 }
 0x3c8   : > { %v8623_v8 = vpop.f32.mrf.mxu0  ;;  %v4723_v62 = vpop.f32.mrf.mxu1 }
 0x3c9   : > { %v4786_v20 = vadd.f32 %v4723_v62, %v12227_v49  ;;  %v12389_v42 = vadd.f32 %v8620_v53, %v4787_v16  ;;  %v6136_v49 = vrot.slane %v12220_v63, 2 }
 0x3ca   : > { %v4999_v39 = vpop.f32.mrf.mxu0  ;;  %v8573_v41 = vpop.f32.mrf.mxu1  ;;  %8872 = vmatmul.mubr.msk.f32.gmra.mxu1 %vm330_vm1, %v13729_v28 }
 0x3cb   : > { %v4789_v24 = vadd.f32 %v8573_v41, %v12234_v59  ;;  %8874 = vmatprep.mubr.msk.f32.mxu1 %vm330_vm1, %v12036_v17  ;;  %v12397_v6 = vadd.f32 %v4989_v52, %v4786_v20  ;;  %v6137_v33 = vsel %vm1211_vm4, %v6135_v60, %v6136_v49  ;;  %v6139_v3 = vsel %vm1211_vm4, %v6136_v49, %v6138_v44 }
 0x3cc   : > { %v8626_v1 = vpop.f32.mrf.mxu0  ;;  %v4733_v4 = vpop.f32.mrf.mxu1 }
 0x3cd   : > { %v4788_v40 = vadd.f32 %v4733_v4, %v12242_v50  ;;  %v12402_v57 = vadd.f32 %v8623_v8, %v4789_v24 }
 0x3ce   : > { %v5009_v29 = vpop.f32.mrf.mxu0  ;;  %v8576_v43 = vpop.f32.mrf.mxu1  ;;  %8875 = vmatmul.mubr.msk.f32.gmra.mxu1 %vm330_vm1, %v12049_v5 }
 0x3cf   : > { %v4791_v17 = vadd.f32 %v8576_v43, %v12247_v15  ;;  %8877 = vmatprep.mubr.msk.f32.mxu1 %vm330_vm1, %v6137_v33  ;;  %v12409_v59 = vadd.f32 %v4999_v39, %v4788_v40 }
 0x3d0   : > { %v8629_v63 = vpop.f32.mrf.mxu0  ;;  %v4743_v38 = vpop.f32.mrf.mxu1 }
 0x3d1   : > { %v4790_v50 = vadd.f32 %v4743_v38, %v12253_v58  ;;  %v12413_v47 = vadd.f32 %v8626_v1, %v4791_v17 }
 0x3d2   : > { %v5019_v37 = vpop.f32.mrf.mxu0  ;;  %v8579_v53 = vpop.f32.mrf.mxu1  ;;  %8878 = vmatmul.mubr.msk.f32.gmra.mxu1 %vm330_vm1, %v6139_v3 }
 0x3d3   : > { %v4793_v5 = vadd.f32 %v8579_v53, %v12257_v0  ;;  %v12417_v55 = vadd.f32 %v5009_v29, %v4790_v50 }
 0x3d4   : > { %v8684_v15 = vpop.f32.mrf.mxu0  ;;  %v4753_v34 = vpop.f32.mrf.mxu1 }
 0x3d5   : > { %v4792_v52 = vadd.f32 %v4753_v34, %v12261_v9  ;;  %v12420_v22 = vadd.f32 %v8629_v63, %v4793_v5 }
 0x3d6   : > { %v12422_v31 = vpop.f32.mrf.mxu0  ;;  %v8634_v58 = vpop.f32.mrf.mxu1 }
 0x3d7   : > { %v5299_v16 = vadd.f32 %v8634_v58, %v12269_v35  ;;  %v12425_v12 = vadd.f32 %v5019_v37, %v4792_v52 }
 0x3d8   : > { %v8687_v8 = vpop.f32.mrf.mxu0  ;;  %v5139_v62 = vpop.f32.mrf.mxu1 }
 0x3d9   : > { %v12428_v20 = vadd.f32 %v5139_v62, %v12276_v10  ;;  %v12430_v0 = vadd.f32 %v8684_v15, %v5299_v16 }
 0x3da   : > { %v12432_v39 = vpop.f32.mrf.mxu0  ;;  %v8637_v41 = vpop.f32.mrf.mxu1 }
 0x3db   : > { %v5301_v9 = vadd.f32 %v8637_v41, %v12279_v14 }
 0x3dc   : > { %v8690_v28 = vpop.f32.mrf.mxu0  ;;  %v5149_v60 = vpop.f32.mrf.mxu1 }
 0x3dd   : > { %v12436_v24 = vadd.f32 %v5149_v60, %v12286_v32  ;;  %v12438_v35 = vadd.f32 %v8687_v8, %v5301_v9 }
 0x3de   : > { %v12440_v1 = vpop.f32.mrf.mxu0  ;;  %v8640_v4 = vpop.f32.mrf.mxu1 }
 0x3df   : > { %v5303_v10 = vadd.f32 %v8640_v4, %v12289_v2 }
 0x3e0   : > { %v8693_v49 = vpop.f32.mrf.mxu0  ;;  %v5159_v40 = vpop.f32.mrf.mxu1 }
 0x3e1   : > { %v12444_v44 = vadd.f32 %v5159_v40, %v12296_v54  ;;  %v12446_v29 = vadd.f32 %v8690_v28, %v5303_v10 }
 0x3e2   : > { %v12448_v14 = vpop.f32.mrf.mxu0  ;;  %v8643_v43 = vpop.f32.mrf.mxu1 }
 0x3e3   : > { %v5305_v32 = vadd.f32 %v8643_v43, %v12299_v51 }
 0x3e4   : > { %v8696_v33 = vpop.f32.mrf.mxu0  ;;  %v5169_v17 = vpop.f32.mrf.mxu1 }
 0x3e5   : > { %v12452_v63 = vadd.f32 %v5169_v17, %v12306_v36  ;;  %v12454_v38 = vadd.f32 %v8693_v49, %v5305_v32 }
 0x3e6   : > { %v12456_v2 = vpop.f32.mrf.mxu0  ;;  %v8646_v50 = vpop.f32.mrf.mxu1 }
 0x3e7   : > { %v5307_v54 = vadd.f32 %v8646_v50, %v12309_v21 }
 0x3e8   : > { %v8699_v3 = vpop.f32.mrf.mxu0  ;;  %v5179_v37 = vpop.f32.mrf.mxu1 }
 0x3e9   : > { %v12460_v53 = vadd.f32 %v5179_v37, %v12316_v26  ;;  %v12462_v5 = vadd.f32 %v8696_v33, %v5307_v54 }
 0x3ea   : > { %v12464_v51 = vpop.f32.mrf.mxu0  ;;  %v8649_v15 = vpop.f32.mrf.mxu1 }
 0x3eb   : > { %v5309_v36 = vadd.f32 %v8649_v15, %v12319_v23 }
 0x3ec   : > { %v8702_v34 = vpop.f32.mrf.mxu0  ;;  %v5189_v52 = vpop.f32.mrf.mxu1 }
 0x3ed   : > { %v12468_v58 = vadd.f32 %v5189_v52, %v12326_v45  ;;  %v12470_v16 = vadd.f32 %v8699_v3, %v5309_v36 }
 0x3ee   : > { %v12472_v21 = vpop.f32.mrf.mxu0  ;;  %v8652_v8 = vpop.f32.mrf.mxu1 }
 0x3ef   : > { %v5311_v26 = vadd.f32 %v8652_v8, %v12329_v61 }
 0x3f0   : > { %v8705_v62 = vpop.f32.mrf.mxu0  ;;  %v5199_v41 = vpop.f32.mrf.mxu1 }
 0x3f1   : > { %v12476_v9 = vadd.f32 %v5199_v41, %v12336_v18  ;;  %v12478_v28 = vadd.f32 %v8702_v34, %v5311_v26 }
 0x3f2   : > { %v12480_v23 = vpop.f32.mrf.mxu0  ;;  %v8655_v60 = vpop.f32.mrf.mxu1 }
 0x3f3   : > { %v5313_v45 = vadd.f32 %v8655_v60, %v12339_v48 }
 0x3f4   : > { %v8708_v4 = vpop.f32.mrf.mxu0  ;;  %v5209_v10 = vpop.f32.mrf.mxu1 }
 0x3f5   : > { %v12484_v49 = vadd.f32 %v5209_v10, %v12346_v27  ;;  %v12486_v40 = vadd.f32 %v8705_v62, %v5313_v45 }
 0x3f6   : > { %v12488_v61 = vpop.f32.mrf.mxu0  ;;  %v8658_v43 = vpop.f32.mrf.mxu1 }
 0x3f7   : > { %v5315_v18 = vadd.f32 %v8658_v43, %v12349_v30 }
 0x3f8   : > { %v8711_v32 = vpop.f32.mrf.mxu0  ;;  %v5219_v33 = vpop.f32.mrf.mxu1 }
 0x3f9   : > { %v12492_v17 = vadd.f32 %v5219_v33, %v12356_v25  ;;  %v12494_v50 = vadd.f32 %v8708_v4, %v5315_v18 }
 0x3fa   : > { %v12496_v48 = vpop.f32.mrf.mxu0  ;;  %v8661_v54 = vpop.f32.mrf.mxu1 }
 0x3fb   : > { %v5317_v27 = vadd.f32 %v8661_v54, %v12359_v7 }
 0x3fc   : > { %v8714_v3 = vpop.f32.mrf.mxu0  ;;  %v5229_v37 = vpop.f32.mrf.mxu1 }
 0x3fd   : > { %v12500_v15 = vadd.f32 %v5229_v37, %v12366_v56  ;;  %v12502_v36 = vadd.f32 %v8711_v32, %v5317_v27 }
 0x3fe   : > { %v12504_v30 = vpop.f32.mrf.mxu0  ;;  %v8664_v34 = vpop.f32.mrf.mxu1 }
 0x3ff   : > { %13730 = vst [vmem:[#allocation99_spill] sm:$0xff] %v12504_v30  ;;  %v5319_v25 = vadd.f32 %v8664_v34, %v12369_v11 }
 0x400   : > { %v8717_v52 = vpop.f32.mrf.mxu0  ;;  %v5239_v8 = vpop.f32.mrf.mxu1 }
 0x401   : > { %v12508_v26 = vadd.f32 %v5239_v8, %v12376_v19  ;;  %v12510_v62 = vadd.f32 %v8714_v3, %v5319_v25 }
 0x402   : > { %v12512_v7 = vpop.f32.mrf.mxu0  ;;  %v8667_v41 = vpop.f32.mrf.mxu1 }
 0x403   : > { %13731 = vst [vmem:[#allocation77_spill] sm:$0xff] %v12508_v26  ;;  %13732 = vst [vmem:[#allocation98_spill] sm:$0xff] %v12512_v7  ;;  %v5321_v56 = vadd.f32 %v8667_v41, %v12379_v46 }
 0x404   : > { %v8720_v60 = vpop.f32.mrf.mxu0  ;;  %v5249_v45 = vpop.f32.mrf.mxu1 }
 0x405   : > { %v12516_v4 = vadd.f32 %v5249_v45, %v12386_v13  ;;  %v12518_v10 = vadd.f32 %v8717_v52, %v5321_v56 }
 0x406   : > { %v12520_v11 = vpop.f32.mrf.mxu0  ;;  %v8670_v43 = vpop.f32.mrf.mxu1 }
 0x407   : > { %13733 = vst [vmem:[#allocation101_spill] sm:$0xff] %v12516_v4  ;;  %13734 = vst [vmem:[#allocation76_spill] sm:$0xff] %v12520_v11  ;;  %v5323_v19 = vadd.f32 %v8670_v43, %v12389_v42 }
 0x408   : > { %v8723_v18 = vpop.f32.mrf.mxu0  ;;  %v5259_v32 = vpop.f32.mrf.mxu1 }
 0x409   : > { %v12524_v33 = vadd.f32 %v5259_v32, %v12397_v6  ;;  %v12526_v54 = vadd.f32 %v8720_v60, %v5323_v19 }
 0x40a   : > { %v12528_v46 = vpop.f32.mrf.mxu0  ;;  %v8673_v27 = vpop.f32.mrf.mxu1 }
 0x40b   : > { %13735 = vst [vmem:[#allocation100_spill] sm:$0xff] %v12524_v33  ;;  %13736 = vst [vmem:[#allocation79_spill] sm:$0xff] %v12528_v46  ;;  %v5325_v13 = vadd.f32 %v8673_v27, %v12402_v57 }
 0x40c   : > { %v8726_v3 = vpop.f32.mrf.mxu0  ;;  %v5269_v37 = vpop.f32.mrf.mxu1 }
 0x40d   : > { %v12532_v34 = vadd.f32 %v5269_v37, %v12409_v59  ;;  %v12534_v25 = vadd.f32 %v8723_v18, %v5325_v13 }
 0x40e   : > { %v12536_v42 = vpop.f32.mrf.mxu0  ;;  %v8676_v52 = vpop.f32.mrf.mxu1 }
 0x40f   : > { %13737 = vst [vmem:[#allocation102_spill] sm:$0xff] %v12532_v34  ;;  %13738 = vst [vmem:[#allocation78_spill] sm:$0xff] %v12536_v42  ;;  %v5327_v6 = vadd.f32 %v8676_v52, %v12413_v47 }
 0x410   : > { %v8729_v8 = vpop.f32.mrf.mxu0  ;;  %v5279_v41 = vpop.f32.mrf.mxu1 }
 0x411   : > { %v12540_v56 = vadd.f32 %v5279_v41, %v12417_v55  ;;  %v12542_v60 = vadd.f32 %v8726_v3, %v5327_v6 }
 0x412   : > { %v12544_v57 = vpop.f32.mrf.mxu0  ;;  %v8679_v45 = vpop.f32.mrf.mxu1 }
 0x413   : > { %13739 = vst [vmem:[#allocation81_spill] sm:$0xff] %v12540_v56  ;;  %13740 = vst [vmem:[#allocation80_spill] sm:$0xff] %v12544_v57  ;;  %v5329_v59 = vadd.f32 %v8679_v45, %v12420_v22 }
 0x414   : > { %v5289_v43 = vpop.f32.mrf.mxu1  ;;  %v12547_v19 = vpop.f32.mrf.mxu0 }
 0x415   : > { %v12550_v18 = vadd.f32 %v5289_v43, %v12425_v12  ;;  %v12552_v32 = vadd.f32 %v8729_v8, %v5329_v59 }
 0x416   : > { %v8734_v47 = vpop.f32.mrf.mxu1  ;;  %v12557_v13 = vpop.f32.mrf.mxu0 }
 0x417   : > { %13741 = vst [vmem:[#allocation29_spill] sm:$0xff] %v12550_v18  ;;  %v12555_v27 = vadd.f32 %v8734_v47, %v12430_v0 }
 0x418   : > { %v5674_v55 = vpop.f32.mrf.mxu1  ;;  %v12562_v52 = vpop.f32.mrf.mxu0 }
 0x41a   : > { %v8737_v3 = vpop.f32.mrf.mxu1  ;;  %v12569_v41 = vpop.f32.mrf.mxu0 }
 0x41b   : > { %v12560_v37 = vadd.f32 %v8737_v3, %v12438_v35 }
 0x41c   : > { %v5684_v22 = vpop.f32.mrf.mxu1  ;;  %v12576_v43 = vpop.f32.mrf.mxu0 }
 0x41e   : > { %v8740_v6 = vpop.f32.mrf.mxu1 }
 0x41f   : > { %v12565_v12 = vadd.f32 %v8740_v6, %v12446_v29  ;;  %v12583_v29 = vpop.f32.mrf.mxu0 }
 0x420   : > { %v12567_v8 = vpop.f32.mrf.mxu1 }
 0x422   : > { %v8743_v0 = vpop.f32.mrf.mxu1 }
 0x423   : > { %v12572_v45 = vadd.f32 %v8743_v0, %v12454_v38  ;;  %v12590_v38 = vpop.f32.mrf.mxu0 }
 0x424   : > { %v12574_v59 = vpop.f32.mrf.mxu1 }
 0x426   : > { %v8746_v35 = vpop.f32.mrf.mxu1 }
 0x427   : > { %v12579_v47 = vadd.f32 %v8746_v35, %v12462_v5  ;;  %v12597_v5 = vpop.f32.mrf.mxu0 }
 0x428   : > { %v12581_v3 = vpop.f32.mrf.mxu1 }
 0x42a   : > { %v8749_v6 = vpop.f32.mrf.mxu1 }
 0x42b   : > { %v12586_v57 = vadd.f32 %v8749_v6, %v12470_v16  ;;  %v12604_v16 = vpop.f32.mrf.mxu0 }
 0x42c   : > { %v12588_v18 = vpop.f32.mrf.mxu1 }
 0x42e   : > { %v8752_v0 = vpop.f32.mrf.mxu1 }
 0x42f   : > { %v12593_v42 = vadd.f32 %v8752_v0, %v12478_v28  ;;  %v12611_v28 = vpop.f32.mrf.mxu0 }
 0x430   : > { %v12595_v56 = vpop.f32.mrf.mxu1 }
 0x432   : > { %v8755_v35 = vpop.f32.mrf.mxu1 }
 0x433   : > { %v12600_v46 = vadd.f32 %v8755_v35, %v12486_v40  ;;  %v12618_v40 = vpop.f32.mrf.mxu0 }
 0x434   : > { %v12602_v34 = vpop.f32.mrf.mxu1 }
 0x436   : > { %v8758_v6 = vpop.f32.mrf.mxu1 }
 0x437   : > { %v12607_v11 = vadd.f32 %v8758_v6, %v12494_v50  ;;  %v12625_v50 = vpop.f32.mrf.mxu0 }
 0x438   : > { %v12609_v33 = vpop.f32.mrf.mxu1 }
 0x439   : > { %13742 = vst [vmem:[#allocation60_spill] sm:$0xff] %v12607_v11  ;;  %13743 = vst [vmem:[#allocation38_spill] sm:$0xff] %v12609_v33 }
 0x43a   : > { %v8761_v0 = vpop.f32.mrf.mxu1 }
 0x43b   : > { %v12614_v7 = vadd.f32 %v8761_v0, %v12502_v36  ;;  %v12632_v36 = vpop.f32.mrf.mxu0 }
 0x43c   : > { %v12616_v4 = vpop.f32.mrf.mxu1 }
 0x43d   : > { %13744 = vst [vmem:[#allocation35_spill] sm:$0xff] %v12614_v7  ;;  %13745 = vst [vmem:[#allocation40_spill] sm:$0xff] %v12616_v4 }
 0x43e   : > { %v8764_v35 = vpop.f32.mrf.mxu1 }
 0x43f   : > { %v12621_v30 = vadd.f32 %v8764_v35, %v12510_v62  ;;  %v12639_v62 = vpop.f32.mrf.mxu0 }
 0x440   : > { %v12623_v26 = vpop.f32.mrf.mxu1 }
 0x441   : > { %13746 = vst [vmem:[#allocation43_spill] sm:$0xff] %v12621_v30  ;;  %13747 = vst [vmem:[#allocation55_spill] sm:$0xff] %v12623_v26 }
 0x442   : > { %v8767_v6 = vpop.f32.mrf.mxu1 }
 0x443   : > { %v12628_v11 = vadd.f32 %v8767_v6, %v12518_v10  ;;  %v12646_v10 = vpop.f32.mrf.mxu0 }
 0x444   : > { %v12630_v33 = vpop.f32.mrf.mxu1 }
 0x445   : > { %13748 = vst [vmem:[#allocation66_spill] sm:$0xff] %v12628_v11  ;;  %13749 = vst [vmem:[#allocation46_spill] sm:$0xff] %v12630_v33 }
 0x446   : > { %v8770_v0 = vpop.f32.mrf.mxu1 }
 0x447   : > { %v12635_v7 = vadd.f32 %v8770_v0, %v12526_v54  ;;  %v5567_v54 = vadd.f32 %v12422_v31, %v12428_v20  ;;  %v12655_v0 = vpop.f32.mrf.mxu0 }
 0x448   : > { %v12637_v4 = vpop.f32.mrf.mxu1 }
 0x449   : > { %13750 = vst [vmem:[#allocation47_spill] sm:$0xff] %v12635_v7  ;;  %13751 = vst [vmem:[#allocation49_spill] sm:$0xff] %v12637_v4  ;;  %v5833_v4 = vadd.f32 %v5674_v55, %v5567_v54 }
 0x44a   : > { %v8773_v35 = vpop.f32.mrf.mxu1 }
 0x44b   : > { %v12642_v30 = vadd.f32 %v8773_v35, %v12534_v25  ;;  %v5569_v35 = vadd.f32 %v12432_v39, %v12436_v24  ;;  %v6103_v20 = vadd.f32 %v12557_v13, %v5833_v4  ;;  %v6106_v24 = vadd.f32 %v12562_v52, %v12560_v37 }
 0x44c   : > { %v12644_v26 = vpop.f32.mrf.mxu1  ;;  %v5573_v13 = vadd.f32 %v12448_v14, %v12452_v63  ;;  %v5575_v37 = vadd.f32 %v12456_v2, %v12460_v53 }
 0x44d   : > { %13752 = vst [vmem:[#allocation59_spill] sm:$0xff] %v12642_v30  ;;  %13753 = vst [vmem:[#allocation50_spill] sm:$0xff] %v12644_v26  ;;  %v12664_v26 = vpop.f32.mrf.mxu0 }
 0x44e   : > { %v8776_v6 = vpop.f32.mrf.mxu1 }
 0x44f   : > { %v12649_v11 = vadd.f32 %v8776_v6, %v12542_v60  ;;  %v6104_v60 = vadd.f32 %v12547_v19, %v12555_v27  ;;  %v5835_v6 = vadd.f32 %v5684_v22, %v5569_v35  ;;  %v12673_v55 = vpop.f32.mrf.mxu0 }
 0x450   : > { %v12651_v33 = vpop.f32.mrf.mxu1 }
 0x451   : > { %13754 = vst [vmem:[#allocation42_spill] sm:$0xff] %v12649_v11  ;;  %v6105_v27 = vadd.f32 %v12569_v41, %v5835_v6  ;;  %v12693_v52 = vpop.f32.mrf.mxu0  ;;  %v5839_v6 = vadd.f32 %v12574_v59, %v5573_v13 }
 0x452   : > { %v8779_v7 = vpop.f32.mrf.mxu1 }
 0x453   : > { %v12658_v25 = vadd.f32 %v8779_v7, %v12552_v32  ;;  %v5571_v7 = vadd.f32 %v12440_v1, %v12444_v44 }
 0x454   : > { %v12662_v30 = vpop.f32.mrf.mxu1 }
 0x455   : > { %v5837_v54 = vadd.f32 %v12567_v8, %v5571_v7 }
 0x456   : > { %v8834_v11 = vpop.f32.mrf.mxu1 }
 0x457   : > { %v12668_v31 = vadd.f32 %v8834_v11, %v6104_v60  ;;  %v6108_v60 = vadd.f32 %v12576_v43, %v12565_v12  ;;  %v6107_v2 = vadd.f32 %v12583_v29, %v5837_v54  ;;  %v5577_v12 = vadd.f32 %v12464_v51, %v12468_v58  ;;  %v12718_v54 = vpop.f32.mrf.mxu0 }
 0x458   : > { %v6213_v32 = vpop.f32.mrf.mxu1  ;;  %v5841_v29 = vadd.f32 %v12581_v3, %v5575_v37 }
 0x459   : > { %v12675_v39 = vadd.f32 %v6213_v32, %v6103_v20  ;;  %v6475_v11 = vmul.f32 %v12668_v31, %v12668_v31  ;;  %v6405_v8 = vsel %vm330_vm1, %v12668_v31, 0.0 }
 0x45a   : > { %v8837_v19 = vpop.f32.mrf.mxu1 }
 0x45b   : > { %v6404_v4 = vsel %vm330_vm1, %v12675_v39, 0.0  ;;  %v6474_v1 = vmul.f32 %v12675_v39, %v12675_v39  ;;  %v12687_v44 = vadd.f32 %v8837_v19, %v6106_v24  ;;  %v6507_v53 = vsel %vm330_vm1, %v6475_v11, 0.0 }
 0x45c   : > { %v6223_v22 = vpop.f32.mrf.mxu1  ;;  %v6406_v20 = vadd.f32 %v6405_v8, %v6404_v4  ;;  %v6109_v8 = vadd.f32 %v12597_v5, %v5839_v6  ;;  %v6112_v5 = vadd.f32 %v12604_v16, %v12579_v47  ;;  %v12739_v6 = vpop.f32.mrf.mxu0 }
 0x45d   : > { %v6506_v41 = vsel %vm330_vm1, %v6474_v1, 0.0  ;;  %v12698_v35 = vadd.f32 %v6223_v22, %v6105_v27  ;;  %v6477_v14 = vmul.f32 %v12687_v44, %v12687_v44  ;;  %v6110_v27 = vadd.f32 %v12590_v38, %v12572_v45 }
 0x45e   : > { %v8840_v63 = vpop.f32.mrf.mxu1  ;;  %v6508_v59 = vadd.f32 %v6507_v53, %v6506_v41  ;;  %v6409_v11 = vsel %vm330_vm1, %v12687_v44, 0.0  ;;  %v5579_v41 = vadd.f32 %v12472_v21, %v12476_v9 }
 0x45f   : > { %v6407_v7 = vsel %vm330_vm1, %v12698_v35, 0.0  ;;  %v6476_v32 = vmul.f32 %v12698_v35, %v12698_v35  ;;  %v12711_v24 = vadd.f32 %v8840_v63, %v6108_v60  ;;  %v6511_v13 = vsel %vm330_vm1, %v6477_v14, 0.0 }
 0x460   : > { %v6408_v43 = vadd.f32 %v6407_v7, %v6406_v20  ;;  %v6233_v19 = vpop.f32.mrf.mxu1  ;;  %v6111_v7 = vadd.f32 %v12611_v28, %v5841_v29  ;;  %v5581_v28 = vadd.f32 %v12480_v23, %v12484_v49 }
 0x461   : > { %v6509_v4 = vsel %vm330_vm1, %v6476_v32, 0.0  ;;  %v12723_v1 = vadd.f32 %v6233_v19, %v6107_v2  ;;  %v6479_v45 = vmul.f32 %v12711_v24, %v12711_v24  ;;  %v6413_v63 = vsel %vm330_vm1, %v12711_v24, 0.0 }
 0x462   : > { %v6510_v51 = vadd.f32 %v6509_v4, %v6508_v59  ;;  %v6410_v58 = vadd.f32 %v6409_v11, %v6408_v43  ;;  %v8843_v22 = vpop.f32.mrf.mxu1  ;;  %v5843_v32 = vadd.f32 %v12588_v18, %v5577_v12  ;;  %v6114_v11 = vadd.f32 %v12618_v40, %v12586_v57 }
 0x463   : > { %v6411_v3 = vsel %vm330_vm1, %v12723_v1, 0.0  ;;  %v6478_v38 = vmul.f32 %v12723_v1, %v12723_v1  ;;  %v12733_v37 = vadd.f32 %v8843_v22, %v6110_v27  ;;  %v6515_v47 = vsel %vm330_vm1, %v6479_v45, 0.0 }
 0x464   : > { %v6412_v60 = vadd.f32 %v6411_v3, %v6410_v58  ;;  %v6512_v20 = vadd.f32 %v6511_v13, %v6510_v51  ;;  %v6243_v14 = vpop.f32.mrf.mxu1  ;;  %v5845_v4 = vadd.f32 %v12595_v56, %v5579_v41  ;;  %v12762_v13 = vpop.f32.mrf.mxu0  ;;  %v6113_v3 = vadd.f32 %v12625_v50, %v5843_v32 }
 0x465   : > { %v6513_v2 = vsel %vm330_vm1, %v6478_v38, 0.0  ;;  %v12744_v53 = vadd.f32 %v6243_v14, %v6109_v8  ;;  %v6481_v9 = vmul.f32 %v12733_v37, %v12733_v37  ;;  %v6417_v51 = vsel %vm330_vm1, %v12733_v37, 0.0 }
 0x466   : > { %v6514_v21 = vadd.f32 %v6513_v2, %v6512_v20  ;;  %v6414_v59 = vadd.f32 %v6413_v63, %v6412_v60  ;;  %v8846_v43 = vpop.f32.mrf.mxu1  ;;  %v5583_v41 = vadd.f32 %v12488_v61, %v12492_v17  ;;  %v6116_v50 = vadd.f32 %v12632_v36, %v12593_v42 }
 0x467   : > { %v6415_v16 = vsel %vm330_vm1, %v12744_v53, 0.0  ;;  %v6480_v19 = vmul.f32 %v12744_v53, %v12744_v53  ;;  %v12755_v27 = vadd.f32 %v8846_v43, %v6112_v5  ;;  %v6519_v8 = vsel %vm330_vm1, %v6481_v9, 0.0  ;;  %v12783_v5 = vpop.f32.mrf.mxu0 }
 0x468   : > { %v6416_v18 = vadd.f32 %v6415_v16, %v6414_v59  ;;  %v6516_v12 = vadd.f32 %v6515_v47, %v6514_v21  ;;  %v6253_v29 = vpop.f32.mrf.mxu1  ;;  %v6115_v32 = vadd.f32 %v12639_v62, %v5845_v4  ;;  %v5847_v21 = vadd.f32 %v12602_v34, %v5581_v28 }
 0x469   : > { %v6517_v58 = vsel %vm330_vm1, %v6480_v19, 0.0  ;;  %v12767_v22 = vadd.f32 %v6253_v29, %v6111_v7  ;;  %v6483_v57 = vmul.f32 %v12755_v27, %v12755_v27  ;;  %v6421_v63 = vsel %vm330_vm1, %v12755_v27, 0.0  ;;  %v12806_v29 = vpop.f32.mrf.mxu0 }
 0x46a   : > { %v6518_v23 = vadd.f32 %v6517_v58, %v6516_v12  ;;  %v6418_v49 = vadd.f32 %v6417_v51, %v6416_v18  ;;  %v8849_v45 = vpop.f32.mrf.mxu1  ;;  %v5585_v62 = vadd.f32 %v12496_v48, %v12500_v15  ;;  %v6118_v28 = vadd.f32 %v12646_v10, %v12600_v46  ;;  %v13755_v18 = vld [vmem:[#allocation38_spill] sm:$0xff] }
 0x46b   : > { %v6419_v56 = vsel %vm330_vm1, %v12767_v22, 0.0  ;;  %v6482_v40 = vmul.f32 %v12767_v22, %v12767_v22  ;;  %v12777_v38 = vadd.f32 %v8849_v45, %v6114_v11  ;;  %v6523_v42 = vsel %vm330_vm1, %v6483_v57, 0.0  ;;  %v13757_v57 = vld [vmem:[#allocation99_spill] sm:$0xff] }
 0x46c   : > { %v6420_v60 = vadd.f32 %v6419_v56, %v6418_v49  ;;  %v6520_v20 = vadd.f32 %v6519_v8, %v6518_v23  ;;  %v6263_v14 = vpop.f32.mrf.mxu1  ;;  %v5849_v12 = vadd.f32 %v13755_v18, %v5583_v41  ;;  %v6117_v23 = vadd.f32 %v12655_v0, %v5847_v21  ;;  %v13759_v21 = vld [vmem:[#allocation40_spill] sm:$0xff] }
 0x46d   : > { %v6521_v2 = vsel %vm330_vm1, %v6482_v40, 0.0  ;;  %v12788_v7 = vadd.f32 %v6263_v14, %v6113_v3  ;;  %v6485_v17 = vmul.f32 %v12777_v38, %v12777_v38  ;;  %v6425_v11 = vsel %vm330_vm1, %v12777_v38, 0.0  ;;  %v13756_v3 = vld [vmem:[#allocation77_spill] sm:$0xff]  ;;  %v12827_v14 = vpop.f32.mrf.mxu0 }
 0x46e   : > { %v6522_v61 = vadd.f32 %v6521_v2, %v6520_v20  ;;  %v6422_v9 = vadd.f32 %v6421_v63, %v6420_v60  ;;  %v8852_v59 = vpop.f32.mrf.mxu1  ;;  %v5587_v56 = vadd.f32 %v13757_v57, %v13756_v3  ;;  %v13758_v20 = vld [vmem:[#allocation60_spill] sm:$0xff] }
 0x46f   : > { %v6423_v36 = vsel %vm330_vm1, %v12788_v7, 0.0  ;;  %v6484_v43 = vmul.f32 %v12788_v7, %v12788_v7  ;;  %v12799_v47 = vadd.f32 %v8852_v59, %v6116_v50  ;;  %v6527_v58 = vsel %vm330_vm1, %v6485_v17, 0.0 }
 0x470   : > { %v6424_v34 = vadd.f32 %v6423_v36, %v6422_v9  ;;  %v6524_v16 = vadd.f32 %v6523_v42, %v6522_v61  ;;  %v6273_v19 = vpop.f32.mrf.mxu1  ;;  %v6120_v0 = vadd.f32 %v12664_v26, %v13758_v20  ;;  %v5851_v61 = vadd.f32 %v13759_v21, %v5585_v62  ;;  %v13765_v20 = vld [vmem:[#allocation76_spill] sm:$0xff]  ;;  %v13766_v21 = vld [vmem:[#allocation43_spill] sm:$0xff] }
 0x471   : > { %v6525_v4 = vsel %vm330_vm1, %v6484_v43, 0.0  ;;  %v12811_v51 = vadd.f32 %v6273_v19, %v6115_v32  ;;  %v6487_v46 = vmul.f32 %v12799_v47, %v12799_v47  ;;  %v6429_v50 = vsel %vm330_vm1, %v12799_v47, 0.0 }
 0x472   : > { %v6526_v48 = vadd.f32 %v6525_v4, %v6524_v16  ;;  %v6426_v15 = vadd.f32 %v6425_v11, %v6424_v34  ;;  %v8855_v8 = vpop.f32.mrf.mxu1  ;;  %v6119_v32 = vadd.f32 %v12673_v55, %v5849_v12  ;;  %v13760_v16 = vld [vmem:[#allocation101_spill] sm:$0xff]  ;;  %v13761_v55 = vld [vmem:[#allocation98_spill] sm:$0xff]  ;;  %v13762_v12 = vld [vmem:[#allocation35_spill] sm:$0xff]  ;;  %v6121_v57 = vadd.f32 %v12718_v54, %v5851_v61 }
 0x473   : > { %v6427_v10 = vsel %vm330_vm1, %v12811_v51, 0.0  ;;  %v6486_v49 = vmul.f32 %v12811_v51, %v12811_v51  ;;  %v12821_v45 = vadd.f32 %v8855_v8, %v6118_v28  ;;  %v6531_v26 = vsel %vm330_vm1, %v6487_v46, 0.0  ;;  %v13763_v4 = vld [vmem:[#allocation55_spill] sm:$0xff] }
 0x474   : > { %v6428_v40 = vadd.f32 %v6427_v10, %v6426_v15  ;;  %v6528_v41 = vadd.f32 %v6527_v58, %v6526_v48  ;;  %v6283_v60 = vpop.f32.mrf.mxu1  ;;  %v5589_v19 = vadd.f32 %v13761_v55, %v13760_v16  ;;  %v6122_v11 = vadd.f32 %v12693_v52, %v13762_v12  ;;  %v6064_v48 = vpop.f32.mrf.mxu0 }
 0x475   : > { %v6529_v63 = vsel %vm330_vm1, %v6486_v49, 0.0  ;;  %v12832_v2 = vadd.f32 %v6283_v60, %v6117_v23  ;;  %v6489_v9 = vmul.f32 %v12821_v45, %v12821_v45  ;;  %v5853_v58 = vadd.f32 %v13763_v4, %v5587_v56  ;;  %v13764_v60 = vld [vmem:[#allocation100_spill] sm:$0xff] }
 0x476   : > { %v6530_v17 = vadd.f32 %v6529_v63, %v6528_v41  ;;  %v6430_v59 = vadd.f32 %v6429_v50, %v6428_v40  ;;  %v8858_v42 = vpop.f32.mrf.mxu1  ;;  %v6433_v15 = vsel %vm330_vm1, %v12821_v45, 0.0  ;;  %v6124_v54 = vadd.f32 %v12739_v6, %v13766_v21  ;;  %v8823_v61 = vpop.f32.mrf.mxu0 }
 0x477   : > { %v6431_v36 = vsel %vm330_vm1, %v12832_v2, 0.0  ;;  %v6488_v43 = vmul.f32 %v12832_v2, %v12832_v2  ;;  %v12843_v34 = vadd.f32 %v8858_v42, %v6120_v0  ;;  %v6535_v46 = vsel %vm330_vm1, %v6489_v9, 0.0 }
 0x478   : > { %v6432_v62 = vadd.f32 %v6431_v36, %v6430_v59  ;;  %v6532_v28 = vadd.f32 %v6531_v26, %v6530_v17  ;;  %v6293_v18 = vpop.f32.mrf.mxu1  ;;  %v5591_v0 = vadd.f32 %v13765_v20, %v13764_v60  ;;  %v6123_v42 = vadd.f32 %v12762_v13, %v5853_v58  ;;  %v13767_v26 = vld [vmem:[#allocation46_spill] sm:$0xff]  ;;  %v13769_v13 = vld [vmem:[#allocation79_spill] sm:$0xff] }
 0x479   : > { %v6533_v8 = vsel %vm330_vm1, %v6488_v43, 0.0  ;;  %v12853_v23 = vadd.f32 %v6293_v18, %v6119_v32  ;;  %v6491_v52 = vmul.f32 %v12843_v34, %v12843_v34  ;;  %v6437_v17 = vsel %vm330_vm1, %v12843_v34, 0.0 }
 0x47a   : > { %v6534_v10 = vadd.f32 %v6533_v8, %v6532_v28  ;;  %v6434_v49 = vadd.f32 %v6433_v15, %v6432_v62  ;;  %v8861_v3 = vpop.f32.mrf.mxu1  ;;  %v5855_v36 = vadd.f32 %v13767_v26, %v5589_v19  ;;  %v13770_v8 = vld [vmem:[#allocation66_spill] sm:$0xff] }
 0x47b   : > { %v6435_v56 = vsel %vm330_vm1, %v12853_v23, 0.0  ;;  %v6490_v40 = vmul.f32 %v12853_v23, %v12853_v23  ;;  %v12863_v41 = vadd.f32 %v8861_v3, %v6122_v11  ;;  %v6539_v6 = vsel %vm330_vm1, %v6491_v52, 0.0  ;;  %v13768_v11 = vld [vmem:[#allocation102_spill] sm:$0xff]  ;;  %v6074_v3 = vpop.f32.mrf.mxu0 }
 0x47c   : > { %v6436_v50 = vadd.f32 %v6435_v56, %v6434_v49  ;;  %v6536_v63 = vadd.f32 %v6535_v46, %v6534_v10  ;;  %v6303_v32 = vpop.f32.mrf.mxu1  ;;  %v5593_v4 = vadd.f32 %v13769_v13, %v13768_v11  ;;  %v6126_v46 = vadd.f32 %v12783_v5, %v13770_v8  ;;  %v13771_v10 = vld [vmem:[#allocation49_spill] sm:$0xff] }
 0x47d   : > { %v6537_v9 = vsel %vm330_vm1, %v6490_v40, 0.0  ;;  %v12872_v59 = vadd.f32 %v6303_v32, %v6121_v57  ;;  %v6493_v16 = vmul.f32 %v12863_v41, %v12863_v41  ;;  %v5857_v49 = vadd.f32 %v13771_v10, %v5591_v0 }
 0x47e   : > { %v6538_v43 = vadd.f32 %v6537_v9, %v6536_v63  ;;  %v6438_v55 = vadd.f32 %v6437_v17, %v6436_v50  ;;  %v8864_v62 = vpop.f32.mrf.mxu1  ;;  %v6441_v57 = vsel %vm330_vm1, %v12863_v41, 0.0  ;;  %v6125_v63 = vadd.f32 %v12806_v29, %v5855_v36  ;;  %v13773_v17 = vld [vmem:[#allocation78_spill] sm:$0xff]  ;;  %v8826_v36 = vpop.f32.mrf.mxu0 }
 0x47f   : > { %v6439_v28 = vsel %vm330_vm1, %v12872_v59, 0.0  ;;  %v6492_v18 = vmul.f32 %v12872_v59, %v12872_v59  ;;  %v12883_v12 = vadd.f32 %v8864_v62, %v6124_v54  ;;  %v6543_v40 = vsel %vm330_vm1, %v6493_v16, 0.0  ;;  %v13772_v54 = vld [vmem:[#allocation81_spill] sm:$0xff]  ;;  %v13774_v16 = vld [vmem:[#allocation47_spill] sm:$0xff] }
 0x480   : > { %v6440_v19 = vadd.f32 %v6439_v28, %v6438_v55  ;;  %v6540_v58 = vadd.f32 %v6539_v6, %v6538_v43  ;;  %v6313_v15 = vpop.f32.mrf.mxu1  ;;  %v5595_v9 = vadd.f32 %v13773_v17, %v13772_v54  ;;  %v6128_v29 = vadd.f32 %v12827_v14, %v13774_v16 }
 0x481   : > { %v6541_v52 = vsel %vm330_vm1, %v6492_v18, 0.0  ;;  %v12893_v56 = vadd.f32 %v6313_v15, %v6123_v42  ;;  %v6495_v5 = vmul.f32 %v12883_v12, %v12883_v12  ;;  %v6445_v55 = vsel %vm330_vm1, %v12883_v12, 0.0  ;;  %v13775_v18 = vld [vmem:[#allocation50_spill] sm:$0xff] }
 0x482   : > { %v6542_v60 = vadd.f32 %v6541_v52, %v6540_v58  ;;  %v6442_v20 = vadd.f32 %v6441_v57, %v6440_v19  ;;  %v8867_v50 = vpop.f32.mrf.mxu1  ;;  %v6127_v28 = vadd.f32 %v6064_v48, %v5857_v49  ;;  %v5859_v11 = vadd.f32 %v13775_v18, %v5593_v4  ;;  %v13776_v4 = vld [vmem:[#allocation59_spill] sm:$0xff] }
 0x483   : > { %v6443_v0 = vsel %vm330_vm1, %v12893_v56, 0.0  ;;  %v6494_v32 = vmul.f32 %v12893_v56, %v12893_v56  ;;  %v12903_v21 = vadd.f32 %v8867_v50, %v6126_v46  ;;  %v6547_v8 = vsel %vm330_vm1, %v6495_v5, 0.0 }
 0x484   : > { %v6444_v42 = vadd.f32 %v6443_v0, %v6442_v20  ;;  %v6544_v26 = vadd.f32 %v6543_v40, %v6542_v60  ;;  %v6323_v43 = vpop.f32.mrf.mxu1  ;;  %v6130_v52 = vadd.f32 %v8823_v61, %v13776_v4  ;;  %v6084_v40 = vpop.f32.mrf.mxu0  ;;  %v5861_v60 = vadd.f32 %v12651_v33, %v5595_v9 }
 0x485   : > { %v6545_v62 = vsel %vm330_vm1, %v6494_v32, 0.0  ;;  %v12912_v6 = vadd.f32 %v6323_v43, %v6125_v63  ;;  %v6497_v19 = vmul.f32 %v12903_v21, %v12903_v21  ;;  %v6449_v20 = vsel %vm330_vm1, %v12903_v21, 0.0  ;;  %v13778_v43 = vld [vmem:[#allocation80_spill] sm:$0xff] }
 0x486   : > { %v6546_v13 = vadd.f32 %v6545_v62, %v6544_v26  ;;  %v6446_v58 = vadd.f32 %v6445_v55, %v6444_v42  ;;  %v8870_v15 = vpop.f32.mrf.mxu1  ;;  %v6129_v17 = vadd.f32 %v6074_v3, %v5859_v11  ;;  %v13777_v26 = vld [vmem:[#allocation29_spill] sm:$0xff]  ;;  %v8829_v3 = vpop.f32.mrf.mxu0 }
 0x487   : > { %v6447_v14 = vsel %vm330_vm1, %v12912_v6, 0.0  ;;  %v6496_v46 = vmul.f32 %v12912_v6, %v12912_v6  ;;  %v12922_v10 = vadd.f32 %v8870_v15, %v6128_v29  ;;  %v6551_v5 = vsel %vm330_vm1, %v6497_v19, 0.0 }
 0x488   : > { %v6448_v57 = vadd.f32 %v6447_v14, %v6446_v58  ;;  %v6548_v48 = vadd.f32 %v6547_v8, %v6546_v13  ;;  %v6333_v49 = vpop.f32.mrf.mxu1  ;;  %v5597_v16 = vadd.f32 %v13778_v43, %v13777_v26  ;;  %v6131_v58 = vadd.f32 %v6084_v40, %v5861_v60 }
 0x489   : > { %v6549_v50 = vsel %vm330_vm1, %v6496_v46, 0.0  ;;  %v12929_v63 = vadd.f32 %v6333_v49, %v6127_v28  ;;  %v6499_v42 = vmul.f32 %v12922_v10, %v12922_v10  ;;  %v13779_v28 = vld [vmem:[#allocation42_spill] sm:$0xff]  ;;  %v6453_v11 = vsel %vm330_vm1, %v12922_v10, 0.0 }
 0x48a   : > { %v6550_v0 = vadd.f32 %v6549_v50, %v6548_v48  ;;  %v6450_v32 = vadd.f32 %v6449_v20, %v6448_v57  ;;  %v8873_v54 = vpop.f32.mrf.mxu1  ;;  %v6132_v18 = vadd.f32 %v8826_v36, %v13779_v28  ;;  %v5863_v15 = vadd.f32 %v12662_v30, %v5597_v16  ;;  %v6094_v30 = vpop.f32.mrf.mxu0 }
 0x48b   : > { %v6451_v61 = vsel %vm330_vm1, %v12929_v63, 0.0  ;;  %v6498_v33 = vmul.f32 %v12929_v63, %v12929_v63  ;;  %v12938_v9 = vadd.f32 %v8873_v54, %v6130_v52  ;;  %v6555_v48 = vsel %vm330_vm1, %v6499_v42, 0.0 }
 0x48c   : > { %v6452_v29 = vadd.f32 %v6451_v61, %v6450_v32  ;;  %v6552_v55 = vadd.f32 %v6551_v5, %v6550_v0  ;;  %v6343_v62 = vpop.f32.mrf.mxu1  ;;  %v6134_v0 = vadd.f32 %v8829_v3, %v12658_v25  ;;  %v6133_v61 = vadd.f32 %v6094_v30, %v5863_v15 }
 0x48d   : > { %v6553_v13 = vsel %vm330_vm1, %v6498_v33, 0.0  ;;  %v12946_v19 = vadd.f32 %v6343_v62, %v6129_v17  ;;  %v6501_v14 = vmul.f32 %v12938_v9, %v12938_v9  ;;  %v6457_v20 = vsel %vm330_vm1, %v12938_v9, 0.0 }
 0x48e   : > { %v6554_v8 = vadd.f32 %v6553_v13, %v6552_v55  ;;  %v6454_v46 = vadd.f32 %v6453_v11, %v6452_v29  ;;  %v8876_v57 = vpop.f32.mrf.mxu1 }
 0x48f   : > { %v6455_v36 = vsel %vm330_vm1, %v12946_v19, 0.0  ;;  %v6500_v49 = vmul.f32 %v12946_v19, %v12946_v19  ;;  %v12956_v4 = vadd.f32 %v8876_v57, %v6132_v18  ;;  %v6559_v32 = vsel %vm330_vm1, %v6501_v14, 0.0 }
 0x490   : > { %v6456_v52 = vadd.f32 %v6455_v36, %v6454_v46  ;;  %v6556_v40 = vadd.f32 %v6555_v48, %v6554_v8  ;;  %v6353_v60 = vpop.f32.mrf.mxu1 }
 0x491   : > { %v6557_v50 = vsel %vm330_vm1, %v6500_v49, 0.0  ;;  %v12961_v5 = vadd.f32 %v6353_v60, %v6131_v58  ;;  %v6503_v33 = vmul.f32 %v12956_v4, %v12956_v4  ;;  %v6461_v62 = vsel %vm330_vm1, %v12956_v4, 0.0 }
 0x492   : > { %v6558_v54 = vadd.f32 %v6557_v50, %v6556_v40  ;;  %v6458_v17 = vadd.f32 %v6457_v20, %v6456_v52  ;;  %v8879_v42 = vpop.f32.mrf.mxu1 }
 0x493   : > { %v6459_v26 = vsel %vm330_vm1, %v12961_v5, 0.0  ;;  %v6502_v43 = vmul.f32 %v12961_v5, %v12961_v5  ;;  %v12971_v16 = vadd.f32 %v8879_v42, %v6134_v0  ;;  %v6563_v13 = vsel %vm330_vm1, %v6503_v33, 0.0 }
 0x494   : > { %v6460_v29 = vadd.f32 %v6459_v26, %v6458_v17  ;;  %v6560_v55 = vadd.f32 %v6559_v32, %v6558_v54  ;;  %v6363_v25 = vpop.f32.mrf.mxu1 }
 0x495   : > { %v6561_v28 = vsel %vm330_vm1, %v6502_v43, 0.0  ;;  %v12976_v18 = vadd.f32 %v6363_v25, %v6133_v61  ;;  %v6505_v58 = vmul.f32 %v12971_v16, %v12971_v16  ;;  %v6465_v57 = vsel %vm330_vm1, %v12971_v16, 0.0 }
 0x496   : > { %v6562_v3 = vadd.f32 %v6561_v28, %v6560_v55  ;;  %v6462_v11 = vadd.f32 %v6461_v62, %v6460_v29 }
 0x497   : > { %v6463_v15 = vsel %vm330_vm1, %v12976_v18, 0.0  ;;  %v6504_v8 = vmul.f32 %v12976_v18, %v12976_v18  ;;  %v6567_v52 = vsel %vm330_vm1, %v6505_v58, 0.0  ;;  %v3623_v58 = vld [vmem:[%s13141_s6] sm:$0x1] }
 0x498   : > { %v6464_v14 = vadd.f32 %v6463_v15, %v6462_v11  ;;  %v6564_v46 = vadd.f32 %v6563_v13, %v6562_v3  ;;  %v3622_v3 = vld [vmem:[%s13140_s5] sm:$0x1] }
 0x499   : > { %v6565_v48 = vsel %vm330_vm1, %v6504_v8, 0.0  ;;  %v13780_v8 = vld [vmem:[#allocation30_spill] sm:$0xff] }
 0x49a   : > { %v6466_v36 = vadd.f32 %v6465_v57, %v6464_v14  ;;  %v6566_v49 = vadd.f32 %v6565_v48, %v6564_v46 }
 0x49c   : > { %v6467_v40 = vrot.slane %v6466_v36, 4  ;;  %v6568_v60 = vadd.f32 %v6567_v52, %v6566_v49 }
 0x49e   : > { %v6468_v30 = vadd.f32 %v6467_v40, %v6466_v36  ;;  %v6569_v20 = vrot.slane %v6568_v60, 4 }
 0x4a0   : > { %v6469_v50 = vrot.slane %v6468_v30, 2  ;;  %v6570_v0 = vadd.f32 %v6569_v20, %v6568_v60 }
 0x4a2   : > { %v6470_v32 = vadd.f32 %v6469_v50, %v6468_v30  ;;  %v6571_v54 = vrot.slane %v6570_v0, 2 }
 0x4a4   : > { %v6471_v17 = vrot.slane %v6470_v32, 1  ;;  %v6572_v42 = vadd.f32 %v6571_v54, %v6570_v0 }
 0x4a6   : > { %v6472_v61 = vadd.f32 %v6471_v17, %v6470_v32  ;;  %v6573_v33 = vrot.slane %v6572_v42, 1 }
 0x4a8   : > { %v6473_v26 = vmul.f32 0.00390625, %v6472_v61  ;;  %v6574_v43 = vadd.f32 %v6573_v33, %v6572_v42 }
 0x4aa   : > { %v6575_v29 = vmul.f32 0.00390625, %v6574_v43  ;;  %v6576_v55 = vmul.f32 %v6473_v26, %v6473_v26 }
 0x4ac   : > { %v6577_v25 = vsub.f32 %v6575_v29, %v6576_v55 }
 0x4ae   : > { %v6578_v62 = vmax.f32 %v6577_v25, 0.0 }
 0x4b0   : > { %v6579_v28 = vadd.f32 1e-05, %v6578_v62 }
 0x4b2   : > { %8890 = vrsqrt.f32 %v6579_v28 }
 0x4bf   : > { %v8891_v11 = vpop.eup %8890 }
 0x4c0   : > { %v6581_v13 = vmul.f32 %v8891_v11, %v3622_v3 }
 0x4c2   : > { %v6582_v15 = vmul.f32 %v6581_v13, %v6473_v26  ;;  %v6588_v14 = vrot.slane %v6581_v13, %v13780_v8 }
 0x4c4   : > { %v6583_v46 = vsub.f32 %v3623_v58, %v6582_v15  ;;  %v6590_v57 = vmul.f32 %v6588_v14, %v12675_v39  ;;  %v6591_v48 = vmul.f32 %v6588_v14, %v12668_v31  ;;  %v6592_v36 = vmul.f32 %v6588_v14, %v12698_v35 }
 0x4c5   : > { %v6593_v49 = vmul.f32 %v6588_v14, %v12687_v44  ;;  %v6594_v52 = vmul.f32 %v6588_v14, %v12723_v1  ;;  %v6595_v40 = vmul.f32 %v6588_v14, %v12711_v24  ;;  %v6596_v60 = vmul.f32 %v6588_v14, %v12744_v53 }
 0x4c6   : > { %v6597_v30 = vmul.f32 %v6588_v14, %v12733_v37  ;;  %v6598_v20 = vmul.f32 %v6588_v14, %v12767_v22  ;;  %v6599_v50 = vmul.f32 %v6588_v14, %v12755_v27  ;;  %v6600_v39 = vmul.f32 %v6588_v14, %v12788_v7 }
 0x4c7   : > { %v6601_v31 = vmul.f32 %v6588_v14, %v12777_v38  ;;  %v6602_v35 = vmul.f32 %v6588_v14, %v12811_v51  ;;  %v6603_v44 = vmul.f32 %v6588_v14, %v12799_v47  ;;  %v6604_v1 = vmul.f32 %v6588_v14, %v12832_v2 }
 0x4c8   : > { %v6605_v24 = vmul.f32 %v6588_v14, %v12821_v45  ;;  %v6606_v53 = vmul.f32 %v6588_v14, %v12853_v23  ;;  %v6607_v37 = vmul.f32 %v6588_v14, %v12843_v34  ;;  %v6614_v22 = vmul.f32 %v6588_v14, %v12929_v63 }
 0x4c9   : > { %v6615_v27 = vmul.f32 %v6588_v14, %v12922_v10  ;;  %v6616_v7 = vmul.f32 %v6588_v14, %v12946_v19  ;;  %v6617_v38 = vmul.f32 %v6588_v14, %v12938_v9  ;;  %v6618_v51 = vmul.f32 %v6588_v14, %v12961_v5 }
 0x4ca   : > { %v6619_v47 = vmul.f32 %v6588_v14, %v12956_v4  ;;  %v6620_v2 = vmul.f32 %v6588_v14, %v12976_v18  ;;  %v6608_v45 = vmul.f32 %v6588_v14, %v12872_v59  ;;  %v6609_v23 = vmul.f32 %v6588_v14, %v12863_v41 }
 0x4cb   : > { %v6621_v34 = vmul.f32 %v6588_v14, %v12971_v16  ;;  %v6626_v63 = vrot.slane %v6583_v46, %v13780_v8  ;;  %v6610_v10 = vmul.f32 %v6588_v14, %v12893_v56  ;;  %v6611_v19 = vmul.f32 %v6588_v14, %v12883_v12 }
 0x4cc   : > { %v6612_v9 = vmul.f32 %v6588_v14, %v12912_v6  ;;  %v6613_v5 = vmul.f32 %v6588_v14, %v12903_v21 }
 0x4cd   : > { %v6628_v0 = vadd.f32 %v6626_v63, %v6590_v57  ;;  %v6629_v4 = vadd.f32 %v6626_v63, %v6591_v48  ;;  %v6630_v32 = vadd.f32 %v6626_v63, %v6592_v36  ;;  %v6631_v18 = vadd.f32 %v6626_v63, %v6593_v49  ;;  %v13781_v48 = vld [vmem:[#allocation5_spill] sm:$0xff]  ;;  %v13782_v49 = vld [vmem:[#allocation6_spill] sm:$0xff] }
 0x4ce   : > { %v6632_v54 = vadd.f32 %v6626_v63, %v6594_v52  ;;  %v6633_v59 = vadd.f32 %v6626_v63, %v6595_v40  ;;  %v6634_v17 = vadd.f32 %v6626_v63, %v6596_v60  ;;  %v6635_v41 = vadd.f32 %v6626_v63, %v6597_v30  ;;  %v13783_v40 = vld [vmem:[#allocation3_spill] sm:$0xff]  ;;  %v13784_v30 = vld [vmem:[#allocation4_spill] sm:$0xff] }
 0x4cf   : > { %v6636_v42 = vadd.f32 %v6626_v63, %v6598_v20  ;;  %v6637_v16 = vadd.f32 %v6626_v63, %v6599_v50  ;;  %v6638_v61 = vadd.f32 %v6626_v63, %v6600_v39  ;;  %v6639_v33 = vadd.f32 %v6626_v63, %v6601_v31  ;;  %v13785_v50 = vld [vmem:[#allocation7_spill] sm:$0xff]  ;;  %v13786_v31 = vld [vmem:[#allocation8_spill] sm:$0xff] }
 0x4d0   : > { %v6640_v26 = vadd.f32 %v6626_v63, %v6602_v35  ;;  %v6641_v56 = vadd.f32 %v6626_v63, %v6603_v44  ;;  %v6642_v12 = vadd.f32 %v6626_v63, %v6604_v1  ;;  %v6643_v43 = vadd.f32 %v6626_v63, %v6605_v24  ;;  %v13787_v44 = vld [vmem:[#allocation9_spill] sm:$0xff]  ;;  %v13788_v24 = vld [vmem:[#allocation10_spill] sm:$0xff] }
 0x4d1   : > { %v6644_v6 = vadd.f32 %v6626_v63, %v6606_v53  ;;  %v6645_v29 = vadd.f32 %v6626_v63, %v6607_v37  ;;  %v6646_v21 = vadd.f32 %v6626_v63, %v6608_v45  ;;  %v6647_v55 = vadd.f32 %v6626_v63, %v6609_v23  ;;  %v13789_v37 = vld [vmem:[#allocation11_spill] sm:$0xff] }
 0x4d2   : > { %v6648_v25 = vadd.f32 %v6626_v63, %v6610_v10  ;;  %v6649_v62 = vadd.f32 %v6626_v63, %v6611_v19  ;;  %v6650_v28 = vadd.f32 %v6626_v63, %v6612_v9  ;;  %v6651_v3 = vadd.f32 %v6626_v63, %v6613_v5  ;;  %v13793_v45 = vld [vmem:[#allocation15_spill] sm:$0xff]  ;;  %v13795_v10 = vld [vmem:[#allocation17_spill] sm:$0xff]  ;;  %v13796_v9 = vld [vmem:[#allocation18_spill] sm:$0xff] }
 0x4d3   : > { %v6652_v11 = vadd.f32 %v6626_v63, %v6614_v22  ;;  %v6653_v13 = vadd.f32 %v6626_v63, %v6615_v27  ;;  %v6654_v58 = vadd.f32 %v6626_v63, %v6616_v7  ;;  %v6655_v15 = vadd.f32 %v6626_v63, %v6617_v38  ;;  %v13790_v27 = vld [vmem:[#allocation12_spill] sm:$0xff]  ;;  %v13791_v38 = vld [vmem:[#allocation13_spill] sm:$0xff] }
 0x4d4   : > { %v6656_v8 = vadd.f32 %v6626_v63, %v6618_v51  ;;  %v6657_v14 = vadd.f32 %v6626_v63, %v6619_v47  ;;  %v6658_v46 = vadd.f32 %v6626_v63, %v6620_v2  ;;  %v6659_v57 = vadd.f32 %v6626_v63, %v6621_v34  ;;  %v13792_v47 = vld [vmem:[#allocation14_spill] sm:$0xff]  ;;  %v13794_v34 = vld [vmem:[#allocation16_spill] sm:$0xff] }
 0x4d5   : > { %v6660_v36 = vadd.f32 %v6628_v0, %v13781_v48  ;;  %v6661_v52 = vadd.f32 %v6629_v4, %v13782_v49  ;;  %v6662_v60 = vadd.f32 %v6630_v32, %v13783_v40  ;;  %v6663_v20 = vadd.f32 %v6631_v18, %v13784_v30  ;;  %v13797_v0 = vld [vmem:[#allocation19_spill] sm:$0xff]  ;;  %v13798_v32 = vld [vmem:[#allocation20_spill] sm:$0xff]  ;;  %v13810_v48 = vld [vmem:[#allocation34_spill] sm:$0xff] }
 0x4d6   : > { %v6664_v39 = vadd.f32 %v6632_v54, %v13785_v50  ;;  %v6665_v35 = vadd.f32 %v6633_v59, %v13786_v31  ;;  %v6666_v1 = vadd.f32 %v6634_v17, %v13787_v44  ;;  %v6667_v53 = vadd.f32 %v6635_v41, %v13788_v24  ;;  %v13799_v54 = vld [vmem:[#allocation21_spill] sm:$0xff]  ;;  %v13800_v17 = vld [vmem:[#allocation22_spill] sm:$0xff] }
 0x4d7   : > { %v6668_v22 = vadd.f32 %v6636_v42, %v13789_v37  ;;  %v6669_v7 = vadd.f32 %v6637_v16, %v13790_v27  ;;  %v6670_v51 = vadd.f32 %v6638_v61, %v13791_v38  ;;  %v6671_v2 = vadd.f32 %v6639_v33, %v13792_v47  ;;  %6692 = vst.msk [vmem:[%s13034_s13] sm:$0xff] %vm330_vm1, %v6660_v36  ;;  %v13801_v42 = vld [vmem:[#allocation23_spill] sm:$0xff]  ;;  %v13802_v61 = vld [vmem:[#allocation24_spill] sm:$0xff] }
 0x4d8   : > { %6693 = vst.msk [vmem:[%s13034_s13 + $0x8] sm:$0xff] %vm330_vm1, %v6661_v52  ;;  %6694 = vst.msk [vmem:[%s13034_s13 + $0x10] sm:$0xff] %vm330_vm1, %v6662_v60  ;;  %v6672_v23 = vadd.f32 %v6640_v26, %v13793_v45  ;;  %v6673_v63 = vadd.f32 %v6641_v56, %v13794_v34  ;;  %v6674_v19 = vadd.f32 %v6642_v12, %v13795_v10  ;;  %v13803_v26 = vld [vmem:[#allocation25_spill] sm:$0xff]  ;;  %v13804_v12 = vld [vmem:[#allocation26_spill] sm:$0xff] }
 0x4d9   : > { %6695 = vst.msk [vmem:[%s13034_s13 + $0x18] sm:$0xff] %vm330_vm1, %v6663_v20  ;;  %v6675_v5 = vadd.f32 %v6643_v43, %v13796_v9  ;;  %6696 = vst.msk [vmem:[%s13034_s13 + $0x20] sm:$0xff] %vm330_vm1, %v6664_v39  ;;  %v6676_v4 = vadd.f32 %v6644_v6, %v13797_v0  ;;  %v6677_v18 = vadd.f32 %v6645_v29, %v13798_v32  ;;  %v13805_v6 = vld [vmem:[#allocation27_spill] sm:$0xff]  ;;  %v13811_v36 = vld [vmem:[#allocation36_spill] sm:$0xff] }
 0x4da   : > { %6697 = vst.msk [vmem:[%s13034_s13 + $0x28] sm:$0xff] %vm330_vm1, %v6665_v35  ;;  %6698 = vst.msk [vmem:[%s13034_s13 + $0x30] sm:$0xff] %vm330_vm1, %v6666_v1  ;;  %v6678_v59 = vadd.f32 %v6646_v21, %v13799_v54  ;;  %v6679_v41 = vadd.f32 %v6647_v55, %v13800_v17  ;;  %v6680_v16 = vadd.f32 %v6648_v25, %v13801_v42  ;;  %v13806_v21 = vld [vmem:[#allocation28_spill] sm:$0xff]  ;;  %v13807_v25 = vld [vmem:[#allocation31_spill] sm:$0xff] }
 0x4db   : > { %6699 = vst.msk [vmem:[%s13034_s13 + $0x38] sm:$0xff] %vm330_vm1, %v6667_v53  ;;  %6700 = vst.msk [vmem:[%s13034_s13 + $0x40] sm:$0xff] %vm330_vm1, %v6668_v22  ;;  %v6681_v33 = vadd.f32 %v6649_v62, %v13802_v61  ;;  %v6682_v56 = vadd.f32 %v6650_v28, %v13803_v26  ;;  %v6683_v43 = vadd.f32 %v6651_v3, %v13804_v12  ;;  %v13808_v28 = vld [vmem:[#allocation32_spill] sm:$0xff] }
 0x4dc   : > { %6701 = vst.msk [vmem:[%s13034_s13 + $0x48] sm:$0xff] %vm330_vm1, %v6669_v7  ;;  %6702 = vst.msk [vmem:[%s13034_s13 + $0x50] sm:$0xff] %vm330_vm1, %v6670_v51  ;;  %v6684_v29 = vadd.f32 %v6652_v11, %v13805_v6  ;;  %v6685_v55 = vadd.f32 %v6653_v13, %v13806_v21  ;;  %v6686_v62 = vadd.f32 %v6654_v58, %v13807_v25  ;;  %v13809_v11 = vld [vmem:[#allocation33_spill] sm:$0xff] }
 0x4dd   : > { %6703 = vst.msk [vmem:[%s13034_s13 + $0x58] sm:$0xff] %vm330_vm1, %v6671_v2  ;;  %6704 = vst.msk [vmem:[%s13034_s13 + $0x60] sm:$0xff] %vm330_vm1, %v6672_v23  ;;  %v6687_v3 = vadd.f32 %v6655_v15, %v13808_v28  ;;  %v6688_v13 = vadd.f32 %v6656_v8, %v13809_v11  ;;  %v6689_v58 = vadd.f32 %v6657_v14, %v13810_v48  ;;  %v13812_v15 = vld [vmem:[#allocation37_spill] sm:$0xff] }
 0x4de   : > { %6705 = vst.msk [vmem:[%s13034_s13 + $0x68] sm:$0xff] %vm330_vm1, %v6673_v63  ;;  %6706 = vst.msk [vmem:[%s13034_s13 + $0x70] sm:$0xff] %vm330_vm1, %v6674_v19  ;;  %v6690_v49 = vadd.f32 %v6658_v46, %v13811_v36  ;;  %v6691_v52 = vadd.f32 %v6659_v57, %v13812_v15 }
 0x4df   : > { %6707 = vst.msk [vmem:[%s13034_s13 + $0x78] sm:$0xff] %vm330_vm1, %v6675_v5  ;;  %6708 = vst.msk [vmem:[%s13034_s13 + $0x80] sm:$0xff] %vm330_vm1, %v6676_v4 }
 0x4e0   : > { %6709 = vst.msk [vmem:[%s13034_s13 + $0x88] sm:$0xff] %vm330_vm1, %v6677_v18  ;;  %6710 = vst.msk [vmem:[%s13034_s13 + $0x90] sm:$0xff] %vm330_vm1, %v6678_v59 }
 0x4e1   : > { %6711 = vst.msk [vmem:[%s13034_s13 + $0x98] sm:$0xff] %vm330_vm1, %v6679_v41  ;;  %6712 = vst.msk [vmem:[%s13034_s13 + $0xa0] sm:$0xff] %vm330_vm1, %v6680_v16 }
 0x4e2   : > { %6713 = vst.msk [vmem:[%s13034_s13 + $0xa8] sm:$0xff] %vm330_vm1, %v6681_v33  ;;  %6714 = vst.msk [vmem:[%s13034_s13 + $0xb0] sm:$0xff] %vm330_vm1, %v6682_v56 }
 0x4e3   : > { %6715 = vst.msk [vmem:[%s13034_s13 + $0xb8] sm:$0xff] %vm330_vm1, %v6683_v43  ;;  %6716 = vst.msk [vmem:[%s13034_s13 + $0xc0] sm:$0xff] %vm330_vm1, %v6684_v29 }
 0x4e4   : > { %6717 = vst.msk [vmem:[%s13034_s13 + $0xc8] sm:$0xff] %vm330_vm1, %v6685_v55  ;;  %6718 = vst.msk [vmem:[%s13034_s13 + $0xd0] sm:$0xff] %vm330_vm1, %v6686_v62 }
 0x4e5   : > { %6719 = vst.msk [vmem:[%s13034_s13 + $0xd8] sm:$0xff] %vm330_vm1, %v6687_v3  ;;  %6720 = vst.msk [vmem:[%s13034_s13 + $0xe0] sm:$0xff] %vm330_vm1, %v6688_v13 }
 0x4e6   : > { %6721 = vst.msk [vmem:[%s13034_s13 + $0xe8] sm:$0xff] %vm330_vm1, %v6689_v58  ;;  %6722 = vst.msk [vmem:[%s13034_s13 + $0xf0] sm:$0xff] %vm330_vm1, %v6690_v49 }
 0x4e7   : > { %6723 = vst.msk [vmem:[%s13034_s13 + $0xf8] sm:$0xff] %vm330_vm1, %v6691_v52 }
 0x4e8 PF: > { %s17_s24 = sadd.s32 1, %s8898_s24  }
 0x4e9   : > { %p14_p4 = scmp.ge.s32.totalorder %s17_s24, 4  }
 0x4eb   :  { %16 = sbr.rel (!%p14_p4) target bundleno = 1 (0x1), region = 80 }

</bundles_post_ra>
